<compile_context>
chip_gen: v7x
topology: tpu7x:2x2x1
jax: 0.10.0
libtpu: 0.0.40
codegen_flags: <defaults>
</compile_context>

<pallas_src>
import functools

import numpy as np
import jax
import jax.numpy as jnp
from jax import lax
from jax.experimental import pallas as pl
from jax.experimental.pallas import tpu as pltpu

INPUT_SIZE = 8    # module's `input_size` (small synthetic size)
HIDDEN = 32       # module's `hidden_size` (small synthetic size)


# ----------------------------------------------------------------------------
# Fused Pallas kernel (whole network)
# ----------------------------------------------------------------------------
def _bidir_lstm_chain(gx, whh_p, m, mc, h_sc, *, T, B, H):
    """Fused fwd+bwd LSTM recurrence for one bidirectional layer.

    gx:    (T*B, 8H) precomputed input projection (+bias), packed gate layout
           [i_f, i_b, f_f, f_b, g_f, g_b, o_f, o_b] (each block H wide).
    whh_p: (2H, 8H) block-structured recurrent weights for h = [h_f | h_b].
    m/mc:  (1, 8H) 1.0/0.0 masks selecting fwd / bwd gate slots.
    h_sc:  (T*B, 2H) VMEM scratch receiving the time-aligned [fwd|bwd] output.
    """
    h = jnp.zeros((B, 2 * H), jnp.float32)
    c = jnp.zeros((B, 2 * H), jnp.float32)
    # T is small and static: fully unrolled time loop (== fori_loop(unroll=True)),
    # so every slice/store offset below is static.
    for t in range(T):
        rt = T - 1 - t
        gx_t = gx[t * B:(t + 1) * B, :]
        gx_rt = gx[rt * B:(rt + 1) * B, :]
        # fwd gate slots consume x[t], bwd gate slots consume x[T-1-t].
        gates = (m * gx_t + mc * gx_rt
                 + jnp.dot(h, whh_p, preferred_element_type=jnp.float32))
        sg = jax.nn.sigmoid(gates)            # full-width transcendentals (EUP)
        th = jnp.tanh(gates)
        i = sg[:, 0:2 * H]
        f = sg[:, 2 * H:4 * H]
        g = th[:, 4 * H:6 * H]
        o = sg[:, 6 * H:8 * H]
        c = f * c + i * g                     # (B, 2H) = [c_f | c_b]
        h = o * jnp.tanh(c)                   # (B, 2H) = [h_f | h_b]
        # fwd hidden belongs to output time t; bwd hidden to output time T-1-t.
        h_sc[t * B:(t + 1) * B, 0:H] = h[:, 0:H]
        h_sc[rt * B:(rt + 1) * B, H:2 * H] = h[:, H:2 * H]


def _music_lstm_kernel(x_ref, mask_ref,
                       wih1_ref, whh1_ref, b1_ref,
                       wih2_ref, whh2_ref, b2_ref,
                       wih3_ref, whh3_ref, b3_ref,
                       whd_ref, bhd_ref,
                       out_ref,
                       h1_sc, h2_sc, h3_sc,
                       *, T, B, H):
    m = mask_ref[...]            # (1, 8H): 1.0 on fwd gate slots, 0.0 on bwd
    mc = 1.0 - m

    # ---- layer 1 (bidirectional, fused directions) -------------------------
    x = x_ref[...]                                              # (T*B, 2*IS)
    gx1 = (jnp.dot(x, wih1_ref[...], preferred_element_type=jnp.float32)
           + b1_ref[...])                                       # (T*B, 8H)
    _bidir_lstm_chain(gx1, whh1_ref[...], m, mc, h1_sc, T=T, B=B, H=H)

    # ---- layer 2 (bidirectional, fused directions) -------------------------
    # dropout1 is eval-mode identity.
    h1 = h1_sc[...]                                             # (T*B, 2H)
    gx2 = (jnp.dot(h1, wih2_ref[...], preferred_element_type=jnp.float32)
           + b2_ref[...])
    _bidir_lstm_chain(gx2, whh2_ref[...], m, mc, h2_sc, T=T, B=B, H=H)

    # ---- layer 3 (unidirectional) -------------------------------------------
    h2 = h2_sc[...]                                             # (T*B, 2H)
    gx3 = (jnp.dot(h2, wih3_ref[...], preferred_element_type=jnp.float32)
           + b3_ref[...])                                       # (T*B, 4H)
    whh3 = whh3_ref[...]
    h = jnp.zeros((B, H), jnp.float32)
    c = jnp.zeros((B, H), jnp.float32)
    for t in range(T):
        gates = (gx3[t * B:(t + 1) * B, :]
                 + jnp.dot(h, whh3, preferred_element_type=jnp.float32))
        sg = jax.nn.sigmoid(gates)
        th = jnp.tanh(gates)
        i = sg[:, 0:H]
        f = sg[:, H:2 * H]
        g = th[:, 2 * H:3 * H]
        o = sg[:, 3 * H:4 * H]
        c = f * c + i * g
        h = o * jnp.tanh(c)
        h3_sc[t * B:(t + 1) * B, :] = h

    # ---- fused note/velocity heads ------------------------------------------
    h3 = h3_sc[...]                                             # (T*B, H)
    out_ref[...] = jax.nn.sigmoid(
        jnp.dot(h3, whd_ref[...], preferred_element_type=jnp.float32)
        + bhd_ref[...])                                         # (T*B, 2*IS)


# ----------------------------------------------------------------------------
# Wrapper
# ----------------------------------------------------------------------------
def music_lstm_forward(x, params):
    """x: (B, T, 2*input_size) float32, batch_first.  Returns (note, velocity)."""
    B, T, F = x.shape
    H = params["whh3"].shape[0]
    IS = params["whd"].shape[1] // 2

    # torch forward: split into notes/velocities and re-concat (identity).
    notes, velocities = x[:, :, :IS], x[:, :, IS:]
    x = jnp.concatenate([notes, velocities], axis=-1)
    # time-major, flattened: row t*B + b == (time t, batch b)
    x_flat = jnp.transpose(x, (1, 0, 2)).reshape(T * B, F)

    kernel = functools.partial(_music_lstm_kernel, T=T, B=B, H=H)
    vmem = pltpu.MemorySpace.VMEM
    out_flat = pl.pallas_call(
        kernel,
        out_shape=jax.ShapeDtypeStruct((T * B, 2 * IS), jnp.float32),
        in_specs=[pl.BlockSpec(memory_space=vmem)] * 13,
        out_specs=pl.BlockSpec(memory_space=vmem),
        scratch_shapes=[
            pltpu.VMEM((T * B, 2 * H), jnp.float32),   # layer-1 bidir output
            pltpu.VMEM((T * B, 2 * H), jnp.float32),   # layer-2 bidir output
            pltpu.VMEM((T * B, H), jnp.float32),       # layer-3 output
        ],
    )(x_flat, params["fwd_mask"],
      params["wih1"], params["whh1"], params["b1"],
      params["wih2"], params["whh2"], params["b2"],
      params["wih3"], params["whh3"], params["b3"],
      params["whd"], params["bhd"])

    out = out_flat.reshape(T, B, 2 * IS).transpose(1, 0, 2)     # (B, T, 2*IS)
    # TODO(synk): training-mode dropout (p=0.3) not implemented (eval identity).
    return out[..., :IS], out[..., IS:]


# ----------------------------------------------------------------------------
# Parameters: PyTorch-layout init + packing into the fused kernel layout
# ----------------------------------------------------------------------------
def init_raw_params(key, input_size=INPUT_SIZE, hidden=HIDDEN):
    k = 1.0 / np.sqrt(hidden)
    keys = iter(jax.random.split(key, 64))

    def u(shape):
        return jax.random.uniform(next(keys), shape, jnp.float32, -k, k)

    def lstm_dir(din):
        return dict(w_ih=u((4 * hidden, din)), w_hh=u((4 * hidden, hidden)),
                    b_ih=u((4 * hidden,)), b_hh=u((4 * hidden,)))

    return {
        "lstm1": {"fwd": lstm_dir(2 * input_size), "bwd": lstm_dir(2 * input_size)},
        "lstm2": {"fwd": lstm_dir(2 * hidden), "bwd": lstm_dir(2 * hidden)},
        "lstm3": lstm_dir(2 * hidden),
        "note": {"w": u((input_size, hidden)), "b": u((input_size,))},
        "vel": {"w": u((input_size, hidden)), "b": u((input_size,))},
    }


def _pack_bidir(fwd, bwd, H):
    """Pack fwd/bwd LSTM weights into gate-interleaved fused layout."""
    din = fwd["w_ih"].shape[1]
    wih = np.zeros((din, 8 * H), np.float32)
    whh = np.zeros((2 * H, 8 * H), np.float32)
    b = np.zeros((1, 8 * H), np.float32)
    for d, p in enumerate((fwd, bwd)):
        w_ih = np.asarray(p["w_ih"])
        w_hh = np.asarray(p["w_hh"])
        bias = np.asarray(p["b_ih"]) + np.asarray(p["b_hh"])
        for k in range(4):                      # torch gate order: i, f, g, o
            col = (2 * k + d) * H
            wih[:, col:col + H] = w_ih[k * H:(k + 1) * H, :].T
            whh[d * H:(d + 1) * H, col:col + H] = w_hh[k * H:(k + 1) * H, :].T
            b[0, col:col + H] = bias[k * H:(k + 1) * H]
    return jnp.asarray(wih), jnp.asarray(whh), jnp.asarray(b)


def pack_params(raw, hidden=HIDDEN):
    H = hidden
    wih1, whh1, b1 = _pack_bidir(raw["lstm1"]["fwd"], raw["lstm1"]["bwd"], H)
    wih2, whh2, b2 = _pack_bidir(raw["lstm2"]["fwd"], raw["lstm2"]["bwd"], H)
    l3 = raw["lstm3"]
    wih3 = jnp.asarray(np.asarray(l3["w_ih"]).T)                      # (2H, 4H)
    whh3 = jnp.asarray(np.asarray(l3["w_hh"]).T)                      # (H, 4H)
    b3 = jnp.asarray((np.asarray(l3["b_ih"]) + np.asarray(l3["b_hh"]))[None, :])
    whd = jnp.asarray(np.concatenate(
        [np.asarray(raw["note"]["w"]).T, np.asarray(raw["vel"]["w"]).T], axis=1))
    bhd = jnp.asarray(np.concatenate(
        [np.asarray(raw["note"]["b"]), np.asarray(raw["vel"]["b"])])[None, :])
    fwd_mask = jnp.asarray(np.tile(
        np.concatenate([np.ones(H, np.float32), np.zeros(H, np.float32)]), 4)[None, :])
    return dict(wih1=wih1, whh1=whh1, b1=b1,
                wih2=wih2, whh2=whh2, b2=b2,
                wih3=wih3, whh3=whh3, b3=b3,
                whd=whd, bhd=bhd, fwd_mask=fwd_mask)


# ----------------------------------------------------------------------------
# Pure-JAX reference (uses the raw PyTorch-layout parameters)
# ----------------------------------------------------------------------------
def _ref_lstm_layer(x_tbd, p):
    Hh = p["w_hh"].shape[1]
    B = x_tbd.shape[1]
    wi, wh = p["w_ih"].T, p["w_hh"].T
    b = (p["b_ih"] + p["b_hh"])[None, :]

    def step(carry, x_t):
        h, c = carry
        gates = x_t @ wi + h @ wh + b
        i = jax.nn.sigmoid(gates[:, :Hh])
        f = jax.nn.sigmoid(gates[:, Hh:2 * Hh])
        g = jnp.tanh(gates[:, 2 * Hh:3 * Hh])
        o = jax.nn.sigmoid(gates[:, 3 * Hh:])
        c = f * c + i * g
        h = o * jnp.tanh(c)
        return (h, c), h

    z = jnp.zeros((B, Hh), jnp.float32)
    _, ys = lax.scan(step, (z, z), x_tbd)
    return ys


def _ref_forward(x, raw):
    xt = jnp.transpose(x, (1, 0, 2))

    def bidir(p, xin):
        f = _ref_lstm_layer(xin, p["fwd"])
        b = _ref_lstm_layer(xin[::-1], p["bwd"])[::-1]
        return jnp.concatenate([f, b], axis=-1)

    h1 = bidir(raw["lstm1"], xt)
    h2 = bidir(raw["lstm2"], h1)
    h3 = _ref_lstm_layer(h2, raw["lstm3"])
    n = jax.nn.sigmoid(h3 @ raw["note"]["w"].T + raw["note"]["b"])
    v = jax.nn.sigmoid(h3 @ raw["vel"]["w"].T + raw["vel"]["b"])
    return jnp.transpose(n, (1, 0, 2)), jnp.transpose(v, (1, 0, 2))


if __name__ == "__main__":
    key = jax.random.PRNGKey(0)
    pkey, xkey = jax.random.split(key)
    raw = init_raw_params(pkey)
    packed = pack_params(raw)

    B, T = 2, 8
    x = jax.random.normal(xkey, (B, T, 2 * INPUT_SIZE), jnp.float32)

    fwd_fn = jax.jit(music_lstm_forward)
    note_out, vel_out = fwd_fn(x, packed)
    note_out, vel_out = jax.block_until_ready((note_out, vel_out))

    ref_n, ref_v = _ref_forward(x, raw)
    np.testing.assert_allclose(np.asarray(note_out), np.asarray(ref_n),
                               rtol=1e-3, atol=1e-3)
    np.testing.assert_allclose(np.asarray(vel_out), np.asarray(ref_v),
                               rtol=1e-3, atol=1e-3)
    assert note_out.shape == (B, T, INPUT_SIZE)
    assert vel_out.shape == (B, T, INPUT_SIZE)

    print("KERNEL_OK")
</pallas_src>

<mosaic_0001>
module attributes {stable_mosaic.version = 11 : i64} {
  func.func @_music_lstm_kernel(%arg0: memref<16x16xf32, #tpu.memory_space<vmem>>, %arg1: memref<1x256xf32, #tpu.memory_space<vmem>>, %arg2: memref<16x256xf32, #tpu.memory_space<vmem>>, %arg3: memref<64x256xf32, #tpu.memory_space<vmem>>, %arg4: memref<1x256xf32, #tpu.memory_space<vmem>>, %arg5: memref<64x256xf32, #tpu.memory_space<vmem>>, %arg6: memref<64x256xf32, #tpu.memory_space<vmem>>, %arg7: memref<1x256xf32, #tpu.memory_space<vmem>>, %arg8: memref<64x128xf32, #tpu.memory_space<vmem>>, %arg9: memref<32x128xf32, #tpu.memory_space<vmem>>, %arg10: memref<1x128xf32, #tpu.memory_space<vmem>>, %arg11: memref<32x16xf32, #tpu.memory_space<vmem>>, %arg12: memref<1x16xf32, #tpu.memory_space<vmem>>, %arg13: memref<16x16xf32, #tpu.memory_space<vmem>>, %arg14: memref<16x64xf32, #tpu.memory_space<vmem>>, %arg15: memref<16x64xf32, #tpu.memory_space<vmem>>, %arg16: memref<16x32xf32, #tpu.memory_space<vmem>>) attributes {dimension_semantics = [], scalar_prefetch = 0 : i64, scratch_operands = 3 : i64, tpu.core_type = #tpu.core_type<tc>} {
    %c0 = arith.constant 0 : index
    %c0_0 = arith.constant 0 : index
    %0 = vector.load %arg1[%c0, %c0_0] : memref<1x256xf32, #tpu.memory_space<vmem>>, vector<1x256xf32>
    %cst = arith.constant 1.000000e+00 : f32
    %1 = vector.broadcast %cst : f32 to vector<1x256xf32>
    %2 = arith.subf %1, %0 : vector<1x256xf32>
    %c0_1 = arith.constant 0 : index
    %c0_2 = arith.constant 0 : index
    %3 = vector.load %arg0[%c0_1, %c0_2] : memref<16x16xf32, #tpu.memory_space<vmem>>, vector<16x16xf32>
    %c0_3 = arith.constant 0 : index
    %c0_4 = arith.constant 0 : index
    %4 = vector.load %arg2[%c0_3, %c0_4] : memref<16x256xf32, #tpu.memory_space<vmem>>, vector<16x256xf32>
    %cst_5 = arith.constant dense<0.000000e+00> : vector<16x256xf32>
    %5 = tpu.matmul %3, %4, %cst_5 {dimension_numbers = #tpu.dot_dimension_numbers<[1], [0], [0], [1], [0, 0, 1, 1], [], []>} : vector<16x16xf32>, vector<16x256xf32>, vector<16x256xf32> -> vector<16x256xf32>
    %c0_6 = arith.constant 0 : index
    %c0_7 = arith.constant 0 : index
    %6 = vector.load %arg4[%c0_6, %c0_7] : memref<1x256xf32, #tpu.memory_space<vmem>>, vector<1x256xf32>
    %7 = vector.broadcast %6 : vector<1x256xf32> to vector<16x256xf32>
    %8 = arith.addf %5, %7 : vector<16x256xf32>
    %c0_8 = arith.constant 0 : index
    %c0_9 = arith.constant 0 : index
    %9 = vector.load %arg3[%c0_8, %c0_9] : memref<64x256xf32, #tpu.memory_space<vmem>>, vector<64x256xf32>
    %cst_10 = arith.constant 0.000000e+00 : f32
    %10 = vector.broadcast %cst_10 : f32 to vector<2x64xf32>
    %cst_11 = arith.constant 0.000000e+00 : f32
    %11 = vector.broadcast %cst_11 : f32 to vector<2x64xf32>
    %12 = vector.extract_strided_slice %8 {offsets = [0, 0], sizes = [2, 256], strides = [1, 1]} : vector<16x256xf32> to vector<2x256xf32>
    %13 = vector.extract_strided_slice %8 {offsets = [14, 0], sizes = [2, 256], strides = [1, 1]} : vector<16x256xf32> to vector<2x256xf32>
    %14 = vector.broadcast %0 : vector<1x256xf32> to vector<2x256xf32>
    %15 = arith.mulf %14, %12 : vector<2x256xf32>
    %16 = vector.broadcast %2 : vector<1x256xf32> to vector<2x256xf32>
    %17 = arith.mulf %16, %13 : vector<2x256xf32>
    %18 = arith.addf %15, %17 : vector<2x256xf32>
    %cst_12 = arith.constant dense<0.000000e+00> : vector<2x256xf32>
    %19 = tpu.matmul %10, %9, %cst_12 {dimension_numbers = #tpu.dot_dimension_numbers<[1], [0], [0], [1], [0, 0, 1, 1], [], []>} : vector<2x64xf32>, vector<64x256xf32>, vector<2x256xf32> -> vector<2x256xf32>
    %20 = arith.addf %18, %19 : vector<2x256xf32>
    %21 = arith.negf %20 : vector<2x256xf32>
    %22 = math.exp %21 : vector<2x256xf32>
    %cst_13 = arith.constant 1.000000e+00 : f32
    %23 = vector.broadcast %cst_13 : f32 to vector<2x256xf32>
    %24 = arith.addf %23, %22 : vector<2x256xf32>
    %25 = arith.divf %23, %24 : vector<2x256xf32>
    %26 = math.tanh %20 : vector<2x256xf32>
    %27 = vector.extract_strided_slice %25 {offsets = [0, 0], sizes = [2, 64], strides = [1, 1]} : vector<2x256xf32> to vector<2x64xf32>
    %28 = vector.extract_strided_slice %25 {offsets = [0, 64], sizes = [2, 64], strides = [1, 1]} : vector<2x256xf32> to vector<2x64xf32>
    %29 = vector.extract_strided_slice %26 {offsets = [0, 128], sizes = [2, 64], strides = [1, 1]} : vector<2x256xf32> to vector<2x64xf32>
    %30 = vector.extract_strided_slice %25 {offsets = [0, 192], sizes = [2, 64], strides = [1, 1]} : vector<2x256xf32> to vector<2x64xf32>
    %31 = arith.mulf %28, %11 : vector<2x64xf32>
    %32 = arith.mulf %27, %29 : vector<2x64xf32>
    %33 = arith.addf %31, %32 : vector<2x64xf32>
    %34 = math.tanh %33 : vector<2x64xf32>
    %35 = arith.mulf %30, %34 : vector<2x64xf32>
    %36 = vector.extract_strided_slice %35 {offsets = [0, 0], sizes = [2, 32], strides = [1, 1]} : vector<2x64xf32> to vector<2x32xf32>
    %c0_14 = arith.constant 0 : index
    %c0_15 = arith.constant 0 : index
    %37 = vector.load %arg14[%c0_14, %c0_15] : memref<16x64xf32, #tpu.memory_space<vmem>>, vector<2x32xf32>
    tpu.vector_store %arg14[%c0_14, %c0_15], %36 {strides = array<i32>} : memref<16x64xf32, #tpu.memory_space<vmem>>, vector<2x32xf32>,
    %38 = vector.extract_strided_slice %35 {offsets = [0, 32], sizes = [2, 32], strides = [1, 1]} : vector<2x64xf32> to vector<2x32xf32>
    %c14 = arith.constant 14 : index
    %c32 = arith.constant 32 : index
    %39 = vector.load %arg14[%c14, %c32] : memref<16x64xf32, #tpu.memory_space<vmem>>, vector<2x32xf32>
    tpu.vector_store %arg14[%c14, %c32], %38 {strides = array<i32>} : memref<16x64xf32, #tpu.memory_space<vmem>>, vector<2x32xf32>,
    %40 = vector.extract_strided_slice %8 {offsets = [2, 0], sizes = [2, 256], strides = [1, 1]} : vector<16x256xf32> to vector<2x256xf32>
    %41 = vector.extract_strided_slice %8 {offsets = [12, 0], sizes = [2, 256], strides = [1, 1]} : vector<16x256xf32> to vector<2x256xf32>
    %42 = vector.broadcast %0 : vector<1x256xf32> to vector<2x256xf32>
    %43 = arith.mulf %42, %40 : vector<2x256xf32>
    %44 = vector.broadcast %2 : vector<1x256xf32> to vector<2x256xf32>
    %45 = arith.mulf %44, %41 : vector<2x256xf32>
    %46 = arith.addf %43, %45 : vector<2x256xf32>
    %cst_16 = arith.constant dense<0.000000e+00> : vector<2x256xf32>
    %47 = tpu.matmul %35, %9, %cst_16 {dimension_numbers = #tpu.dot_dimension_numbers<[1], [0], [0], [1], [0, 0, 1, 1], [], []>} : vector<2x64xf32>, vector<64x256xf32>, vector<2x256xf32> -> vector<2x256xf32>
    %48 = arith.addf %46, %47 : vector<2x256xf32>
    %49 = arith.negf %48 : vector<2x256xf32>
    %50 = math.exp %49 : vector<2x256xf32>
    %cst_17 = arith.constant 1.000000e+00 : f32
    %51 = vector.broadcast %cst_17 : f32 to vector<2x256xf32>
    %52 = arith.addf %51, %50 : vector<2x256xf32>
    %53 = arith.divf %51, %52 : vector<2x256xf32>
    %54 = math.tanh %48 : vector<2x256xf32>
    %55 = vector.extract_strided_slice %53 {offsets = [0, 0], sizes = [2, 64], strides = [1, 1]} : vector<2x256xf32> to vector<2x64xf32>
    %56 = vector.extract_strided_slice %53 {offsets = [0, 64], sizes = [2, 64], strides = [1, 1]} : vector<2x256xf32> to vector<2x64xf32>
    %57 = vector.extract_strided_slice %54 {offsets = [0, 128], sizes = [2, 64], strides = [1, 1]} : vector<2x256xf32> to vector<2x64xf32>
    %58 = vector.extract_strided_slice %53 {offsets = [0, 192], sizes = [2, 64], strides = [1, 1]} : vector<2x256xf32> to vector<2x64xf32>
    %59 = arith.mulf %56, %33 : vector<2x64xf32>
    %60 = arith.mulf %55, %57 : vector<2x64xf32>
    %61 = arith.addf %59, %60 : vector<2x64xf32>
    %62 = math.tanh %61 : vector<2x64xf32>
    %63 = arith.mulf %58, %62 : vector<2x64xf32>
    %64 = vector.extract_strided_slice %63 {offsets = [0, 0], sizes = [2, 32], strides = [1, 1]} : vector<2x64xf32> to vector<2x32xf32>
    %c2 = arith.constant 2 : index
    %c0_18 = arith.constant 0 : index
    %65 = vector.load %arg14[%c2, %c0_18] : memref<16x64xf32, #tpu.memory_space<vmem>>, vector<2x32xf32>
    tpu.vector_store %arg14[%c2, %c0_18], %64 {strides = array<i32>} : memref<16x64xf32, #tpu.memory_space<vmem>>, vector<2x32xf32>,
    %66 = vector.extract_strided_slice %63 {offsets = [0, 32], sizes = [2, 32], strides = [1, 1]} : vector<2x64xf32> to vector<2x32xf32>
    %c12 = arith.constant 12 : index
    %c32_19 = arith.constant 32 : index
    %67 = vector.load %arg14[%c12, %c32_19] : memref<16x64xf32, #tpu.memory_space<vmem>>, vector<2x32xf32>
    tpu.vector_store %arg14[%c12, %c32_19], %66 {strides = array<i32>} : memref<16x64xf32, #tpu.memory_space<vmem>>, vector<2x32xf32>,
    %68 = vector.extract_strided_slice %8 {offsets = [4, 0], sizes = [2, 256], strides = [1, 1]} : vector<16x256xf32> to vector<2x256xf32>
    %69 = vector.extract_strided_slice %8 {offsets = [10, 0], sizes = [2, 256], strides = [1, 1]} : vector<16x256xf32> to vector<2x256xf32>
    %70 = vector.broadcast %0 : vector<1x256xf32> to vector<2x256xf32>
    %71 = arith.mulf %70, %68 : vector<2x256xf32>
    %72 = vector.broadcast %2 : vector<1x256xf32> to vector<2x256xf32>
    %73 = arith.mulf %72, %69 : vector<2x256xf32>
    %74 = arith.addf %71, %73 : vector<2x256xf32>
    %cst_20 = arith.constant dense<0.000000e+00> : vector<2x256xf32>
    %75 = tpu.matmul %63, %9, %cst_20 {dimension_numbers = #tpu.dot_dimension_numbers<[1], [0], [0], [1], [0, 0, 1, 1], [], []>} : vector<2x64xf32>, vector<64x256xf32>, vector<2x256xf32> -> vector<2x256xf32>
    %76 = arith.addf %74, %75 : vector<2x256xf32>
    %77 = arith.negf %76 : vector<2x256xf32>
    %78 = math.exp %77 : vector<2x256xf32>
    %cst_21 = arith.constant 1.000000e+00 : f32
    %79 = vector.broadcast %cst_21 : f32 to vector<2x256xf32>
    %80 = arith.addf %79, %78 : vector<2x256xf32>
    %81 = arith.divf %79, %80 : vector<2x256xf32>
    %82 = math.tanh %76 : vector<2x256xf32>
    %83 = vector.extract_strided_slice %81 {offsets = [0, 0], sizes = [2, 64], strides = [1, 1]} : vector<2x256xf32> to vector<2x64xf32>
    %84 = vector.extract_strided_slice %81 {offsets = [0, 64], sizes = [2, 64], strides = [1, 1]} : vector<2x256xf32> to vector<2x64xf32>
    %85 = vector.extract_strided_slice %82 {offsets = [0, 128], sizes = [2, 64], strides = [1, 1]} : vector<2x256xf32> to vector<2x64xf32>
    %86 = vector.extract_strided_slice %81 {offsets = [0, 192], sizes = [2, 64], strides = [1, 1]} : vector<2x256xf32> to vector<2x64xf32>
    %87 = arith.mulf %84, %61 : vector<2x64xf32>
    %88 = arith.mulf %83, %85 : vector<2x64xf32>
    %89 = arith.addf %87, %88 : vector<2x64xf32>
    %90 = math.tanh %89 : vector<2x64xf32>
    %91 = arith.mulf %86, %90 : vector<2x64xf32>
    %92 = vector.extract_strided_slice %91 {offsets = [0, 0], sizes = [2, 32], strides = [1, 1]} : vector<2x64xf32> to vector<2x32xf32>
    %c4 = arith.constant 4 : index
    %c0_22 = arith.constant 0 : index
    %93 = vector.load %arg14[%c4, %c0_22] : memref<16x64xf32, #tpu.memory_space<vmem>>, vector<2x32xf32>
    tpu.vector_store %arg14[%c4, %c0_22], %92 {strides = array<i32>} : memref<16x64xf32, #tpu.memory_space<vmem>>, vector<2x32xf32>,
    %94 = vector.extract_strided_slice %91 {offsets = [0, 32], sizes = [2, 32], strides = [1, 1]} : vector<2x64xf32> to vector<2x32xf32>
    %c10 = arith.constant 10 : index
    %c32_23 = arith.constant 32 : index
    %95 = vector.load %arg14[%c10, %c32_23] : memref<16x64xf32, #tpu.memory_space<vmem>>, vector<2x32xf32>
    tpu.vector_store %arg14[%c10, %c32_23], %94 {strides = array<i32>} : memref<16x64xf32, #tpu.memory_space<vmem>>, vector<2x32xf32>,
    %96 = vector.extract_strided_slice %8 {offsets = [6, 0], sizes = [2, 256], strides = [1, 1]} : vector<16x256xf32> to vector<2x256xf32>
    %97 = vector.extract_strided_slice %8 {offsets = [8, 0], sizes = [2, 256], strides = [1, 1]} : vector<16x256xf32> to vector<2x256xf32>
    %98 = vector.broadcast %0 : vector<1x256xf32> to vector<2x256xf32>
    %99 = arith.mulf %98, %96 : vector<2x256xf32>
    %100 = vector.broadcast %2 : vector<1x256xf32> to vector<2x256xf32>
    %101 = arith.mulf %100, %97 : vector<2x256xf32>
    %102 = arith.addf %99, %101 : vector<2x256xf32>
    %cst_24 = arith.constant dense<0.000000e+00> : vector<2x256xf32>
    %103 = tpu.matmul %91, %9, %cst_24 {dimension_numbers = #tpu.dot_dimension_numbers<[1], [0], [0], [1], [0, 0, 1, 1], [], []>} : vector<2x64xf32>, vector<64x256xf32>, vector<2x256xf32> -> vector<2x256xf32>
    %104 = arith.addf %102, %103 : vector<2x256xf32>
    %105 = arith.negf %104 : vector<2x256xf32>
    %106 = math.exp %105 : vector<2x256xf32>
    %cst_25 = arith.constant 1.000000e+00 : f32
    %107 = vector.broadcast %cst_25 : f32 to vector<2x256xf32>
    %108 = arith.addf %107, %106 : vector<2x256xf32>
    %109 = arith.divf %107, %108 : vector<2x256xf32>
    %110 = math.tanh %104 : vector<2x256xf32>
    %111 = vector.extract_strided_slice %109 {offsets = [0, 0], sizes = [2, 64], strides = [1, 1]} : vector<2x256xf32> to vector<2x64xf32>
    %112 = vector.extract_strided_slice %109 {offsets = [0, 64], sizes = [2, 64], strides = [1, 1]} : vector<2x256xf32> to vector<2x64xf32>
    %113 = vector.extract_strided_slice %110 {offsets = [0, 128], sizes = [2, 64], strides = [1, 1]} : vector<2x256xf32> to vector<2x64xf32>
    %114 = vector.extract_strided_slice %109 {offsets = [0, 192], sizes = [2, 64], strides = [1, 1]} : vector<2x256xf32> to vector<2x64xf32>
    %115 = arith.mulf %112, %89 : vector<2x64xf32>
    %116 = arith.mulf %111, %113 : vector<2x64xf32>
    %117 = arith.addf %115, %116 : vector<2x64xf32>
    %118 = math.tanh %117 : vector<2x64xf32>
    %119 = arith.mulf %114, %118 : vector<2x64xf32>
    %120 = vector.extract_strided_slice %119 {offsets = [0, 0], sizes = [2, 32], strides = [1, 1]} : vector<2x64xf32> to vector<2x32xf32>
    %c6 = arith.constant 6 : index
    %c0_26 = arith.constant 0 : index
    %121 = vector.load %arg14[%c6, %c0_26] : memref<16x64xf32, #tpu.memory_space<vmem>>, vector<2x32xf32>
    tpu.vector_store %arg14[%c6, %c0_26], %120 {strides = array<i32>} : memref<16x64xf32, #tpu.memory_space<vmem>>, vector<2x32xf32>,
    %122 = vector.extract_strided_slice %119 {offsets = [0, 32], sizes = [2, 32], strides = [1, 1]} : vector<2x64xf32> to vector<2x32xf32>
    %c8 = arith.constant 8 : index
    %c32_27 = arith.constant 32 : index
    %123 = vector.load %arg14[%c8, %c32_27] : memref<16x64xf32, #tpu.memory_space<vmem>>, vector<2x32xf32>
    tpu.vector_store %arg14[%c8, %c32_27], %122 {strides = array<i32>} : memref<16x64xf32, #tpu.memory_space<vmem>>, vector<2x32xf32>,
    %124 = vector.extract_strided_slice %8 {offsets = [8, 0], sizes = [2, 256], strides = [1, 1]} : vector<16x256xf32> to vector<2x256xf32>
    %125 = vector.extract_strided_slice %8 {offsets = [6, 0], sizes = [2, 256], strides = [1, 1]} : vector<16x256xf32> to vector<2x256xf32>
    %126 = vector.broadcast %0 : vector<1x256xf32> to vector<2x256xf32>
    %127 = arith.mulf %126, %124 : vector<2x256xf32>
    %128 = vector.broadcast %2 : vector<1x256xf32> to vector<2x256xf32>
    %129 = arith.mulf %128, %125 : vector<2x256xf32>
    %130 = arith.addf %127, %129 : vector<2x256xf32>
    %cst_28 = arith.constant dense<0.000000e+00> : vector<2x256xf32>
    %131 = tpu.matmul %119, %9, %cst_28 {dimension_numbers = #tpu.dot_dimension_numbers<[1], [0], [0], [1], [0, 0, 1, 1], [], []>} : vector<2x64xf32>, vector<64x256xf32>, vector<2x256xf32> -> vector<2x256xf32>
    %132 = arith.addf %130, %131 : vector<2x256xf32>
    %133 = arith.negf %132 : vector<2x256xf32>
    %134 = math.exp %133 : vector<2x256xf32>
    %cst_29 = arith.constant 1.000000e+00 : f32
    %135 = vector.broadcast %cst_29 : f32 to vector<2x256xf32>
    %136 = arith.addf %135, %134 : vector<2x256xf32>
    %137 = arith.divf %135, %136 : vector<2x256xf32>
    %138 = math.tanh %132 : vector<2x256xf32>
    %139 = vector.extract_strided_slice %137 {offsets = [0, 0], sizes = [2, 64], strides = [1, 1]} : vector<2x256xf32> to vector<2x64xf32>
    %140 = vector.extract_strided_slice %137 {offsets = [0, 64], sizes = [2, 64], strides = [1, 1]} : vector<2x256xf32> to vector<2x64xf32>
    %141 = vector.extract_strided_slice %138 {offsets = [0, 128], sizes = [2, 64], strides = [1, 1]} : vector<2x256xf32> to vector<2x64xf32>
    %142 = vector.extract_strided_slice %137 {offsets = [0, 192], sizes = [2, 64], strides = [1, 1]} : vector<2x256xf32> to vector<2x64xf32>
    %143 = arith.mulf %140, %117 : vector<2x64xf32>
    %144 = arith.mulf %139, %141 : vector<2x64xf32>
    %145 = arith.addf %143, %144 : vector<2x64xf32>
    %146 = math.tanh %145 : vector<2x64xf32>
    %147 = arith.mulf %142, %146 : vector<2x64xf32>
    %148 = vector.extract_strided_slice %147 {offsets = [0, 0], sizes = [2, 32], strides = [1, 1]} : vector<2x64xf32> to vector<2x32xf32>
    %c8_30 = arith.constant 8 : index
    %c0_31 = arith.constant 0 : index
    %149 = vector.load %arg14[%c8_30, %c0_31] : memref<16x64xf32, #tpu.memory_space<vmem>>, vector<2x32xf32>
    tpu.vector_store %arg14[%c8_30, %c0_31], %148 {strides = array<i32>} : memref<16x64xf32, #tpu.memory_space<vmem>>, vector<2x32xf32>,
    %150 = vector.extract_strided_slice %147 {offsets = [0, 32], sizes = [2, 32], strides = [1, 1]} : vector<2x64xf32> to vector<2x32xf32>
    %c6_32 = arith.constant 6 : index
    %c32_33 = arith.constant 32 : index
    %151 = vector.load %arg14[%c6_32, %c32_33] : memref<16x64xf32, #tpu.memory_space<vmem>>, vector<2x32xf32>
    tpu.vector_store %arg14[%c6_32, %c32_33], %150 {strides = array<i32>} : memref<16x64xf32, #tpu.memory_space<vmem>>, vector<2x32xf32>,
    %152 = vector.extract_strided_slice %8 {offsets = [10, 0], sizes = [2, 256], strides = [1, 1]} : vector<16x256xf32> to vector<2x256xf32>
    %153 = vector.extract_strided_slice %8 {offsets = [4, 0], sizes = [2, 256], strides = [1, 1]} : vector<16x256xf32> to vector<2x256xf32>
    %154 = vector.broadcast %0 : vector<1x256xf32> to vector<2x256xf32>
    %155 = arith.mulf %154, %152 : vector<2x256xf32>
    %156 = vector.broadcast %2 : vector<1x256xf32> to vector<2x256xf32>
    %157 = arith.mulf %156, %153 : vector<2x256xf32>
    %158 = arith.addf %155, %157 : vector<2x256xf32>
    %cst_34 = arith.constant dense<0.000000e+00> : vector<2x256xf32>
    %159 = tpu.matmul %147, %9, %cst_34 {dimension_numbers = #tpu.dot_dimension_numbers<[1], [0], [0], [1], [0, 0, 1, 1], [], []>} : vector<2x64xf32>, vector<64x256xf32>, vector<2x256xf32> -> vector<2x256xf32>
    %160 = arith.addf %158, %159 : vector<2x256xf32>
    %161 = arith.negf %160 : vector<2x256xf32>
    %162 = math.exp %161 : vector<2x256xf32>
    %cst_35 = arith.constant 1.000000e+00 : f32
    %163 = vector.broadcast %cst_35 : f32 to vector<2x256xf32>
    %164 = arith.addf %163, %162 : vector<2x256xf32>
    %165 = arith.divf %163, %164 : vector<2x256xf32>
    %166 = math.tanh %160 : vector<2x256xf32>
    %167 = vector.extract_strided_slice %165 {offsets = [0, 0], sizes = [2, 64], strides = [1, 1]} : vector<2x256xf32> to vector<2x64xf32>
    %168 = vector.extract_strided_slice %165 {offsets = [0, 64], sizes = [2, 64], strides = [1, 1]} : vector<2x256xf32> to vector<2x64xf32>
    %169 = vector.extract_strided_slice %166 {offsets = [0, 128], sizes = [2, 64], strides = [1, 1]} : vector<2x256xf32> to vector<2x64xf32>
    %170 = vector.extract_strided_slice %165 {offsets = [0, 192], sizes = [2, 64], strides = [1, 1]} : vector<2x256xf32> to vector<2x64xf32>
    %171 = arith.mulf %168, %145 : vector<2x64xf32>
    %172 = arith.mulf %167, %169 : vector<2x64xf32>
    %173 = arith.addf %171, %172 : vector<2x64xf32>
    %174 = math.tanh %173 : vector<2x64xf32>
    %175 = arith.mulf %170, %174 : vector<2x64xf32>
    %176 = vector.extract_strided_slice %175 {offsets = [0, 0], sizes = [2, 32], strides = [1, 1]} : vector<2x64xf32> to vector<2x32xf32>
    %c10_36 = arith.constant 10 : index
    %c0_37 = arith.constant 0 : index
    %177 = vector.load %arg14[%c10_36, %c0_37] : memref<16x64xf32, #tpu.memory_space<vmem>>, vector<2x32xf32>
    tpu.vector_store %arg14[%c10_36, %c0_37], %176 {strides = array<i32>} : memref<16x64xf32, #tpu.memory_space<vmem>>, vector<2x32xf32>,
    %178 = vector.extract_strided_slice %175 {offsets = [0, 32], sizes = [2, 32], strides = [1, 1]} : vector<2x64xf32> to vector<2x32xf32>
    %c4_38 = arith.constant 4 : index
    %c32_39 = arith.constant 32 : index
    %179 = vector.load %arg14[%c4_38, %c32_39] : memref<16x64xf32, #tpu.memory_space<vmem>>, vector<2x32xf32>
    tpu.vector_store %arg14[%c4_38, %c32_39], %178 {strides = array<i32>} : memref<16x64xf32, #tpu.memory_space<vmem>>, vector<2x32xf32>,
    %180 = vector.extract_strided_slice %8 {offsets = [12, 0], sizes = [2, 256], strides = [1, 1]} : vector<16x256xf32> to vector<2x256xf32>
    %181 = vector.extract_strided_slice %8 {offsets = [2, 0], sizes = [2, 256], strides = [1, 1]} : vector<16x256xf32> to vector<2x256xf32>
    %182 = vector.broadcast %0 : vector<1x256xf32> to vector<2x256xf32>
    %183 = arith.mulf %182, %180 : vector<2x256xf32>
    %184 = vector.broadcast %2 : vector<1x256xf32> to vector<2x256xf32>
    %185 = arith.mulf %184, %181 : vector<2x256xf32>
    %186 = arith.addf %183, %185 : vector<2x256xf32>
    %cst_40 = arith.constant dense<0.000000e+00> : vector<2x256xf32>
    %187 = tpu.matmul %175, %9, %cst_40 {dimension_numbers = #tpu.dot_dimension_numbers<[1], [0], [0], [1], [0, 0, 1, 1], [], []>} : vector<2x64xf32>, vector<64x256xf32>, vector<2x256xf32> -> vector<2x256xf32>
    %188 = arith.addf %186, %187 : vector<2x256xf32>
    %189 = arith.negf %188 : vector<2x256xf32>
    %190 = math.exp %189 : vector<2x256xf32>
    %cst_41 = arith.constant 1.000000e+00 : f32
    %191 = vector.broadcast %cst_41 : f32 to vector<2x256xf32>
    %192 = arith.addf %191, %190 : vector<2x256xf32>
    %193 = arith.divf %191, %192 : vector<2x256xf32>
    %194 = math.tanh %188 : vector<2x256xf32>
    %195 = vector.extract_strided_slice %193 {offsets = [0, 0], sizes = [2, 64], strides = [1, 1]} : vector<2x256xf32> to vector<2x64xf32>
    %196 = vector.extract_strided_slice %193 {offsets = [0, 64], sizes = [2, 64], strides = [1, 1]} : vector<2x256xf32> to vector<2x64xf32>
    %197 = vector.extract_strided_slice %194 {offsets = [0, 128], sizes = [2, 64], strides = [1, 1]} : vector<2x256xf32> to vector<2x64xf32>
    %198 = vector.extract_strided_slice %193 {offsets = [0, 192], sizes = [2, 64], strides = [1, 1]} : vector<2x256xf32> to vector<2x64xf32>
    %199 = arith.mulf %196, %173 : vector<2x64xf32>
    %200 = arith.mulf %195, %197 : vector<2x64xf32>
    %201 = arith.addf %199, %200 : vector<2x64xf32>
    %202 = math.tanh %201 : vector<2x64xf32>
    %203 = arith.mulf %198, %202 : vector<2x64xf32>
    %204 = vector.extract_strided_slice %203 {offsets = [0, 0], sizes = [2, 32], strides = [1, 1]} : vector<2x64xf32> to vector<2x32xf32>
    %c12_42 = arith.constant 12 : index
    %c0_43 = arith.constant 0 : index
    %205 = vector.load %arg14[%c12_42, %c0_43] : memref<16x64xf32, #tpu.memory_space<vmem>>, vector<2x32xf32>
    tpu.vector_store %arg14[%c12_42, %c0_43], %204 {strides = array<i32>} : memref<16x64xf32, #tpu.memory_space<vmem>>, vector<2x32xf32>,
    %206 = vector.extract_strided_slice %203 {offsets = [0, 32], sizes = [2, 32], strides = [1, 1]} : vector<2x64xf32> to vector<2x32xf32>
    %c2_44 = arith.constant 2 : index
    %c32_45 = arith.constant 32 : index
    %207 = vector.load %arg14[%c2_44, %c32_45] : memref<16x64xf32, #tpu.memory_space<vmem>>, vector<2x32xf32>
    tpu.vector_store %arg14[%c2_44, %c32_45], %206 {strides = array<i32>} : memref<16x64xf32, #tpu.memory_space<vmem>>, vector<2x32xf32>,
    %208 = vector.extract_strided_slice %8 {offsets = [14, 0], sizes = [2, 256], strides = [1, 1]} : vector<16x256xf32> to vector<2x256xf32>
    %209 = vector.extract_strided_slice %8 {offsets = [0, 0], sizes = [2, 256], strides = [1, 1]} : vector<16x256xf32> to vector<2x256xf32>
    %210 = vector.broadcast %0 : vector<1x256xf32> to vector<2x256xf32>
    %211 = arith.mulf %210, %208 : vector<2x256xf32>
    %212 = vector.broadcast %2 : vector<1x256xf32> to vector<2x256xf32>
    %213 = arith.mulf %212, %209 : vector<2x256xf32>
    %214 = arith.addf %211, %213 : vector<2x256xf32>
    %cst_46 = arith.constant dense<0.000000e+00> : vector<2x256xf32>
    %215 = tpu.matmul %203, %9, %cst_46 {dimension_numbers = #tpu.dot_dimension_numbers<[1], [0], [0], [1], [0, 0, 1, 1], [], []>} : vector<2x64xf32>, vector<64x256xf32>, vector<2x256xf32> -> vector<2x256xf32>
    %216 = arith.addf %214, %215 : vector<2x256xf32>
    %217 = arith.negf %216 : vector<2x256xf32>
    %218 = math.exp %217 : vector<2x256xf32>
    %cst_47 = arith.constant 1.000000e+00 : f32
    %219 = vector.broadcast %cst_47 : f32 to vector<2x256xf32>
    %220 = arith.addf %219, %218 : vector<2x256xf32>
    %221 = arith.divf %219, %220 : vector<2x256xf32>
    %222 = math.tanh %216 : vector<2x256xf32>
    %223 = vector.extract_strided_slice %221 {offsets = [0, 0], sizes = [2, 64], strides = [1, 1]} : vector<2x256xf32> to vector<2x64xf32>
    %224 = vector.extract_strided_slice %221 {offsets = [0, 64], sizes = [2, 64], strides = [1, 1]} : vector<2x256xf32> to vector<2x64xf32>
    %225 = vector.extract_strided_slice %222 {offsets = [0, 128], sizes = [2, 64], strides = [1, 1]} : vector<2x256xf32> to vector<2x64xf32>
    %226 = vector.extract_strided_slice %221 {offsets = [0, 192], sizes = [2, 64], strides = [1, 1]} : vector<2x256xf32> to vector<2x64xf32>
    %227 = arith.mulf %224, %201 : vector<2x64xf32>
    %228 = arith.mulf %223, %225 : vector<2x64xf32>
    %229 = arith.addf %227, %228 : vector<2x64xf32>
    %230 = math.tanh %229 : vector<2x64xf32>
    %231 = arith.mulf %226, %230 : vector<2x64xf32>
    %232 = vector.extract_strided_slice %231 {offsets = [0, 0], sizes = [2, 32], strides = [1, 1]} : vector<2x64xf32> to vector<2x32xf32>
    %c14_48 = arith.constant 14 : index
    %c0_49 = arith.constant 0 : index
    %233 = vector.load %arg14[%c14_48, %c0_49] : memref<16x64xf32, #tpu.memory_space<vmem>>, vector<2x32xf32>
    tpu.vector_store %arg14[%c14_48, %c0_49], %232 {strides = array<i32>} : memref<16x64xf32, #tpu.memory_space<vmem>>, vector<2x32xf32>,
    %234 = vector.extract_strided_slice %231 {offsets = [0, 32], sizes = [2, 32], strides = [1, 1]} : vector<2x64xf32> to vector<2x32xf32>
    %c0_50 = arith.constant 0 : index
    %c32_51 = arith.constant 32 : index
    %235 = vector.load %arg14[%c0_50, %c32_51] : memref<16x64xf32, #tpu.memory_space<vmem>>, vector<2x32xf32>
    tpu.vector_store %arg14[%c0_50, %c32_51], %234 {strides = array<i32>} : memref<16x64xf32, #tpu.memory_space<vmem>>, vector<2x32xf32>,
    %c0_52 = arith.constant 0 : index
    %c0_53 = arith.constant 0 : index
    %236 = vector.load %arg14[%c0_52, %c0_53] : memref<16x64xf32, #tpu.memory_space<vmem>>, vector<16x64xf32>
    %c0_54 = arith.constant 0 : index
    %c0_55 = arith.constant 0 : index
    %237 = vector.load %arg5[%c0_54, %c0_55] : memref<64x256xf32, #tpu.memory_space<vmem>>, vector<64x256xf32>
    %cst_56 = arith.constant dense<0.000000e+00> : vector<16x256xf32>
    %238 = tpu.matmul %236, %237, %cst_56 {dimension_numbers = #tpu.dot_dimension_numbers<[1], [0], [0], [1], [0, 0, 1, 1], [], []>} : vector<16x64xf32>, vector<64x256xf32>, vector<16x256xf32> -> vector<16x256xf32>
    %c0_57 = arith.constant 0 : index
    %c0_58 = arith.constant 0 : index
    %239 = vector.load %arg7[%c0_57, %c0_58] : memref<1x256xf32, #tpu.memory_space<vmem>>, vector<1x256xf32>
    %240 = vector.broadcast %239 : vector<1x256xf32> to vector<16x256xf32>
    %241 = arith.addf %238, %240 : vector<16x256xf32>
    %c0_59 = arith.constant 0 : index
    %c0_60 = arith.constant 0 : index
    %242 = vector.load %arg6[%c0_59, %c0_60] : memref<64x256xf32, #tpu.memory_space<vmem>>, vector<64x256xf32>
    %cst_61 = arith.constant 0.000000e+00 : f32
    %243 = vector.broadcast %cst_61 : f32 to vector<2x64xf32>
    %cst_62 = arith.constant 0.000000e+00 : f32
    %244 = vector.broadcast %cst_62 : f32 to vector<2x64xf32>
    %245 = vector.extract_strided_slice %241 {offsets = [0, 0], sizes = [2, 256], strides = [1, 1]} : vector<16x256xf32> to vector<2x256xf32>
    %246 = vector.extract_strided_slice %241 {offsets = [14, 0], sizes = [2, 256], strides = [1, 1]} : vector<16x256xf32> to vector<2x256xf32>
    %247 = vector.broadcast %0 : vector<1x256xf32> to vector<2x256xf32>
    %248 = arith.mulf %247, %245 : vector<2x256xf32>
    %249 = vector.broadcast %2 : vector<1x256xf32> to vector<2x256xf32>
    %250 = arith.mulf %249, %246 : vector<2x256xf32>
    %251 = arith.addf %248, %250 : vector<2x256xf32>
    %cst_63 = arith.constant dense<0.000000e+00> : vector<2x256xf32>
    %252 = tpu.matmul %243, %242, %cst_63 {dimension_numbers = #tpu.dot_dimension_numbers<[1], [0], [0], [1], [0, 0, 1, 1], [], []>} : vector<2x64xf32>, vector<64x256xf32>, vector<2x256xf32> -> vector<2x256xf32>
    %253 = arith.addf %251, %252 : vector<2x256xf32>
    %254 = arith.negf %253 : vector<2x256xf32>
    %255 = math.exp %254 : vector<2x256xf32>
    %cst_64 = arith.constant 1.000000e+00 : f32
    %256 = vector.broadcast %cst_64 : f32 to vector<2x256xf32>
    %257 = arith.addf %256, %255 : vector<2x256xf32>
    %258 = arith.divf %256, %257 : vector<2x256xf32>
    %259 = math.tanh %253 : vector<2x256xf32>
    %260 = vector.extract_strided_slice %258 {offsets = [0, 0], sizes = [2, 64], strides = [1, 1]} : vector<2x256xf32> to vector<2x64xf32>
    %261 = vector.extract_strided_slice %258 {offsets = [0, 64], sizes = [2, 64], strides = [1, 1]} : vector<2x256xf32> to vector<2x64xf32>
    %262 = vector.extract_strided_slice %259 {offsets = [0, 128], sizes = [2, 64], strides = [1, 1]} : vector<2x256xf32> to vector<2x64xf32>
    %263 = vector.extract_strided_slice %258 {offsets = [0, 192], sizes = [2, 64], strides = [1, 1]} : vector<2x256xf32> to vector<2x64xf32>
    %264 = arith.mulf %261, %244 : vector<2x64xf32>
    %265 = arith.mulf %260, %262 : vector<2x64xf32>
    %266 = arith.addf %264, %265 : vector<2x64xf32>
    %267 = math.tanh %266 : vector<2x64xf32>
    %268 = arith.mulf %263, %267 : vector<2x64xf32>
    %269 = vector.extract_strided_slice %268 {offsets = [0, 0], sizes = [2, 32], strides = [1, 1]} : vector<2x64xf32> to vector<2x32xf32>
    %c0_65 = arith.constant 0 : index
    %c0_66 = arith.constant 0 : index
    %270 = vector.load %arg15[%c0_65, %c0_66] : memref<16x64xf32, #tpu.memory_space<vmem>>, vector<2x32xf32>
    tpu.vector_store %arg15[%c0_65, %c0_66], %269 {strides = array<i32>} : memref<16x64xf32, #tpu.memory_space<vmem>>, vector<2x32xf32>,
    %271 = vector.extract_strided_slice %268 {offsets = [0, 32], sizes = [2, 32], strides = [1, 1]} : vector<2x64xf32> to vector<2x32xf32>
    %c14_67 = arith.constant 14 : index
    %c32_68 = arith.constant 32 : index
    %272 = vector.load %arg15[%c14_67, %c32_68] : memref<16x64xf32, #tpu.memory_space<vmem>>, vector<2x32xf32>
    tpu.vector_store %arg15[%c14_67, %c32_68], %271 {strides = array<i32>} : memref<16x64xf32, #tpu.memory_space<vmem>>, vector<2x32xf32>,
    %273 = vector.extract_strided_slice %241 {offsets = [2, 0], sizes = [2, 256], strides = [1, 1]} : vector<16x256xf32> to vector<2x256xf32>
    %274 = vector.extract_strided_slice %241 {offsets = [12, 0], sizes = [2, 256], strides = [1, 1]} : vector<16x256xf32> to vector<2x256xf32>
    %275 = vector.broadcast %0 : vector<1x256xf32> to vector<2x256xf32>
    %276 = arith.mulf %275, %273 : vector<2x256xf32>
    %277 = vector.broadcast %2 : vector<1x256xf32> to vector<2x256xf32>
    %278 = arith.mulf %277, %274 : vector<2x256xf32>
    %279 = arith.addf %276, %278 : vector<2x256xf32>
    %cst_69 = arith.constant dense<0.000000e+00> : vector<2x256xf32>
    %280 = tpu.matmul %268, %242, %cst_69 {dimension_numbers = #tpu.dot_dimension_numbers<[1], [0], [0], [1], [0, 0, 1, 1], [], []>} : vector<2x64xf32>, vector<64x256xf32>, vector<2x256xf32> -> vector<2x256xf32>
    %281 = arith.addf %279, %280 : vector<2x256xf32>
    %282 = arith.negf %281 : vector<2x256xf32>
    %283 = math.exp %282 : vector<2x256xf32>
    %cst_70 = arith.constant 1.000000e+00 : f32
    %284 = vector.broadcast %cst_70 : f32 to vector<2x256xf32>
    %285 = arith.addf %284, %283 : vector<2x256xf32>
    %286 = arith.divf %284, %285 : vector<2x256xf32>
    %287 = math.tanh %281 : vector<2x256xf32>
    %288 = vector.extract_strided_slice %286 {offsets = [0, 0], sizes = [2, 64], strides = [1, 1]} : vector<2x256xf32> to vector<2x64xf32>
    %289 = vector.extract_strided_slice %286 {offsets = [0, 64], sizes = [2, 64], strides = [1, 1]} : vector<2x256xf32> to vector<2x64xf32>
    %290 = vector.extract_strided_slice %287 {offsets = [0, 128], sizes = [2, 64], strides = [1, 1]} : vector<2x256xf32> to vector<2x64xf32>
    %291 = vector.extract_strided_slice %286 {offsets = [0, 192], sizes = [2, 64], strides = [1, 1]} : vector<2x256xf32> to vector<2x64xf32>
    %292 = arith.mulf %289, %266 : vector<2x64xf32>
    %293 = arith.mulf %288, %290 : vector<2x64xf32>
    %294 = arith.addf %292, %293 : vector<2x64xf32>
    %295 = math.tanh %294 : vector<2x64xf32>
    %296 = arith.mulf %291, %295 : vector<2x64xf32>
    %297 = vector.extract_strided_slice %296 {offsets = [0, 0], sizes = [2, 32], strides = [1, 1]} : vector<2x64xf32> to vector<2x32xf32>
    %c2_71 = arith.constant 2 : index
    %c0_72 = arith.constant 0 : index
    %298 = vector.load %arg15[%c2_71, %c0_72] : memref<16x64xf32, #tpu.memory_space<vmem>>, vector<2x32xf32>
    tpu.vector_store %arg15[%c2_71, %c0_72], %297 {strides = array<i32>} : memref<16x64xf32, #tpu.memory_space<vmem>>, vector<2x32xf32>,
    %299 = vector.extract_strided_slice %296 {offsets = [0, 32], sizes = [2, 32], strides = [1, 1]} : vector<2x64xf32> to vector<2x32xf32>
    %c12_73 = arith.constant 12 : index
    %c32_74 = arith.constant 32 : index
    %300 = vector.load %arg15[%c12_73, %c32_74] : memref<16x64xf32, #tpu.memory_space<vmem>>, vector<2x32xf32>
    tpu.vector_store %arg15[%c12_73, %c32_74], %299 {strides = array<i32>} : memref<16x64xf32, #tpu.memory_space<vmem>>, vector<2x32xf32>,
    %301 = vector.extract_strided_slice %241 {offsets = [4, 0], sizes = [2, 256], strides = [1, 1]} : vector<16x256xf32> to vector<2x256xf32>
    %302 = vector.extract_strided_slice %241 {offsets = [10, 0], sizes = [2, 256], strides = [1, 1]} : vector<16x256xf32> to vector<2x256xf32>
    %303 = vector.broadcast %0 : vector<1x256xf32> to vector<2x256xf32>
    %304 = arith.mulf %303, %301 : vector<2x256xf32>
    %305 = vector.broadcast %2 : vector<1x256xf32> to vector<2x256xf32>
    %306 = arith.mulf %305, %302 : vector<2x256xf32>
    %307 = arith.addf %304, %306 : vector<2x256xf32>
    %cst_75 = arith.constant dense<0.000000e+00> : vector<2x256xf32>
    %308 = tpu.matmul %296, %242, %cst_75 {dimension_numbers = #tpu.dot_dimension_numbers<[1], [0], [0], [1], [0, 0, 1, 1], [], []>} : vector<2x64xf32>, vector<64x256xf32>, vector<2x256xf32> -> vector<2x256xf32>
    %309 = arith.addf %307, %308 : vector<2x256xf32>
    %310 = arith.negf %309 : vector<2x256xf32>
    %311 = math.exp %310 : vector<2x256xf32>
    %cst_76 = arith.constant 1.000000e+00 : f32
    %312 = vector.broadcast %cst_76 : f32 to vector<2x256xf32>
    %313 = arith.addf %312, %311 : vector<2x256xf32>
    %314 = arith.divf %312, %313 : vector<2x256xf32>
    %315 = math.tanh %309 : vector<2x256xf32>
    %316 = vector.extract_strided_slice %314 {offsets = [0, 0], sizes = [2, 64], strides = [1, 1]} : vector<2x256xf32> to vector<2x64xf32>
    %317 = vector.extract_strided_slice %314 {offsets = [0, 64], sizes = [2, 64], strides = [1, 1]} : vector<2x256xf32> to vector<2x64xf32>
    %318 = vector.extract_strided_slice %315 {offsets = [0, 128], sizes = [2, 64], strides = [1, 1]} : vector<2x256xf32> to vector<2x64xf32>
    %319 = vector.extract_strided_slice %314 {offsets = [0, 192], sizes = [2, 64], strides = [1, 1]} : vector<2x256xf32> to vector<2x64xf32>
    %320 = arith.mulf %317, %294 : vector<2x64xf32>
    %321 = arith.mulf %316, %318 : vector<2x64xf32>
    %322 = arith.addf %320, %321 : vector<2x64xf32>
    %323 = math.tanh %322 : vector<2x64xf32>
    %324 = arith.mulf %319, %323 : vector<2x64xf32>
    %325 = vector.extract_strided_slice %324 {offsets = [0, 0], sizes = [2, 32], strides = [1, 1]} : vector<2x64xf32> to vector<2x32xf32>
    %c4_77 = arith.constant 4 : index
    %c0_78 = arith.constant 0 : index
    %326 = vector.load %arg15[%c4_77, %c0_78] : memref<16x64xf32, #tpu.memory_space<vmem>>, vector<2x32xf32>
    tpu.vector_store %arg15[%c4_77, %c0_78], %325 {strides = array<i32>} : memref<16x64xf32, #tpu.memory_space<vmem>>, vector<2x32xf32>,
    %327 = vector.extract_strided_slice %324 {offsets = [0, 32], sizes = [2, 32], strides = [1, 1]} : vector<2x64xf32> to vector<2x32xf32>
    %c10_79 = arith.constant 10 : index
    %c32_80 = arith.constant 32 : index
    %328 = vector.load %arg15[%c10_79, %c32_80] : memref<16x64xf32, #tpu.memory_space<vmem>>, vector<2x32xf32>
    tpu.vector_store %arg15[%c10_79, %c32_80], %327 {strides = array<i32>} : memref<16x64xf32, #tpu.memory_space<vmem>>, vector<2x32xf32>,
    %329 = vector.extract_strided_slice %241 {offsets = [6, 0], sizes = [2, 256], strides = [1, 1]} : vector<16x256xf32> to vector<2x256xf32>
    %330 = vector.extract_strided_slice %241 {offsets = [8, 0], sizes = [2, 256], strides = [1, 1]} : vector<16x256xf32> to vector<2x256xf32>
    %331 = vector.broadcast %0 : vector<1x256xf32> to vector<2x256xf32>
    %332 = arith.mulf %331, %329 : vector<2x256xf32>
    %333 = vector.broadcast %2 : vector<1x256xf32> to vector<2x256xf32>
    %334 = arith.mulf %333, %330 : vector<2x256xf32>
    %335 = arith.addf %332, %334 : vector<2x256xf32>
    %cst_81 = arith.constant dense<0.000000e+00> : vector<2x256xf32>
    %336 = tpu.matmul %324, %242, %cst_81 {dimension_numbers = #tpu.dot_dimension_numbers<[1], [0], [0], [1], [0, 0, 1, 1], [], []>} : vector<2x64xf32>, vector<64x256xf32>, vector<2x256xf32> -> vector<2x256xf32>
    %337 = arith.addf %335, %336 : vector<2x256xf32>
    %338 = arith.negf %337 : vector<2x256xf32>
    %339 = math.exp %338 : vector<2x256xf32>
    %cst_82 = arith.constant 1.000000e+00 : f32
    %340 = vector.broadcast %cst_82 : f32 to vector<2x256xf32>
    %341 = arith.addf %340, %339 : vector<2x256xf32>
    %342 = arith.divf %340, %341 : vector<2x256xf32>
    %343 = math.tanh %337 : vector<2x256xf32>
    %344 = vector.extract_strided_slice %342 {offsets = [0, 0], sizes = [2, 64], strides = [1, 1]} : vector<2x256xf32> to vector<2x64xf32>
    %345 = vector.extract_strided_slice %342 {offsets = [0, 64], sizes = [2, 64], strides = [1, 1]} : vector<2x256xf32> to vector<2x64xf32>
    %346 = vector.extract_strided_slice %343 {offsets = [0, 128], sizes = [2, 64], strides = [1, 1]} : vector<2x256xf32> to vector<2x64xf32>
    %347 = vector.extract_strided_slice %342 {offsets = [0, 192], sizes = [2, 64], strides = [1, 1]} : vector<2x256xf32> to vector<2x64xf32>
    %348 = arith.mulf %345, %322 : vector<2x64xf32>
    %349 = arith.mulf %344, %346 : vector<2x64xf32>
    %350 = arith.addf %348, %349 : vector<2x64xf32>
    %351 = math.tanh %350 : vector<2x64xf32>
    %352 = arith.mulf %347, %351 : vector<2x64xf32>
    %353 = vector.extract_strided_slice %352 {offsets = [0, 0], sizes = [2, 32], strides = [1, 1]} : vector<2x64xf32> to vector<2x32xf32>
    %c6_83 = arith.constant 6 : index
    %c0_84 = arith.constant 0 : index
    %354 = vector.load %arg15[%c6_83, %c0_84] : memref<16x64xf32, #tpu.memory_space<vmem>>, vector<2x32xf32>
    tpu.vector_store %arg15[%c6_83, %c0_84], %353 {strides = array<i32>} : memref<16x64xf32, #tpu.memory_space<vmem>>, vector<2x32xf32>,
    %355 = vector.extract_strided_slice %352 {offsets = [0, 32], sizes = [2, 32], strides = [1, 1]} : vector<2x64xf32> to vector<2x32xf32>
    %c8_85 = arith.constant 8 : index
    %c32_86 = arith.constant 32 : index
    %356 = vector.load %arg15[%c8_85, %c32_86] : memref<16x64xf32, #tpu.memory_space<vmem>>, vector<2x32xf32>
    tpu.vector_store %arg15[%c8_85, %c32_86], %355 {strides = array<i32>} : memref<16x64xf32, #tpu.memory_space<vmem>>, vector<2x32xf32>,
    %357 = vector.extract_strided_slice %241 {offsets = [8, 0], sizes = [2, 256], strides = [1, 1]} : vector<16x256xf32> to vector<2x256xf32>
    %358 = vector.extract_strided_slice %241 {offsets = [6, 0], sizes = [2, 256], strides = [1, 1]} : vector<16x256xf32> to vector<2x256xf32>
    %359 = vector.broadcast %0 : vector<1x256xf32> to vector<2x256xf32>
    %360 = arith.mulf %359, %357 : vector<2x256xf32>
    %361 = vector.broadcast %2 : vector<1x256xf32> to vector<2x256xf32>
    %362 = arith.mulf %361, %358 : vector<2x256xf32>
    %363 = arith.addf %360, %362 : vector<2x256xf32>
    %cst_87 = arith.constant dense<0.000000e+00> : vector<2x256xf32>
    %364 = tpu.matmul %352, %242, %cst_87 {dimension_numbers = #tpu.dot_dimension_numbers<[1], [0], [0], [1], [0, 0, 1, 1], [], []>} : vector<2x64xf32>, vector<64x256xf32>, vector<2x256xf32> -> vector<2x256xf32>
    %365 = arith.addf %363, %364 : vector<2x256xf32>
    %366 = arith.negf %365 : vector<2x256xf32>
    %367 = math.exp %366 : vector<2x256xf32>
    %cst_88 = arith.constant 1.000000e+00 : f32
    %368 = vector.broadcast %cst_88 : f32 to vector<2x256xf32>
    %369 = arith.addf %368, %367 : vector<2x256xf32>
    %370 = arith.divf %368, %369 : vector<2x256xf32>
    %371 = math.tanh %365 : vector<2x256xf32>
    %372 = vector.extract_strided_slice %370 {offsets = [0, 0], sizes = [2, 64], strides = [1, 1]} : vector<2x256xf32> to vector<2x64xf32>
    %373 = vector.extract_strided_slice %370 {offsets = [0, 64], sizes = [2, 64], strides = [1, 1]} : vector<2x256xf32> to vector<2x64xf32>
    %374 = vector.extract_strided_slice %371 {offsets = [0, 128], sizes = [2, 64], strides = [1, 1]} : vector<2x256xf32> to vector<2x64xf32>
    %375 = vector.extract_strided_slice %370 {offsets = [0, 192], sizes = [2, 64], strides = [1, 1]} : vector<2x256xf32> to vector<2x64xf32>
    %376 = arith.mulf %373, %350 : vector<2x64xf32>
    %377 = arith.mulf %372, %374 : vector<2x64xf32>
    %378 = arith.addf %376, %377 : vector<2x64xf32>
    %379 = math.tanh %378 : vector<2x64xf32>
    %380 = arith.mulf %375, %379 : vector<2x64xf32>
    %381 = vector.extract_strided_slice %380 {offsets = [0, 0], sizes = [2, 32], strides = [1, 1]} : vector<2x64xf32> to vector<2x32xf32>
    %c8_89 = arith.constant 8 : index
    %c0_90 = arith.constant 0 : index
    %382 = vector.load %arg15[%c8_89, %c0_90] : memref<16x64xf32, #tpu.memory_space<vmem>>, vector<2x32xf32>
    tpu.vector_store %arg15[%c8_89, %c0_90], %381 {strides = array<i32>} : memref<16x64xf32, #tpu.memory_space<vmem>>, vector<2x32xf32>,
    %383 = vector.extract_strided_slice %380 {offsets = [0, 32], sizes = [2, 32], strides = [1, 1]} : vector<2x64xf32> to vector<2x32xf32>
    %c6_91 = arith.constant 6 : index
    %c32_92 = arith.constant 32 : index
    %384 = vector.load %arg15[%c6_91, %c32_92] : memref<16x64xf32, #tpu.memory_space<vmem>>, vector<2x32xf32>
    tpu.vector_store %arg15[%c6_91, %c32_92], %383 {strides = array<i32>} : memref<16x64xf32, #tpu.memory_space<vmem>>, vector<2x32xf32>,
    %385 = vector.extract_strided_slice %241 {offsets = [10, 0], sizes = [2, 256], strides = [1, 1]} : vector<16x256xf32> to vector<2x256xf32>
    %386 = vector.extract_strided_slice %241 {offsets = [4, 0], sizes = [2, 256], strides = [1, 1]} : vector<16x256xf32> to vector<2x256xf32>
    %387 = vector.broadcast %0 : vector<1x256xf32> to vector<2x256xf32>
    %388 = arith.mulf %387, %385 : vector<2x256xf32>
    %389 = vector.broadcast %2 : vector<1x256xf32> to vector<2x256xf32>
    %390 = arith.mulf %389, %386 : vector<2x256xf32>
    %391 = arith.addf %388, %390 : vector<2x256xf32>
    %cst_93 = arith.constant dense<0.000000e+00> : vector<2x256xf32>
    %392 = tpu.matmul %380, %242, %cst_93 {dimension_numbers = #tpu.dot_dimension_numbers<[1], [0], [0], [1], [0, 0, 1, 1], [], []>} : vector<2x64xf32>, vector<64x256xf32>, vector<2x256xf32> -> vector<2x256xf32>
    %393 = arith.addf %391, %392 : vector<2x256xf32>
    %394 = arith.negf %393 : vector<2x256xf32>
    %395 = math.exp %394 : vector<2x256xf32>
    %cst_94 = arith.constant 1.000000e+00 : f32
    %396 = vector.broadcast %cst_94 : f32 to vector<2x256xf32>
    %397 = arith.addf %396, %395 : vector<2x256xf32>
    %398 = arith.divf %396, %397 : vector<2x256xf32>
    %399 = math.tanh %393 : vector<2x256xf32>
    %400 = vector.extract_strided_slice %398 {offsets = [0, 0], sizes = [2, 64], strides = [1, 1]} : vector<2x256xf32> to vector<2x64xf32>
    %401 = vector.extract_strided_slice %398 {offsets = [0, 64], sizes = [2, 64], strides = [1, 1]} : vector<2x256xf32> to vector<2x64xf32>
    %402 = vector.extract_strided_slice %399 {offsets = [0, 128], sizes = [2, 64], strides = [1, 1]} : vector<2x256xf32> to vector<2x64xf32>
    %403 = vector.extract_strided_slice %398 {offsets = [0, 192], sizes = [2, 64], strides = [1, 1]} : vector<2x256xf32> to vector<2x64xf32>
    %404 = arith.mulf %401, %378 : vector<2x64xf32>
    %405 = arith.mulf %400, %402 : vector<2x64xf32>
    %406 = arith.addf %404, %405 : vector<2x64xf32>
    %407 = math.tanh %406 : vector<2x64xf32>
    %408 = arith.mulf %403, %407 : vector<2x64xf32>
    %409 = vector.extract_strided_slice %408 {offsets = [0, 0], sizes = [2, 32], strides = [1, 1]} : vector<2x64xf32> to vector<2x32xf32>
    %c10_95 = arith.constant 10 : index
    %c0_96 = arith.constant 0 : index
    %410 = vector.load %arg15[%c10_95, %c0_96] : memref<16x64xf32, #tpu.memory_space<vmem>>, vector<2x32xf32>
    tpu.vector_store %arg15[%c10_95, %c0_96], %409 {strides = array<i32>} : memref<16x64xf32, #tpu.memory_space<vmem>>, vector<2x32xf32>,
    %411 = vector.extract_strided_slice %408 {offsets = [0, 32], sizes = [2, 32], strides = [1, 1]} : vector<2x64xf32> to vector<2x32xf32>
    %c4_97 = arith.constant 4 : index
    %c32_98 = arith.constant 32 : index
    %412 = vector.load %arg15[%c4_97, %c32_98] : memref<16x64xf32, #tpu.memory_space<vmem>>, vector<2x32xf32>
    tpu.vector_store %arg15[%c4_97, %c32_98], %411 {strides = array<i32>} : memref<16x64xf32, #tpu.memory_space<vmem>>, vector<2x32xf32>,
    %413 = vector.extract_strided_slice %241 {offsets = [12, 0], sizes = [2, 256], strides = [1, 1]} : vector<16x256xf32> to vector<2x256xf32>
    %414 = vector.extract_strided_slice %241 {offsets = [2, 0], sizes = [2, 256], strides = [1, 1]} : vector<16x256xf32> to vector<2x256xf32>
    %415 = vector.broadcast %0 : vector<1x256xf32> to vector<2x256xf32>
    %416 = arith.mulf %415, %413 : vector<2x256xf32>
    %417 = vector.broadcast %2 : vector<1x256xf32> to vector<2x256xf32>
    %418 = arith.mulf %417, %414 : vector<2x256xf32>
    %419 = arith.addf %416, %418 : vector<2x256xf32>
    %cst_99 = arith.constant dense<0.000000e+00> : vector<2x256xf32>
    %420 = tpu.matmul %408, %242, %cst_99 {dimension_numbers = #tpu.dot_dimension_numbers<[1], [0], [0], [1], [0, 0, 1, 1], [], []>} : vector<2x64xf32>, vector<64x256xf32>, vector<2x256xf32> -> vector<2x256xf32>
    %421 = arith.addf %419, %420 : vector<2x256xf32>
    %422 = arith.negf %421 : vector<2x256xf32>
    %423 = math.exp %422 : vector<2x256xf32>
    %cst_100 = arith.constant 1.000000e+00 : f32
    %424 = vector.broadcast %cst_100 : f32 to vector<2x256xf32>
    %425 = arith.addf %424, %423 : vector<2x256xf32>
    %426 = arith.divf %424, %425 : vector<2x256xf32>
    %427 = math.tanh %421 : vector<2x256xf32>
    %428 = vector.extract_strided_slice %426 {offsets = [0, 0], sizes = [2, 64], strides = [1, 1]} : vector<2x256xf32> to vector<2x64xf32>
    %429 = vector.extract_strided_slice %426 {offsets = [0, 64], sizes = [2, 64], strides = [1, 1]} : vector<2x256xf32> to vector<2x64xf32>
    %430 = vector.extract_strided_slice %427 {offsets = [0, 128], sizes = [2, 64], strides = [1, 1]} : vector<2x256xf32> to vector<2x64xf32>
    %431 = vector.extract_strided_slice %426 {offsets = [0, 192], sizes = [2, 64], strides = [1, 1]} : vector<2x256xf32> to vector<2x64xf32>
    %432 = arith.mulf %429, %406 : vector<2x64xf32>
    %433 = arith.mulf %428, %430 : vector<2x64xf32>
    %434 = arith.addf %432, %433 : vector<2x64xf32>
    %435 = math.tanh %434 : vector<2x64xf32>
    %436 = arith.mulf %431, %435 : vector<2x64xf32>
    %437 = vector.extract_strided_slice %436 {offsets = [0, 0], sizes = [2, 32], strides = [1, 1]} : vector<2x64xf32> to vector<2x32xf32>
    %c12_101 = arith.constant 12 : index
    %c0_102 = arith.constant 0 : index
    %438 = vector.load %arg15[%c12_101, %c0_102] : memref<16x64xf32, #tpu.memory_space<vmem>>, vector<2x32xf32>
    tpu.vector_store %arg15[%c12_101, %c0_102], %437 {strides = array<i32>} : memref<16x64xf32, #tpu.memory_space<vmem>>, vector<2x32xf32>,
    %439 = vector.extract_strided_slice %436 {offsets = [0, 32], sizes = [2, 32], strides = [1, 1]} : vector<2x64xf32> to vector<2x32xf32>
    %c2_103 = arith.constant 2 : index
    %c32_104 = arith.constant 32 : index
    %440 = vector.load %arg15[%c2_103, %c32_104] : memref<16x64xf32, #tpu.memory_space<vmem>>, vector<2x32xf32>
    tpu.vector_store %arg15[%c2_103, %c32_104], %439 {strides = array<i32>} : memref<16x64xf32, #tpu.memory_space<vmem>>, vector<2x32xf32>,
    %441 = vector.extract_strided_slice %241 {offsets = [14, 0], sizes = [2, 256], strides = [1, 1]} : vector<16x256xf32> to vector<2x256xf32>
    %442 = vector.extract_strided_slice %241 {offsets = [0, 0], sizes = [2, 256], strides = [1, 1]} : vector<16x256xf32> to vector<2x256xf32>
    %443 = vector.broadcast %0 : vector<1x256xf32> to vector<2x256xf32>
    %444 = arith.mulf %443, %441 : vector<2x256xf32>
    %445 = vector.broadcast %2 : vector<1x256xf32> to vector<2x256xf32>
    %446 = arith.mulf %445, %442 : vector<2x256xf32>
    %447 = arith.addf %444, %446 : vector<2x256xf32>
    %cst_105 = arith.constant dense<0.000000e+00> : vector<2x256xf32>
    %448 = tpu.matmul %436, %242, %cst_105 {dimension_numbers = #tpu.dot_dimension_numbers<[1], [0], [0], [1], [0, 0, 1, 1], [], []>} : vector<2x64xf32>, vector<64x256xf32>, vector<2x256xf32> -> vector<2x256xf32>
    %449 = arith.addf %447, %448 : vector<2x256xf32>
    %450 = arith.negf %449 : vector<2x256xf32>
    %451 = math.exp %450 : vector<2x256xf32>
    %cst_106 = arith.constant 1.000000e+00 : f32
    %452 = vector.broadcast %cst_106 : f32 to vector<2x256xf32>
    %453 = arith.addf %452, %451 : vector<2x256xf32>
    %454 = arith.divf %452, %453 : vector<2x256xf32>
    %455 = math.tanh %449 : vector<2x256xf32>
    %456 = vector.extract_strided_slice %454 {offsets = [0, 0], sizes = [2, 64], strides = [1, 1]} : vector<2x256xf32> to vector<2x64xf32>
    %457 = vector.extract_strided_slice %454 {offsets = [0, 64], sizes = [2, 64], strides = [1, 1]} : vector<2x256xf32> to vector<2x64xf32>
    %458 = vector.extract_strided_slice %455 {offsets = [0, 128], sizes = [2, 64], strides = [1, 1]} : vector<2x256xf32> to vector<2x64xf32>
    %459 = vector.extract_strided_slice %454 {offsets = [0, 192], sizes = [2, 64], strides = [1, 1]} : vector<2x256xf32> to vector<2x64xf32>
    %460 = arith.mulf %457, %434 : vector<2x64xf32>
    %461 = arith.mulf %456, %458 : vector<2x64xf32>
    %462 = arith.addf %460, %461 : vector<2x64xf32>
    %463 = math.tanh %462 : vector<2x64xf32>
    %464 = arith.mulf %459, %463 : vector<2x64xf32>
    %465 = vector.extract_strided_slice %464 {offsets = [0, 0], sizes = [2, 32], strides = [1, 1]} : vector<2x64xf32> to vector<2x32xf32>
    %c14_107 = arith.constant 14 : index
    %c0_108 = arith.constant 0 : index
    %466 = vector.load %arg15[%c14_107, %c0_108] : memref<16x64xf32, #tpu.memory_space<vmem>>, vector<2x32xf32>
    tpu.vector_store %arg15[%c14_107, %c0_108], %465 {strides = array<i32>} : memref<16x64xf32, #tpu.memory_space<vmem>>, vector<2x32xf32>,
    %467 = vector.extract_strided_slice %464 {offsets = [0, 32], sizes = [2, 32], strides = [1, 1]} : vector<2x64xf32> to vector<2x32xf32>
    %c0_109 = arith.constant 0 : index
    %c32_110 = arith.constant 32 : index
    %468 = vector.load %arg15[%c0_109, %c32_110] : memref<16x64xf32, #tpu.memory_space<vmem>>, vector<2x32xf32>
    tpu.vector_store %arg15[%c0_109, %c32_110], %467 {strides = array<i32>} : memref<16x64xf32, #tpu.memory_space<vmem>>, vector<2x32xf32>,
    %c0_111 = arith.constant 0 : index
    %c0_112 = arith.constant 0 : index
    %469 = vector.load %arg15[%c0_111, %c0_112] : memref<16x64xf32, #tpu.memory_space<vmem>>, vector<16x64xf32>
    %c0_113 = arith.constant 0 : index
    %c0_114 = arith.constant 0 : index
    %470 = vector.load %arg8[%c0_113, %c0_114] : memref<64x128xf32, #tpu.memory_space<vmem>>, vector<64x128xf32>
    %cst_115 = arith.constant dense<0.000000e+00> : vector<16x128xf32>
    %471 = tpu.matmul %469, %470, %cst_115 {dimension_numbers = #tpu.dot_dimension_numbers<[1], [0], [0], [1], [0, 0, 1, 1], [], []>} : vector<16x64xf32>, vector<64x128xf32>, vector<16x128xf32> -> vector<16x128xf32>
    %c0_116 = arith.constant 0 : index
    %c0_117 = arith.constant 0 : index
    %472 = vector.load %arg10[%c0_116, %c0_117] : memref<1x128xf32, #tpu.memory_space<vmem>>, vector<1x128xf32>
    %473 = vector.broadcast %472 : vector<1x128xf32> to vector<16x128xf32>
    %474 = arith.addf %471, %473 : vector<16x128xf32>
    %c0_118 = arith.constant 0 : index
    %c0_119 = arith.constant 0 : index
    %475 = vector.load %arg9[%c0_118, %c0_119] : memref<32x128xf32, #tpu.memory_space<vmem>>, vector<32x128xf32>
    %cst_120 = arith.constant 0.000000e+00 : f32
    %476 = vector.broadcast %cst_120 : f32 to vector<2x32xf32>
    %cst_121 = arith.constant 0.000000e+00 : f32
    %477 = vector.broadcast %cst_121 : f32 to vector<2x32xf32>
    %478 = vector.extract_strided_slice %474 {offsets = [0, 0], sizes = [2, 128], strides = [1, 1]} : vector<16x128xf32> to vector<2x128xf32>
    %cst_122 = arith.constant dense<0.000000e+00> : vector<2x128xf32>
    %479 = tpu.matmul %476, %475, %cst_122 {dimension_numbers = #tpu.dot_dimension_numbers<[1], [0], [0], [1], [0, 0, 1, 1], [], []>} : vector<2x32xf32>, vector<32x128xf32>, vector<2x128xf32> -> vector<2x128xf32>
    %480 = arith.addf %478, %479 : vector<2x128xf32>
    %481 = arith.negf %480 : vector<2x128xf32>
    %482 = math.exp %481 : vector<2x128xf32>
    %cst_123 = arith.constant 1.000000e+00 : f32
    %483 = vector.broadcast %cst_123 : f32 to vector<2x128xf32>
    %484 = arith.addf %483, %482 : vector<2x128xf32>
    %485 = arith.divf %483, %484 : vector<2x128xf32>
    %486 = math.tanh %480 : vector<2x128xf32>
    %487 = vector.extract_strided_slice %485 {offsets = [0, 0], sizes = [2, 32], strides = [1, 1]} : vector<2x128xf32> to vector<2x32xf32>
    %488 = vector.extract_strided_slice %485 {offsets = [0, 32], sizes = [2, 32], strides = [1, 1]} : vector<2x128xf32> to vector<2x32xf32>
    %489 = vector.extract_strided_slice %486 {offsets = [0, 64], sizes = [2, 32], strides = [1, 1]} : vector<2x128xf32> to vector<2x32xf32>
    %490 = vector.extract_strided_slice %485 {offsets = [0, 96], sizes = [2, 32], strides = [1, 1]} : vector<2x128xf32> to vector<2x32xf32>
    %491 = arith.mulf %488, %477 : vector<2x32xf32>
    %492 = arith.mulf %487, %489 : vector<2x32xf32>
    %493 = arith.addf %491, %492 : vector<2x32xf32>
    %494 = math.tanh %493 : vector<2x32xf32>
    %495 = arith.mulf %490, %494 : vector<2x32xf32>
    %c0_124 = arith.constant 0 : index
    %c0_125 = arith.constant 0 : index
    %496 = vector.load %arg16[%c0_124, %c0_125] : memref<16x32xf32, #tpu.memory_space<vmem>>, vector<2x32xf32>
    tpu.vector_store %arg16[%c0_124, %c0_125], %495 {strides = array<i32>} : memref<16x32xf32, #tpu.memory_space<vmem>>, vector<2x32xf32>,
    %497 = vector.extract_strided_slice %474 {offsets = [2, 0], sizes = [2, 128], strides = [1, 1]} : vector<16x128xf32> to vector<2x128xf32>
    %cst_126 = arith.constant dense<0.000000e+00> : vector<2x128xf32>
    %498 = tpu.matmul %495, %475, %cst_126 {dimension_numbers = #tpu.dot_dimension_numbers<[1], [0], [0], [1], [0, 0, 1, 1], [], []>} : vector<2x32xf32>, vector<32x128xf32>, vector<2x128xf32> -> vector<2x128xf32>
    %499 = arith.addf %497, %498 : vector<2x128xf32>
    %500 = arith.negf %499 : vector<2x128xf32>
    %501 = math.exp %500 : vector<2x128xf32>
    %cst_127 = arith.constant 1.000000e+00 : f32
    %502 = vector.broadcast %cst_127 : f32 to vector<2x128xf32>
    %503 = arith.addf %502, %501 : vector<2x128xf32>
    %504 = arith.divf %502, %503 : vector<2x128xf32>
    %505 = math.tanh %499 : vector<2x128xf32>
    %506 = vector.extract_strided_slice %504 {offsets = [0, 0], sizes = [2, 32], strides = [1, 1]} : vector<2x128xf32> to vector<2x32xf32>
    %507 = vector.extract_strided_slice %504 {offsets = [0, 32], sizes = [2, 32], strides = [1, 1]} : vector<2x128xf32> to vector<2x32xf32>
    %508 = vector.extract_strided_slice %505 {offsets = [0, 64], sizes = [2, 32], strides = [1, 1]} : vector<2x128xf32> to vector<2x32xf32>
    %509 = vector.extract_strided_slice %504 {offsets = [0, 96], sizes = [2, 32], strides = [1, 1]} : vector<2x128xf32> to vector<2x32xf32>
    %510 = arith.mulf %507, %493 : vector<2x32xf32>
    %511 = arith.mulf %506, %508 : vector<2x32xf32>
    %512 = arith.addf %510, %511 : vector<2x32xf32>
    %513 = math.tanh %512 : vector<2x32xf32>
    %514 = arith.mulf %509, %513 : vector<2x32xf32>
    %c2_128 = arith.constant 2 : index
    %c0_129 = arith.constant 0 : index
    %515 = vector.load %arg16[%c2_128, %c0_129] : memref<16x32xf32, #tpu.memory_space<vmem>>, vector<2x32xf32>
    tpu.vector_store %arg16[%c2_128, %c0_129], %514 {strides = array<i32>} : memref<16x32xf32, #tpu.memory_space<vmem>>, vector<2x32xf32>,
    %516 = vector.extract_strided_slice %474 {offsets = [4, 0], sizes = [2, 128], strides = [1, 1]} : vector<16x128xf32> to vector<2x128xf32>
    %cst_130 = arith.constant dense<0.000000e+00> : vector<2x128xf32>
    %517 = tpu.matmul %514, %475, %cst_130 {dimension_numbers = #tpu.dot_dimension_numbers<[1], [0], [0], [1], [0, 0, 1, 1], [], []>} : vector<2x32xf32>, vector<32x128xf32>, vector<2x128xf32> -> vector<2x128xf32>
    %518 = arith.addf %516, %517 : vector<2x128xf32>
    %519 = arith.negf %518 : vector<2x128xf32>
    %520 = math.exp %519 : vector<2x128xf32>
    %cst_131 = arith.constant 1.000000e+00 : f32
    %521 = vector.broadcast %cst_131 : f32 to vector<2x128xf32>
    %522 = arith.addf %521, %520 : vector<2x128xf32>
    %523 = arith.divf %521, %522 : vector<2x128xf32>
    %524 = math.tanh %518 : vector<2x128xf32>
    %525 = vector.extract_strided_slice %523 {offsets = [0, 0], sizes = [2, 32], strides = [1, 1]} : vector<2x128xf32> to vector<2x32xf32>
    %526 = vector.extract_strided_slice %523 {offsets = [0, 32], sizes = [2, 32], strides = [1, 1]} : vector<2x128xf32> to vector<2x32xf32>
    %527 = vector.extract_strided_slice %524 {offsets = [0, 64], sizes = [2, 32], strides = [1, 1]} : vector<2x128xf32> to vector<2x32xf32>
    %528 = vector.extract_strided_slice %523 {offsets = [0, 96], sizes = [2, 32], strides = [1, 1]} : vector<2x128xf32> to vector<2x32xf32>
    %529 = arith.mulf %526, %512 : vector<2x32xf32>
    %530 = arith.mulf %525, %527 : vector<2x32xf32>
    %531 = arith.addf %529, %530 : vector<2x32xf32>
    %532 = math.tanh %531 : vector<2x32xf32>
    %533 = arith.mulf %528, %532 : vector<2x32xf32>
    %c4_132 = arith.constant 4 : index
    %c0_133 = arith.constant 0 : index
    %534 = vector.load %arg16[%c4_132, %c0_133] : memref<16x32xf32, #tpu.memory_space<vmem>>, vector<2x32xf32>
    tpu.vector_store %arg16[%c4_132, %c0_133], %533 {strides = array<i32>} : memref<16x32xf32, #tpu.memory_space<vmem>>, vector<2x32xf32>,
    %535 = vector.extract_strided_slice %474 {offsets = [6, 0], sizes = [2, 128], strides = [1, 1]} : vector<16x128xf32> to vector<2x128xf32>
    %cst_134 = arith.constant dense<0.000000e+00> : vector<2x128xf32>
    %536 = tpu.matmul %533, %475, %cst_134 {dimension_numbers = #tpu.dot_dimension_numbers<[1], [0], [0], [1], [0, 0, 1, 1], [], []>} : vector<2x32xf32>, vector<32x128xf32>, vector<2x128xf32> -> vector<2x128xf32>
    %537 = arith.addf %535, %536 : vector<2x128xf32>
    %538 = arith.negf %537 : vector<2x128xf32>
    %539 = math.exp %538 : vector<2x128xf32>
    %cst_135 = arith.constant 1.000000e+00 : f32
    %540 = vector.broadcast %cst_135 : f32 to vector<2x128xf32>
    %541 = arith.addf %540, %539 : vector<2x128xf32>
    %542 = arith.divf %540, %541 : vector<2x128xf32>
    %543 = math.tanh %537 : vector<2x128xf32>
    %544 = vector.extract_strided_slice %542 {offsets = [0, 0], sizes = [2, 32], strides = [1, 1]} : vector<2x128xf32> to vector<2x32xf32>
    %545 = vector.extract_strided_slice %542 {offsets = [0, 32], sizes = [2, 32], strides = [1, 1]} : vector<2x128xf32> to vector<2x32xf32>
    %546 = vector.extract_strided_slice %543 {offsets = [0, 64], sizes = [2, 32], strides = [1, 1]} : vector<2x128xf32> to vector<2x32xf32>
    %547 = vector.extract_strided_slice %542 {offsets = [0, 96], sizes = [2, 32], strides = [1, 1]} : vector<2x128xf32> to vector<2x32xf32>
    %548 = arith.mulf %545, %531 : vector<2x32xf32>
    %549 = arith.mulf %544, %546 : vector<2x32xf32>
    %550 = arith.addf %548, %549 : vector<2x32xf32>
    %551 = math.tanh %550 : vector<2x32xf32>
    %552 = arith.mulf %547, %551 : vector<2x32xf32>
    %c6_136 = arith.constant 6 : index
    %c0_137 = arith.constant 0 : index
    %553 = vector.load %arg16[%c6_136, %c0_137] : memref<16x32xf32, #tpu.memory_space<vmem>>, vector<2x32xf32>
    tpu.vector_store %arg16[%c6_136, %c0_137], %552 {strides = array<i32>} : memref<16x32xf32, #tpu.memory_space<vmem>>, vector<2x32xf32>,
    %554 = vector.extract_strided_slice %474 {offsets = [8, 0], sizes = [2, 128], strides = [1, 1]} : vector<16x128xf32> to vector<2x128xf32>
    %cst_138 = arith.constant dense<0.000000e+00> : vector<2x128xf32>
    %555 = tpu.matmul %552, %475, %cst_138 {dimension_numbers = #tpu.dot_dimension_numbers<[1], [0], [0], [1], [0, 0, 1, 1], [], []>} : vector<2x32xf32>, vector<32x128xf32>, vector<2x128xf32> -> vector<2x128xf32>
    %556 = arith.addf %554, %555 : vector<2x128xf32>
    %557 = arith.negf %556 : vector<2x128xf32>
    %558 = math.exp %557 : vector<2x128xf32>
    %cst_139 = arith.constant 1.000000e+00 : f32
    %559 = vector.broadcast %cst_139 : f32 to vector<2x128xf32>
    %560 = arith.addf %559, %558 : vector<2x128xf32>
    %561 = arith.divf %559, %560 : vector<2x128xf32>
    %562 = math.tanh %556 : vector<2x128xf32>
    %563 = vector.extract_strided_slice %561 {offsets = [0, 0], sizes = [2, 32], strides = [1, 1]} : vector<2x128xf32> to vector<2x32xf32>
    %564 = vector.extract_strided_slice %561 {offsets = [0, 32], sizes = [2, 32], strides = [1, 1]} : vector<2x128xf32> to vector<2x32xf32>
    %565 = vector.extract_strided_slice %562 {offsets = [0, 64], sizes = [2, 32], strides = [1, 1]} : vector<2x128xf32> to vector<2x32xf32>
    %566 = vector.extract_strided_slice %561 {offsets = [0, 96], sizes = [2, 32], strides = [1, 1]} : vector<2x128xf32> to vector<2x32xf32>
    %567 = arith.mulf %564, %550 : vector<2x32xf32>
    %568 = arith.mulf %563, %565 : vector<2x32xf32>
    %569 = arith.addf %567, %568 : vector<2x32xf32>
    %570 = math.tanh %569 : vector<2x32xf32>
    %571 = arith.mulf %566, %570 : vector<2x32xf32>
    %c8_140 = arith.constant 8 : index
    %c0_141 = arith.constant 0 : index
    %572 = vector.load %arg16[%c8_140, %c0_141] : memref<16x32xf32, #tpu.memory_space<vmem>>, vector<2x32xf32>
    tpu.vector_store %arg16[%c8_140, %c0_141], %571 {strides = array<i32>} : memref<16x32xf32, #tpu.memory_space<vmem>>, vector<2x32xf32>,
    %573 = vector.extract_strided_slice %474 {offsets = [10, 0], sizes = [2, 128], strides = [1, 1]} : vector<16x128xf32> to vector<2x128xf32>
    %cst_142 = arith.constant dense<0.000000e+00> : vector<2x128xf32>
    %574 = tpu.matmul %571, %475, %cst_142 {dimension_numbers = #tpu.dot_dimension_numbers<[1], [0], [0], [1], [0, 0, 1, 1], [], []>} : vector<2x32xf32>, vector<32x128xf32>, vector<2x128xf32> -> vector<2x128xf32>
    %575 = arith.addf %573, %574 : vector<2x128xf32>
    %576 = arith.negf %575 : vector<2x128xf32>
    %577 = math.exp %576 : vector<2x128xf32>
    %cst_143 = arith.constant 1.000000e+00 : f32
    %578 = vector.broadcast %cst_143 : f32 to vector<2x128xf32>
    %579 = arith.addf %578, %577 : vector<2x128xf32>
    %580 = arith.divf %578, %579 : vector<2x128xf32>
    %581 = math.tanh %575 : vector<2x128xf32>
    %582 = vector.extract_strided_slice %580 {offsets = [0, 0], sizes = [2, 32], strides = [1, 1]} : vector<2x128xf32> to vector<2x32xf32>
    %583 = vector.extract_strided_slice %580 {offsets = [0, 32], sizes = [2, 32], strides = [1, 1]} : vector<2x128xf32> to vector<2x32xf32>
    %584 = vector.extract_strided_slice %581 {offsets = [0, 64], sizes = [2, 32], strides = [1, 1]} : vector<2x128xf32> to vector<2x32xf32>
    %585 = vector.extract_strided_slice %580 {offsets = [0, 96], sizes = [2, 32], strides = [1, 1]} : vector<2x128xf32> to vector<2x32xf32>
    %586 = arith.mulf %583, %569 : vector<2x32xf32>
    %587 = arith.mulf %582, %584 : vector<2x32xf32>
    %588 = arith.addf %586, %587 : vector<2x32xf32>
    %589 = math.tanh %588 : vector<2x32xf32>
    %590 = arith.mulf %585, %589 : vector<2x32xf32>
    %c10_144 = arith.constant 10 : index
    %c0_145 = arith.constant 0 : index
    %591 = vector.load %arg16[%c10_144, %c0_145] : memref<16x32xf32, #tpu.memory_space<vmem>>, vector<2x32xf32>
    tpu.vector_store %arg16[%c10_144, %c0_145], %590 {strides = array<i32>} : memref<16x32xf32, #tpu.memory_space<vmem>>, vector<2x32xf32>,
    %592 = vector.extract_strided_slice %474 {offsets = [12, 0], sizes = [2, 128], strides = [1, 1]} : vector<16x128xf32> to vector<2x128xf32>
    %cst_146 = arith.constant dense<0.000000e+00> : vector<2x128xf32>
    %593 = tpu.matmul %590, %475, %cst_146 {dimension_numbers = #tpu.dot_dimension_numbers<[1], [0], [0], [1], [0, 0, 1, 1], [], []>} : vector<2x32xf32>, vector<32x128xf32>, vector<2x128xf32> -> vector<2x128xf32>
    %594 = arith.addf %592, %593 : vector<2x128xf32>
    %595 = arith.negf %594 : vector<2x128xf32>
    %596 = math.exp %595 : vector<2x128xf32>
    %cst_147 = arith.constant 1.000000e+00 : f32
    %597 = vector.broadcast %cst_147 : f32 to vector<2x128xf32>
    %598 = arith.addf %597, %596 : vector<2x128xf32>
    %599 = arith.divf %597, %598 : vector<2x128xf32>
    %600 = math.tanh %594 : vector<2x128xf32>
    %601 = vector.extract_strided_slice %599 {offsets = [0, 0], sizes = [2, 32], strides = [1, 1]} : vector<2x128xf32> to vector<2x32xf32>
    %602 = vector.extract_strided_slice %599 {offsets = [0, 32], sizes = [2, 32], strides = [1, 1]} : vector<2x128xf32> to vector<2x32xf32>
    %603 = vector.extract_strided_slice %600 {offsets = [0, 64], sizes = [2, 32], strides = [1, 1]} : vector<2x128xf32> to vector<2x32xf32>
    %604 = vector.extract_strided_slice %599 {offsets = [0, 96], sizes = [2, 32], strides = [1, 1]} : vector<2x128xf32> to vector<2x32xf32>
    %605 = arith.mulf %602, %588 : vector<2x32xf32>
    %606 = arith.mulf %601, %603 : vector<2x32xf32>
    %607 = arith.addf %605, %606 : vector<2x32xf32>
    %608 = math.tanh %607 : vector<2x32xf32>
    %609 = arith.mulf %604, %608 : vector<2x32xf32>
    %c12_148 = arith.constant 12 : index
    %c0_149 = arith.constant 0 : index
    %610 = vector.load %arg16[%c12_148, %c0_149] : memref<16x32xf32, #tpu.memory_space<vmem>>, vector<2x32xf32>
    tpu.vector_store %arg16[%c12_148, %c0_149], %609 {strides = array<i32>} : memref<16x32xf32, #tpu.memory_space<vmem>>, vector<2x32xf32>,
    %611 = vector.extract_strided_slice %474 {offsets = [14, 0], sizes = [2, 128], strides = [1, 1]} : vector<16x128xf32> to vector<2x128xf32>
    %cst_150 = arith.constant dense<0.000000e+00> : vector<2x128xf32>
    %612 = tpu.matmul %609, %475, %cst_150 {dimension_numbers = #tpu.dot_dimension_numbers<[1], [0], [0], [1], [0, 0, 1, 1], [], []>} : vector<2x32xf32>, vector<32x128xf32>, vector<2x128xf32> -> vector<2x128xf32>
    %613 = arith.addf %611, %612 : vector<2x128xf32>
    %614 = arith.negf %613 : vector<2x128xf32>
    %615 = math.exp %614 : vector<2x128xf32>
    %cst_151 = arith.constant 1.000000e+00 : f32
    %616 = vector.broadcast %cst_151 : f32 to vector<2x128xf32>
    %617 = arith.addf %616, %615 : vector<2x128xf32>
    %618 = arith.divf %616, %617 : vector<2x128xf32>
    %619 = math.tanh %613 : vector<2x128xf32>
    %620 = vector.extract_strided_slice %618 {offsets = [0, 0], sizes = [2, 32], strides = [1, 1]} : vector<2x128xf32> to vector<2x32xf32>
    %621 = vector.extract_strided_slice %618 {offsets = [0, 32], sizes = [2, 32], strides = [1, 1]} : vector<2x128xf32> to vector<2x32xf32>
    %622 = vector.extract_strided_slice %619 {offsets = [0, 64], sizes = [2, 32], strides = [1, 1]} : vector<2x128xf32> to vector<2x32xf32>
    %623 = vector.extract_strided_slice %618 {offsets = [0, 96], sizes = [2, 32], strides = [1, 1]} : vector<2x128xf32> to vector<2x32xf32>
    %624 = arith.mulf %621, %607 : vector<2x32xf32>
    %625 = arith.mulf %620, %622 : vector<2x32xf32>
    %626 = arith.addf %624, %625 : vector<2x32xf32>
    %627 = math.tanh %626 : vector<2x32xf32>
    %628 = arith.mulf %623, %627 : vector<2x32xf32>
    %c14_152 = arith.constant 14 : index
    %c0_153 = arith.constant 0 : index
    %629 = vector.load %arg16[%c14_152, %c0_153] : memref<16x32xf32, #tpu.memory_space<vmem>>, vector<2x32xf32>
    tpu.vector_store %arg16[%c14_152, %c0_153], %628 {strides = array<i32>} : memref<16x32xf32, #tpu.memory_space<vmem>>, vector<2x32xf32>,
    %c0_154 = arith.constant 0 : index
    %c0_155 = arith.constant 0 : index
    %630 = vector.load %arg16[%c0_154, %c0_155] : memref<16x32xf32, #tpu.memory_space<vmem>>, vector<16x32xf32>
    %c0_156 = arith.constant 0 : index
    %c0_157 = arith.constant 0 : index
    %631 = vector.load %arg11[%c0_156, %c0_157] : memref<32x16xf32, #tpu.memory_space<vmem>>, vector<32x16xf32>
    %cst_158 = arith.constant dense<0.000000e+00> : vector<16x16xf32>
    %632 = tpu.matmul %630, %631, %cst_158 {dimension_numbers = #tpu.dot_dimension_numbers<[1], [0], [0], [1], [0, 0, 1, 1], [], []>} : vector<16x32xf32>, vector<32x16xf32>, vector<16x16xf32> -> vector<16x16xf32>
    %c0_159 = arith.constant 0 : index
    %c0_160 = arith.constant 0 : index
    %633 = vector.load %arg12[%c0_159, %c0_160] : memref<1x16xf32, #tpu.memory_space<vmem>>, vector<1x16xf32>
    %634 = vector.broadcast %633 : vector<1x16xf32> to vector<16x16xf32>
    %635 = arith.addf %632, %634 : vector<16x16xf32>
    %636 = arith.negf %635 : vector<16x16xf32>
    %637 = math.exp %636 : vector<16x16xf32>
    %cst_161 = arith.constant 1.000000e+00 : f32
    %638 = vector.broadcast %cst_161 : f32 to vector<16x16xf32>
    %639 = arith.addf %638, %637 : vector<16x16xf32>
    %640 = arith.divf %638, %639 : vector<16x16xf32>
    %c0_162 = arith.constant 0 : index
    %c0_163 = arith.constant 0 : index
    %641 = vector.load %arg13[%c0_162, %c0_163] : memref<16x16xf32, #tpu.memory_space<vmem>>, vector<16x16xf32>
    tpu.vector_store %arg13[%c0_162, %c0_163], %640 {strides = array<i32>} : memref<16x16xf32, #tpu.memory_space<vmem>>, vector<16x16xf32>,
    return
  }
}

</mosaic_0001>

<bundles_post_ra>
// kernel: music_lstm_forward.1
= control target key start
LH: loop header
LB: loop body
LE: loop exit
PB: predicated region body
PF: predicated region fallthrough
CT: control target
= control target key end

     0   :  { %18 = vsyncpa [#allocation6], 0  ;;  %s5317_s0 = inlined_call_operand.vmem [shape: f32[16,16], index: 0, kind: input, shape index: {}]   ;;  %s5318_s1 = inlined_call_operand.hbm [shape: f32[1,256], index: 1, kind: input, shape index: {}]   ;;  %s5319_s2 = inlined_call_operand.hbm [shape: f32[16,256], index: 2, kind: input, shape index: {}]   ;;  %s5320_s3 = inlined_call_operand.hbm [shape: f32[64,256], index: 3, kind: input, shape index: {}]   ;;  %s5321_s4 = inlined_call_operand.hbm [shape: f32[1,256], index: 4, kind: input, shape index: {}]   ;;  %s5322_s5 = inlined_call_operand.vmem [shape: f32[64,256], index: 5, kind: input, shape index: {}]   ;;  %s5323_s6 = inlined_call_operand.hbm [shape: f32[64,256], index: 6, kind: input, shape index: {}]   ;;  %s5324_s7 = inlined_call_operand.hbm [shape: f32[1,256], index: 7, kind: input, shape index: {}]   ;;  %s5325_s8 = inlined_call_operand.hbm [shape: f32[64,128], index: 8, kind: input, shape index: {}]   ;;  %s5326_s9 = inlined_call_operand.hbm [shape: f32[32,128], index: 9, kind: input, shape index: {}]   ;;  %s5327_s10 = inlined_call_operand.vmem [shape: f32[1,128], index: 10, kind: input, shape index: {}]   ;;  %s5328_s11 = inlined_call_operand.vmem [shape: f32[32,16], index: 11, kind: input, shape index: {}]   ;;  %s5329_s12 = inlined_call_operand.hbm [shape: f32[1,16], index: 12, kind: input, shape index: {}]   ;;  %s5330_s13 = inlined_call_operand.vmem [shape: f32[16,16], index: 13, kind: output, shape index: {}]  }
   0x1   :  { %19 = vsyncpa [#allocation8], 0 }
   0x2   :  { %20 = vsyncpa [#allocation11], 0 }
   0x3   :  { %21 = vsyncpa [#allocation14], 0 }
   0x4   :  { %22 = vsyncpa [#allocation17], 0  ;;  %s4476_s25 = smov [#allocation7]   ;;  %s4268_s29 = scalar_lea.hbm %s5319_s2, 512 }
   0x5   :  { %s40_s26 = sshll.u32 %s4476_s25, 4  ;;  %p4269_p0 = scmp.ne.s32.totalorder %s5319_s2, %s4268_s29  ;;  %s41_s26 = int_to_ptr.vmem [resolvable:$true] %s40_s26 }
   0x6   :  { %p4272_p1 = scmp.lt.u32.totalorder %s4268_s29, %s5319_s2 }
   0x8   :  { %p4274_p2 = pnand %p4272_p1, %p4269_p0 }
   0xa   :  { %4277 = shalt.err (!%p4274_p2)
}
   0xb   :  { %s4278_s17 = scalar_lea.vmem %s41_s26, 512  ;;  %p4283_p4 = scmp.lt.s32.totalorder %s41_s26, %s41_s26 }
   0xc   :  { %p4279_p3 = scmp.ne.s32.totalorder %s41_s26, %s4278_s17  ;;  %p4284_p5 = scmp.lt.s32.totalorder %s4278_s17, %s4278_s17 }
   0xe   :  { %p4285_p6 = por %p4284_p5, %p4283_p4 }
  0x10   :  { %p4286_p7 = pnand %p4285_p6, %p4279_p3 }
  0x12   :  { %4289 = shalt.err (!%p4286_p7)
}
  0x13   :  { %s4477_s18 = smov 256   ;;  %s4478_s19 = smov 16  }
  0x14   :  { %46 = dma.hbm_to_vmem [thread:$0]  %s5319_s2, 512, %s41_s26, [#allocation8], %s4477_s18, %s4477_s18, %s4478_s19  }
  0x15   :  { %s4479_s22 = smov [#allocation10]   ;;  %s4480_s24 = smov [#allocation13]  }
  0x16   :  { %s65_s23 = sshll.u32 %s4479_s22, 4  ;;  %s89_s25 = sshll.u32 %s4480_s24, 4  ;;  %s66_s23 = int_to_ptr.vmem [resolvable:$true] %s65_s23  ;;  %s90_s25 = int_to_ptr.vmem [resolvable:$true] %s89_s25 }
  0x17   :  { %s4290_s29 = scalar_lea.hbm %s5321_s4, 32 }
  0x18   :  { %p4291_p8 = scmp.ne.s32.totalorder %s5321_s4, %s4290_s29  ;;  %p4294_p9 = scmp.lt.u32.totalorder %s4290_s29, %s5321_s4 }
  0x1a   :  { %p4296_p10 = pnand %p4294_p9, %p4291_p8 }
  0x1c   :  { %4299 = shalt.err (!%p4296_p10)
}
  0x1d   :  { %s4300_s2 = scalar_lea.vmem %s66_s23, 32  ;;  %p4305_p12 = scmp.lt.s32.totalorder %s66_s23, %s66_s23 }
  0x1e   :  { %p4301_p11 = scmp.ne.s32.totalorder %s66_s23, %s4300_s2  ;;  %p4306_p13 = scmp.lt.s32.totalorder %s4300_s2, %s4300_s2 }
  0x20   :  { %p4307_p0 = por %p4306_p13, %p4305_p12 }
  0x22   :  { %p4308_p1 = pnand %p4307_p0, %p4301_p11 }
  0x24   :  { %4311 = shalt.err (!%p4308_p1)
}
  0x25   :  { %68 = dma.hbm_to_vmem [thread:$0]  %s5321_s4, 32, %s66_s23, [#allocation11]  }
  0x26   :  { %s4312_s22 = scalar_lea.hbm %s5324_s7, 32 }
  0x27   :  { %p4313_p2 = scmp.ne.s32.totalorder %s5324_s7, %s4312_s22  ;;  %p4316_p3 = scmp.lt.u32.totalorder %s4312_s22, %s5324_s7 }
  0x29   :  { %p4318_p4 = pnand %p4316_p3, %p4313_p2 }
  0x2b   :  { %4321 = shalt.err (!%p4318_p4)
}
  0x2c   :  { %s4322_s30 = scalar_lea.vmem %s90_s25, 32  ;;  %p4327_p6 = scmp.lt.s32.totalorder %s90_s25, %s90_s25 }
  0x2d   :  { %p4323_p5 = scmp.ne.s32.totalorder %s90_s25, %s4322_s30  ;;  %p4328_p7 = scmp.lt.s32.totalorder %s4322_s30, %s4322_s30 }
  0x2f   :  { %p4329_p8 = por %p4328_p7, %p4327_p6 }
  0x31   :  { %p4330_p9 = pnand %p4329_p8, %p4323_p5 }
  0x33   :  { %4333 = shalt.err (!%p4330_p9)
}
  0x34   :  { %92 = dma.hbm_to_vmem [thread:$0]  %s5324_s7, 32, %s90_s25, [#allocation14]  }
  0x35   :  { %s4481_s14 = smov [#allocation16]   ;;  %s4482_s16 = smov [#allocation5]  }
  0x36   :  { %s110_s15 = sshll.u32 %s4481_s14, 4  ;;  %s31_s2 = sshll.u32 %s4482_s16, 4  ;;  %s111_s15 = int_to_ptr.vmem [resolvable:$true] %s110_s15  ;;  %s32_s2 = int_to_ptr.vmem [resolvable:$true] %s31_s2 }
  0x37   :  { %s4334_s20 = scalar_lea.hbm %s5326_s9, 512 }
  0x38   :  { %p4335_p10 = scmp.ne.s32.totalorder %s5326_s9, %s4334_s20  ;;  %p4338_p11 = scmp.lt.u32.totalorder %s4334_s20, %s5326_s9 }
  0x3a   :  { %p4340_p12 = pnand %p4338_p11, %p4335_p10 }
  0x3c   :  { %4343 = shalt.err (!%p4340_p12)
}
  0x3d   :  { %s4344_s7 = scalar_lea.vmem %s111_s15, 512  ;;  %p4349_p0 = scmp.lt.s32.totalorder %s111_s15, %s111_s15 }
  0x3e   :  { %p4345_p13 = scmp.ne.s32.totalorder %s111_s15, %s4344_s7  ;;  %p4350_p1 = scmp.lt.s32.totalorder %s4344_s7, %s4344_s7 }
  0x40   :  { %p4351_p2 = por %p4350_p1, %p4349_p0 }
  0x42   :  { %p4352_p3 = pnand %p4351_p2, %p4345_p13 }
  0x44   :  { %4355 = shalt.err (!%p4352_p3)
}
  0x45   :  { %s4483_s25 = smov 128   ;;  %s4484_s28 = smov 8  }
  0x46   :  { %116 = dma.hbm_to_vmem [thread:$0]  %s5326_s9, 512, %s111_s15, [#allocation17], %s4483_s25, %s4483_s25, %s4484_s28  }
  0x47   :  { %s4356_s14 = scalar_lea.hbm %s5318_s1, 32 }
  0x48   :  { %p4357_p4 = scmp.ne.s32.totalorder %s5318_s1, %s4356_s14  ;;  %p4360_p5 = scmp.lt.u32.totalorder %s4356_s14, %s5318_s1 }
  0x4a   :  { %p4362_p6 = pnand %p4360_p5, %p4357_p4 }
  0x4c   :  { %4365 = shalt.err (!%p4362_p6)
}
  0x4d   :  { %s4366_s21 = scalar_lea.vmem %s32_s2, 32  ;;  %p4371_p8 = scmp.lt.s32.totalorder %s32_s2, %s32_s2 }
  0x4e   :  { %p4367_p7 = scmp.ne.s32.totalorder %s32_s2, %s4366_s21  ;;  %p4372_p9 = scmp.lt.s32.totalorder %s4366_s21, %s4366_s21 }
  0x50   :  { %p4373_p10 = por %p4372_p9, %p4371_p8 }
  0x52   :  { %p4374_p11 = pnand %p4373_p10, %p4367_p7 }
  0x54   :  { %4377 = shalt.err (!%p4374_p11)
}
  0x55   :  { %34 = dma.hbm_to_vmem [thread:$0]  %s5318_s1, 32, %s32_s2, [#allocation6]  }
  0x56   :  { %s4485_s22 = smov [#allocation9]   ;;  %s4486_s27 = smov [#allocation12]  }
  0x57   :  { %s52_s24 = sshll.u32 %s4485_s22, 4  ;;  %s76_s7 = sshll.u32 %s4486_s27, 4  ;;  %s53_s24 = int_to_ptr.vmem [resolvable:$true] %s52_s24  ;;  %s77_s7 = int_to_ptr.vmem [resolvable:$true] %s76_s7 }
  0x58   :  { %s4378_s4 = scalar_lea.hbm %s5320_s3, 2048 }
  0x59   :  { %p4379_p12 = scmp.ne.s32.totalorder %s5320_s3, %s4378_s4  ;;  %p4382_p13 = scmp.lt.u32.totalorder %s4378_s4, %s5320_s3 }
  0x5b   :  { %p4384_p0 = pnand %p4382_p13, %p4379_p12 }
  0x5d   :  { %4387 = shalt.err (!%p4384_p0)
}
  0x5e   :  { %s4388_s1 = scalar_lea.vmem %s53_s24, 2048  ;;  %p4393_p2 = scmp.lt.s32.totalorder %s53_s24, %s53_s24 }
  0x5f   :  { %p4389_p1 = scmp.ne.s32.totalorder %s53_s24, %s4388_s1  ;;  %p4394_p3 = scmp.lt.s32.totalorder %s4388_s1, %s4388_s1 }
  0x61   :  { %p4395_p4 = por %p4394_p3, %p4393_p2 }
  0x63   :  { %p4396_p5 = pnand %p4395_p4, %p4389_p1 }
  0x65   :  { %4399 = shalt.err (!%p4396_p5)
}
  0x66   :  { %58 = dma.hbm_to_vmem [thread:$0]  %s5320_s3, 2048, %s53_s24, [#allocation8], %s4477_s18, %s4477_s18, %s4478_s19  }
  0x67   :  { %s4400_s9 = scalar_lea.hbm %s5323_s6, 2048 }
  0x68   :  { %p4401_p6 = scmp.ne.s32.totalorder %s5323_s6, %s4400_s9  ;;  %p4404_p7 = scmp.lt.u32.totalorder %s4400_s9, %s5323_s6 }
  0x6a   :  { %p4406_p8 = pnand %p4404_p7, %p4401_p6 }
  0x6c   :  { %4409 = shalt.err (!%p4406_p8)
}
  0x6d   :  { %s4410_s30 = scalar_lea.vmem %s77_s7, 2048  ;;  %p4415_p10 = scmp.lt.s32.totalorder %s77_s7, %s77_s7 }
  0x6e   :  { %p4411_p9 = scmp.ne.s32.totalorder %s77_s7, %s4410_s30  ;;  %p4416_p11 = scmp.lt.s32.totalorder %s4410_s30, %s4410_s30 }
  0x70   :  { %p4417_p12 = por %p4416_p11, %p4415_p10 }
  0x72   :  { %p4418_p13 = pnand %p4417_p12, %p4411_p9 }
  0x74   :  { %4421 = shalt.err (!%p4418_p13)
}
  0x75   :  { %82 = dma.hbm_to_vmem [thread:$0]  %s5323_s6, 2048, %s77_s7, [#allocation11], %s4477_s18, %s4477_s18, %s4478_s19  }
  0x76   :  { %s4487_s4 = smov [#allocation15]   ;;  %s4488_s14 = smov [#allocation18]  }
  0x77   :  { %s98_s23 = sshll.u32 %s4487_s4, 4  ;;  %s127_s16 = sshll.u32 %s4488_s14, 4  ;;  %s99_s23 = int_to_ptr.vmem [resolvable:$true] %s98_s23  ;;  %s128_s16 = int_to_ptr.vmem [resolvable:$true] %s127_s16 }
  0x78   :  { %s4422_s2 = scalar_lea.hbm %s5325_s8, 1024 }
  0x79   :  { %p4423_p0 = scmp.ne.s32.totalorder %s5325_s8, %s4422_s2  ;;  %p4426_p1 = scmp.lt.u32.totalorder %s4422_s2, %s5325_s8 }
  0x7b   :  { %p4428_p2 = pnand %p4426_p1, %p4423_p0 }
  0x7d   :  { %4431 = shalt.err (!%p4428_p2)
}
  0x7e   :  { %s4432_s6 = scalar_lea.vmem %s99_s23, 1024  ;;  %p4437_p4 = scmp.lt.s32.totalorder %s99_s23, %s99_s23 }
  0x7f   :  { %p4433_p3 = scmp.ne.s32.totalorder %s99_s23, %s4432_s6  ;;  %p4438_p5 = scmp.lt.s32.totalorder %s4432_s6, %s4432_s6 }
  0x81   :  { %p4439_p6 = por %p4438_p5, %p4437_p4 }
  0x83   :  { %p4440_p7 = pnand %p4439_p6, %p4433_p3 }
  0x85   :  { %4443 = shalt.err (!%p4440_p7)
}
  0x86   :  { %104 = dma.hbm_to_vmem [thread:$0]  %s5325_s8, 1024, %s99_s23, [#allocation14], %s4483_s25, %s4483_s25, %s4484_s28  }
  0x87   :  { %s4444_s22 = scalar_lea.hbm %s5329_s12, 16 }
  0x88   :  { %p4445_p8 = scmp.ne.s32.totalorder %s5329_s12, %s4444_s22  ;;  %p4448_p9 = scmp.lt.u32.totalorder %s4444_s22, %s5329_s12 }
  0x8a   :  { %p4450_p10 = pnand %p4448_p9, %p4445_p8 }
  0x8c   :  { %4453 = shalt.err (!%p4450_p10)
}
  0x8d   :  { %s4454_s24 = scalar_lea.vmem %s128_s16, 16  ;;  %s4458_s4 = scalar_lea.vmem %s128_s16, 32 }
  0x8e   :  { %p4455_p11 = scmp.ne.s32.totalorder %s128_s16, %s4454_s24  ;;  %p4459_p12 = scmp.lt.s32.totalorder %s128_s16, %s128_s16 }
  0x8f   :  { %p4460_p13 = scmp.lt.s32.totalorder %s4458_s4, %s4454_s24 }
  0x91   :  { %p4461_p0 = por %p4460_p13, %p4459_p12 }
  0x93   :  { %p4462_p1 = pnand %p4461_p0, %p4455_p11 }
  0x95   :  { %4465 = shalt.err (!%p4462_p1)
}
  0x96   :  { %130 = dma.hbm_to_vmem [thread:$0]  %s5329_s12, 16, %s128_s16, [#allocation17]  }
  0x97   :  { %4466 = dma.done.wait [#allocation6], 32  }
  0x98   :  { %4467 = vsyncadd [#allocation6], 4294967264 }
  0x99   :  { %4468 = dma.done.wait [#allocation8], 2560  }
  0x9a   :  { %4469 = vsyncadd [#allocation8], 4294964736 }
  0x9b   :  { %4470 = dma.done.wait [#allocation11], 2080  }
  0x9c   :  { %4471 = vsyncadd [#allocation11], 4294965216 }
  0x9d   :  { %4472 = dma.done.wait [#allocation14], 1056  }
  0x9e   :  { %4473 = vsyncadd [#allocation14], 4294966240 }
  0x9f   :  { %4474 = dma.done.wait [#allocation17], 528  }
  0xa0   :  { %4475 = vsyncadd [#allocation17], 4294966768  ;;  %v4489_v0 = vmov 0.0   ;;  %v163_v1 = vld [vmem:[#allocation7 + $0x8] sm:$0xff]  ;;  %v165_v2 = vld [vmem:[#allocation7 + $0x18] sm:$0xff]  ;;  %vm178_vm0 = vcmask 130048   ;;  %v168_v33 = vlaneseq }
  0xa1   :  { %249 = vmatprep.mubr.f32.mxu0 %v4489_v0  ;;  %380 = vmatprep.mubr.f32.mxu1 %v4489_v0  ;;  %v263_v3 = vld [vmem:[#allocation9 + $0x8] sm:$0xff]  ;;  %v3638_v4 = vpack.c.bf16 %v165_v2, %v163_v1  ;;  %v265_v5 = vld [vmem:[#allocation9 + $0x18] sm:$0xff]  ;;  %v162_v6 = vld [vmem:[#allocation7] sm:$0xff]  ;;  %vm415_vm1 = vcmask 254976   ;;  %vm417_vm2 = vcmask 517376   ;;  %vm312_vm3 = vcmask 523264  }
  0xa2   :  { %v164_v7 = vld [vmem:[#allocation7 + $0x10] sm:$0xff]  ;;  %v4689_v8 = vpack.c.bf16 %v265_v5, %v263_v3  ;;  %v262_v10 = vld [vmem:[#allocation9] sm:$0xff]  ;;  %v267_v13 = vld [vmem:[#allocation9 + $0x28] sm:$0xff]  ;;  %v169_v34 = vshrl.u32 %v168_v33, 7  ;;  %vm535_vm4 = vcmask 257026   ;;  %vm537_vm5 = vcmask 519426  }
  0xa3   :  { %v3640_v9 = vpack.c.bf16 %v164_v7, %v162_v6  ;;  %v264_v11 = vld [vmem:[#allocation9 + $0x10] sm:$0xff]  ;;  %3639 = vmatprep.subr.bf16.mxu0 %v3638_v4  ;;  %v269_v14 = vld [vmem:[#allocation9 + $0x38] sm:$0xff]  ;;  %v266_v15 = vld [vmem:[#allocation9 + $0x20] sm:$0xff]  ;;  %vm769_vm6 = vcmask 261126   ;;  %vm771_vm7 = vcmask 523526   ;;  %vm652_vm8 = vcmask 259076  }
  0xa4   :  { %v4691_v12 = vpack.c.bf16 %v264_v11, %v262_v10  ;;  %3643 = vmatprep.subr.bf16.mxu1 %v4689_v8  ;;  %v160_v16 = vld [vmem:[%s5317_s0] sm:$0xff]  ;;  %v4697_v17 = vpack.c.bf16 %v269_v14, %v267_v13  ;;  %v273_v21 = vld [vmem:[#allocation9 + $0x58] sm:$0xff]  ;;  %v270_v23 = vld [vmem:[#allocation9 + $0x40] sm:$0xff]  ;;  %v4743_v36 = vsub.s32 0, %v169_v34  ;;  %v4745_v38 = vsub.s32 1, %v169_v34 }
  0xa5   :  { %3641 = vmatpush1.bf16.msra.mxu0 %v3640_v9  ;;  %v268_v18 = vld [vmem:[#allocation9 + $0x30] sm:$0xff]  ;;  %v271_v19 = vld [vmem:[#allocation9 + $0x48] sm:$0xff]  ;;  %v277_v26 = vld [vmem:[#allocation9 + $0x78] sm:$0xff]  ;;  %vm654_vm9 = vcmask 521476   ;;  %vm4492_vm10 = vmmov 0   ;;  %vm2403_vm11 = vcmask 261120  }
  0xa6   :  { %3645 = vmatpush1.bf16.msra.mxu1 %v4691_v12  ;;  %v4700_v20 = vpack.c.bf16 %v268_v18, %v266_v15  ;;  %3659 = vmatprep.subr.bf16.mxu0 %v4689_v8  ;;  %v4704_v22 = vpack.c.bf16 %v273_v21, %v271_v19  ;;  %v272_v24 = vld [vmem:[#allocation9 + $0x50] sm:$0xff]  ;;  %v275_v25 = vld [vmem:[#allocation9 + $0x68] sm:$0xff]  ;;  %v274_v30 = vld [vmem:[#allocation9 + $0x60] sm:$0xff] }
  0xa7   :  { %3647 = vmatprep.subr.bf16.mxu1 %v4697_v17  ;;  %v161_v27 = vld [vmem:[%s5317_s0 + $0x8] sm:$0xff]  ;;  %v4713_v28 = vpack.c.bf16 %v272_v24, %v270_v23  ;;  %v4717_v29 = vpack.c.bf16 %v277_v26, %v275_v25  ;;  %v158_v35 = vld [vmem:[#allocation5] sm:$0x3]  ;;  %v166_v37 = vld [vmem:[#allocation10] sm:$0x3]  ;;  %s4490_s0 = smov 64  }
  0xa8   :  { %3391 = vmatmul.mubr.msk.f32.vlgmr.msra.gmra.mrb[0].mxu0 %vm178_vm0, %v160_v16  ;;  %v276_v31 = vld [vmem:[#allocation9 + $0x70] sm:$0xff]  ;;  %v159_v39 = vsub.f32 1.0, %v158_v35  ;;  %v171_v40 = vrot.slane %v166_v37, %v4743_v36  ;;  %v175_v41 = vrot.slane %v166_v37, %v4745_v38  ;;  %v4756_v47 = vrot.slane %v158_v35, %v4743_v36 }
  0xa9   :  { %255 = vmatprep.mubr.f32.mxu0 %v4489_v0  ;;  %3661 = vmatpush1.bf16.msra.mxu0 %v4691_v12  ;;  %v4723_v32 = vpack.c.bf16 %v276_v31, %v274_v30  ;;  %v4759_v49 = vrot.slane %v158_v35, %v4745_v38 }
  0xaa   :  { %3649 = vmatpush1.bf16.msra.mxu1 %v4700_v20  ;;  %3663 = vmatprep.subr.bf16.mxu0 %v4697_v17  ;;  %v4750_v42 = vrot.slane %v159_v39, %v4743_v36  ;;  %v4753_v44 = vrot.slane %v159_v39, %v4745_v38 }
  0xab   :  { %3651 = vmatprep.subr.bf16.mxu1 %v4704_v22 }
  0xac   :  { %3392 = vmatmul.mubr.msk.f32.gmra.mrb[2].mxu0 %vm178_vm0, %v161_v27 }
  0xad   :  { %3665 = vmatpush1.bf16.msra.mxu0 %v4700_v20  ;;  %491 = vmatprep.mubr.f32.mxu0 %v4489_v0 }
  0xae   :  { %3653 = vmatpush1.bf16.msra.mxu1 %v4713_v28  ;;  %3667 = vmatprep.subr.bf16.mxu0 %v4704_v22 }
  0xaf   :  { %3655 = vmatprep.subr.bf16.mxu1 %v4717_v29 }
  0xb1   :  { %3669 = vmatpush1.bf16.msra.mxu0 %v4713_v28 }
  0xb2   :  { %3657 = vmatpush1.bf16.msra.mxu1 %v4723_v32  ;;  %3671 = vmatprep.subr.bf16.mxu0 %v4717_v29 }
  0xb3   :  { %3675 = vmatprep.subr.bf16.mxu1 %v4689_v8 }
  0xb5   :  { %381 = vmatmul.mubr.f32.vlgmr.msra.gmra.mrb[0].mxu1 %v4489_v0  ;;  %3673 = vmatpush1.bf16.msra.mxu0 %v4723_v32 }
  0xb6   :  { %3677 = vmatpush1.bf16.msra.mxu1 %v4691_v12  ;;  %608 = vmatprep.mubr.f32.mxu1 %v4489_v0 }
  0xb7   :  { %3679 = vmatprep.subr.bf16.mxu1 %v4697_v17  ;;  %3691 = vmatprep.subr.bf16.mxu0 %v4689_v8 }
  0xba   :  { %3681 = vmatpush1.bf16.msra.mxu1 %v4700_v20 }
  0xbb   :  { %3683 = vmatprep.subr.bf16.mxu1 %v4704_v22 }
  0xbe   :  { %3685 = vmatpush1.bf16.msra.mxu1 %v4713_v28 }
  0xbf   :  { %3687 = vmatprep.subr.bf16.mxu1 %v4717_v29 }
  0xc2   :  { %3689 = vmatpush1.bf16.msra.mxu1 %v4723_v32 }
  0xc3   :  { %3707 = vmatprep.subr.bf16.mxu1 %v4689_v8 }
 0x17b   :  { %v251_v43 = vpop.f32.mrb[0].mxu0 }
 0x17c   :  { %v252_v45 = vadd.f32 %v251_v43, %v171_v40  ;;  %v253_v46 = vpop.f32.mrb[1].mxu0 }
 0x17d   :  { %v254_v48 = vadd.f32 %v253_v46, %v175_v41 }
 0x17e   :  { %v775_v50 = vmul.f32 %v4750_v42, %v252_v45  ;;  %v289_v55 = vmul.f32 %v4756_v47, %v252_v45 }
 0x17f   :  { %v776_v51 = vmul.f32 %v4753_v44, %v254_v48  ;;  %v257_v52 = vpop.f32.mrb[2].mxu0  ;;  %v290_v56 = vmul.f32 %v4759_v49, %v254_v48 }
 0x180   :  { %v258_v53 = vadd.f32 %v257_v52, %v171_v40  ;;  %v259_v54 = vpop.f32.mrb[3].mxu0  ;;  %v894_v58 = vrot.slane %v775_v50, 2  ;;  %v779_v61 = vrot.slane %v775_v50, 6 }
 0x181   :  { %v260_v57 = vadd.f32 %v259_v54, %v175_v41  ;;  %v895_v62 = vrot.slane %v776_v51, 2  ;;  %v780_v2 = vrot.slane %v776_v51, 6 }
 0x182   :  { %v302_v59 = vmul.f32 %v4750_v42, %v258_v53  ;;  %v773_v60 = vmul.f32 %v4756_v47, %v258_v53 }
 0x183   :  { %v303_v63 = vmul.f32 %v4753_v44, %v260_v57  ;;  %v774_v1 = vmul.f32 %v4759_v49, %v260_v57 }
 0x184   :  { %v419_v3 = vrot.slane %v302_v59, 2  ;;  %v306_v4 = vrot.slane %v302_v59, 6  ;;  %v4769_v5 = vadd.f32 %v779_v61, %v773_v60  ;;  %v4771_v6 = vadd.f32 %v894_v58, %v773_v60 }
 0x185   :  { %v420_v7 = vrot.slane %v303_v63, 2  ;;  %v307_v9 = vrot.slane %v303_v63, 6  ;;  %v4773_v10 = vadd.f32 %v780_v2, %v774_v1  ;;  %v4775_v11 = vadd.f32 %v895_v62, %v774_v1 }
 0x186   :  { %v4777_v13 = vadd.f32 %v306_v4, %v289_v55  ;;  %v4779_v14 = vadd.f32 %v419_v3, %v289_v55 }
 0x187   :  { %v4781_v15 = vadd.f32 %v307_v9, %v290_v56  ;;  %v4783_v16 = vadd.f32 %v420_v7, %v290_v56 }
 0x188   :  { %v382_v18 = vpop.f32.mrb[0].mxu1 }
 0x189   :  { %v387_v19 = vadd.f32 %v382_v18, %v4777_v13  ;;  %v384_v21 = vpop.f32.mrb[1].mxu1 }
 0x18a   :  { %v388_v24 = vadd.f32 %v384_v21, %v4781_v15 }
 0x18b   :  { %v3393_v23 = vmul.f32 -1.442695, %v387_v19 }
 0x18c   :  { %v3394_v33 = vmul.f32 -1.442695, %v388_v24 }
 0x18d   :  { %4004 = vpow2.f32 %v3393_v23 }
 0x18e   :  { %4006 = vtanh.f32 %v388_v24 }
 0x197   :  { %v4005_v25 = vpop.eup %4004 }
 0x198   :  { %v395_v26 = vadd.f32 1.0, %v4005_v25  ;;  %v4007_v27 = vpop.eup %4006 }
 0x19a   :  { %4008 = vrcp.f32 %v395_v26 }
 0x19b   :  { %4010 = vpow2.f32 %v3394_v33 }
 0x1a4   :  { %v4009_v30 = vpop.eup %4008 }
 0x1a5   :  { %v403_v31 = vmul.f32 %v4009_v30, %v4007_v27  ;;  %v4011_v34 = vpop.eup %4010  ;;  %v402_v37 = vmul.f32 0.0, %v4009_v30 }
 0x1a6   :  { %v396_v35 = vadd.f32 1.0, %v4011_v34 }
 0x1a7   :  { %405 = vrot.lane.b32.xlu0 %v403_v31, %s4490_s0 }
 0x1a8   :  { %4012 = vrcp.f32 %v396_v35 }
 0x1b2   :  { %v4013_v41 = vpop.eup %4012 }
 0x219   :  { %v406_v39 = vpop.permute.xlu0 %405 }
 0x21a   :  { %v408_v40 = vadd.f32 %v406_v39, %v402_v37 }
 0x21c   :  { %4014 = vtanh.f32 %v408_v40  ;;  %v520_v59 = vrot.slane %v408_v40, 6 }
 0x226   :  { %v4015_v43 = vpop.eup %4014 }
 0x227   :  { %v410_v45 = vmul.f32 %v4015_v43, %v4013_v41 }
 0x229   :  { %412 = vrot.lane.b32.xlu0 %v410_v45, %s4490_s0 }
 0x29b   :  { %v413_v46 = vpop.permute.xlu0 %412 }
 0x29c   :  { %416 = vst.msk [vmem:[#allocation2] sm:$0x3] %vm415_vm1, %v413_v46  ;;  %3395 = vmatmul.mubr.msk.f32.vlgmr.msra.gmra.mrb[4].mxu0 %vm312_vm3, %v413_v46 }
 0x29d   :  { %418 = vst.msk [vmem:[#allocation2 + $0xe] sm:$0x3] %vm417_vm2, %v413_v46  ;;  %3693 = vmatpush1.bf16.msra.mxu0 %v4691_v12  ;;  %725 = vmatprep.mubr.f32.mxu0 %v4489_v0 }
 0x29e   :  { %3695 = vmatprep.subr.bf16.mxu0 %v4697_v17 }
 0x2a1   :  { %3697 = vmatpush1.bf16.msra.mxu0 %v4700_v20 }
 0x2a2   :  { %3699 = vmatprep.subr.bf16.mxu0 %v4704_v22 }
 0x2a5   :  { %3701 = vmatpush1.bf16.msra.mxu0 %v4713_v28 }
 0x2a6   :  { %3703 = vmatprep.subr.bf16.mxu0 %v4717_v29 }
 0x2a9   :  { %3705 = vmatpush1.bf16.msra.mxu0 %v4723_v32 }
 0x2aa   :  { %3723 = vmatprep.subr.bf16.mxu0 %v4689_v8 }
 0x36f   :  { %v493_v48 = vpop.f32.mrb[4].mxu0 }
 0x370   :  { %v500_v50 = vrot.slane %v493_v48, 6  ;;  %v495_v51 = vpop.f32.mrb[5].mxu0 }
 0x371   :  { %v501_v54 = vrot.slane %v495_v51, 6 }
 0x372   :  { %v504_v52 = vadd.f32 %v500_v50, %v4779_v14 }
 0x373   :  { %v505_v55 = vadd.f32 %v501_v54, %v4783_v16 }
 0x374   :  { %v3396_v53 = vmul.f32 -1.442695, %v504_v52 }
 0x375   :  { %v3397_v63 = vmul.f32 -1.442695, %v505_v55 }
 0x376   :  { %4016 = vpow2.f32 %v3396_v53 }
 0x377   :  { %4018 = vtanh.f32 %v505_v55 }
 0x380   :  { %v4017_v56 = vpop.eup %4016 }
 0x381   :  { %v512_v57 = vadd.f32 1.0, %v4017_v56  ;;  %v4019_v58 = vpop.eup %4018 }
 0x383   :  { %4020 = vrcp.f32 %v512_v57 }
 0x384   :  { %4022 = vpow2.f32 %v3397_v63 }
 0x38d   :  { %v4021_v60 = vpop.eup %4020 }
 0x38e   :  { %v523_v61 = vmul.f32 %v4021_v60, %v4019_v58  ;;  %v522_v62 = vmul.f32 %v4021_v60, %v520_v59  ;;  %v4023_v1 = vpop.eup %4022 }
 0x38f   :  { %v513_v2 = vadd.f32 1.0, %v4023_v1 }
 0x390   :  { %525 = vrot.lane.b32.xlu1 %v523_v61, %s4490_s0 }
 0x391   :  { %4024 = vrcp.f32 %v513_v2 }
 0x39b   :  { %v4025_v7 = vpop.eup %4024 }
 0x402   :  { %v526_v3 = vpop.permute.xlu1 %525 }
 0x403   :  { %v528_v4 = vadd.f32 %v526_v3, %v522_v62 }
 0x405   :  { %4026 = vtanh.f32 %v528_v4  ;;  %v637_v37 = vrot.slane %v528_v4, 6 }
 0x40f   :  { %v4027_v9 = vpop.eup %4026 }
 0x410   :  { %v4804_v18 = vmul.f32 %v4027_v9, %v4025_v7 }
 0x412   :  { %v539_v19 = vrot.slane %v4804_v18, 2 }
 0x414   :  { %540 = vrot.lane.b32.xlu1 %v539_v19, %s4490_s0 }
 0x486   :  { %v541_v21 = vpop.permute.xlu1 %540 }
 0x487   :  { %3398 = vmatmul.mubr.msk.f32.vlgmr.msra.gmra.mrb[2].mxu1 %vm312_vm3, %v541_v21 }
 0x488   :  { %3709 = vmatpush1.bf16.msra.mxu1 %v4691_v12  ;;  %854 = vmatprep.mubr.f32.mxu1 %v4489_v0 }
 0x489   :  { %3711 = vmatprep.subr.bf16.mxu1 %v4697_v17 }
 0x48c   :  { %3713 = vmatpush1.bf16.msra.mxu1 %v4700_v20 }
 0x48d   :  { %3715 = vmatprep.subr.bf16.mxu1 %v4704_v22 }
 0x490   :  { %3717 = vmatpush1.bf16.msra.mxu1 %v4713_v28 }
 0x491   :  { %3719 = vmatprep.subr.bf16.mxu1 %v4717_v29 }
 0x494   :  { %3721 = vmatpush1.bf16.msra.mxu1 %v4723_v32 }
 0x495   :  { %3739 = vmatprep.subr.bf16.mxu1 %v4689_v8 }
 0x55a   :  { %v610_v23 = vpop.f32.mrb[2].mxu1 }
 0x55b   :  { %v617_v24 = vrot.slane %v610_v23, 4  ;;  %v612_v25 = vpop.f32.mrb[3].mxu1 }
 0x55c   :  { %v618_v30 = vrot.slane %v612_v25, 4 }
 0x55d   :  { %v621_v26 = vadd.f32 %v617_v24, %v4777_v13 }
 0x55e   :  { %v622_v31 = vadd.f32 %v618_v30, %v4781_v15 }
 0x55f   :  { %v3399_v27 = vmul.f32 -1.442695, %v621_v26 }
 0x560   :  { %v3400_v43 = vmul.f32 -1.442695, %v622_v31 }
 0x561   :  { %4028 = vpow2.f32 %v3399_v27 }
 0x562   :  { %4030 = vtanh.f32 %v622_v31 }
 0x56b   :  { %v4029_v33 = vpop.eup %4028 }
 0x56c   :  { %v629_v34 = vadd.f32 1.0, %v4029_v33  ;;  %v4031_v35 = vpop.eup %4030 }
 0x56e   :  { %4032 = vrcp.f32 %v629_v34 }
 0x56f   :  { %4034 = vpow2.f32 %v3400_v43 }
 0x578   :  { %v4033_v39 = vpop.eup %4032 }
 0x579   :  { %v640_v40 = vmul.f32 %v4033_v39, %v4031_v35  ;;  %v639_v41 = vmul.f32 %v4033_v39, %v637_v37  ;;  %v4035_v45 = vpop.eup %4034 }
 0x57a   :  { %v630_v13 = vadd.f32 1.0, %v4035_v45 }
 0x57b   :  { %642 = vrot.lane.b32.xlu0 %v640_v40, %s4490_s0 }
 0x57c   :  { %4036 = vrcp.f32 %v630_v13 }
 0x586   :  { %v4037_v15 = vpop.eup %4036 }
 0x5ed   :  { %v643_v46 = vpop.permute.xlu0 %642 }
 0x5ee   :  { %v645_v48 = vadd.f32 %v643_v46, %v639_v41 }
 0x5f0   :  { %4038 = vtanh.f32 %v645_v48  ;;  %v754_v1 = vrot.slane %v645_v48, 6 }
 0x5fa   :  { %v4039_v50 = vpop.eup %4038 }
 0x5fb   :  { %v4821_v51 = vmul.f32 %v4039_v50, %v4037_v15 }
 0x5fd   :  { %v656_v52 = vrot.slane %v4821_v51, 4 }
 0x5ff   :  { %657 = vrot.lane.b32.xlu1 %v656_v52, %s4490_s0 }
 0x671   :  { %v658_v53 = vpop.permute.xlu1 %657 }
 0x672   :  { %3401 = vmatmul.mubr.msk.f32.vlgmr.msra.gmra.mrb[6].mxu0 %vm312_vm3, %v658_v53 }
 0x673   :  { %3725 = vmatpush1.bf16.msra.mxu0 %v4691_v12  ;;  %966 = vmatprep.mubr.f32.mxu0 %v4489_v0 }
 0x674   :  { %3727 = vmatprep.subr.bf16.mxu0 %v4697_v17 }
 0x677   :  { %3729 = vmatpush1.bf16.msra.mxu0 %v4700_v20 }
 0x678   :  { %3731 = vmatprep.subr.bf16.mxu0 %v4704_v22 }
 0x67b   :  { %3733 = vmatpush1.bf16.msra.mxu0 %v4713_v28 }
 0x67c   :  { %3735 = vmatprep.subr.bf16.mxu0 %v4717_v29 }
 0x67f   :  { %3737 = vmatpush1.bf16.msra.mxu0 %v4723_v32 }
 0x680   :  { %3755 = vmatprep.subr.bf16.mxu0 %v4689_v8 }
 0x745   :  { %v727_v54 = vpop.f32.mrb[6].mxu0 }
 0x746   :  { %v734_v55 = vrot.slane %v727_v54, 2  ;;  %v729_v56 = vpop.f32.mrb[7].mxu0 }
 0x747   :  { %v735_v59 = vrot.slane %v729_v56, 2 }
 0x748   :  { %v738_v57 = vadd.f32 %v734_v55, %v4779_v14 }
 0x749   :  { %v739_v60 = vadd.f32 %v735_v59, %v4783_v16 }
 0x74a   :  { %v3402_v58 = vmul.f32 -1.442695, %v738_v57 }
 0x74b   :  { %v3403_v8 = vmul.f32 -1.442695, %v739_v60 }
 0x74c   :  { %4040 = vpow2.f32 %v3402_v58 }
 0x74d   :  { %4042 = vtanh.f32 %v739_v60 }
 0x756   :  { %v4041_v61 = vpop.eup %4040 }
 0x757   :  { %v746_v62 = vadd.f32 1.0, %v4041_v61  ;;  %v4043_v63 = vpop.eup %4042 }
 0x759   :  { %4044 = vrcp.f32 %v746_v62 }
 0x75a   :  { %4046 = vpow2.f32 %v3403_v8 }
 0x763   :  { %v4045_v2 = vpop.eup %4044 }
 0x764   :  { %v757_v3 = vmul.f32 %v4045_v2, %v4043_v63  ;;  %v756_v4 = vmul.f32 %v4045_v2, %v754_v1  ;;  %v4047_v7 = vpop.eup %4046 }
 0x765   :  { %v747_v14 = vadd.f32 1.0, %v4047_v7 }
 0x766   :  { %759 = vrot.lane.b32.xlu0 %v757_v3, %s4490_s0 }
 0x767   :  { %4048 = vrcp.f32 %v747_v14 }
 0x771   :  { %v4049_v16 = vpop.eup %4048 }
 0x7d8   :  { %v760_v9 = vpop.permute.xlu0 %759 }
 0x7d9   :  { %v762_v19 = vadd.f32 %v760_v9, %v756_v4 }
 0x7db   :  { %4050 = vtanh.f32 %v762_v19  ;;  %v877_v39 = vrot.slane %v762_v19, 6 }
 0x7e5   :  { %v4051_v21 = vpop.eup %4050 }
 0x7e6   :  { %v4838_v23 = vmul.f32 %v4051_v21, %v4049_v16 }
 0x7e8   :  { %v785_v24 = vrot.slane %v4838_v23, 6 }
 0x7ea   :  { %786 = vrot.lane.b32.xlu1 %v785_v24, %s4490_s0 }
 0x85c   :  { %v787_v25 = vpop.permute.xlu1 %786 }
 0x85d   :  { %3404 = vmatmul.mubr.msk.f32.vlgmr.msra.gmra.mrb[4].mxu1 %vm312_vm3, %v787_v25 }
 0x85e   :  { %3741 = vmatpush1.bf16.msra.mxu1 %v4691_v12  ;;  %1081 = vmatprep.mubr.f32.mxu1 %v4489_v0 }
 0x85f   :  { %3743 = vmatprep.subr.bf16.mxu1 %v4697_v17 }
 0x862   :  { %3745 = vmatpush1.bf16.msra.mxu1 %v4700_v20 }
 0x863   :  { %3747 = vmatprep.subr.bf16.mxu1 %v4704_v22 }
 0x866   :  { %3749 = vmatpush1.bf16.msra.mxu1 %v4713_v28 }
 0x867   :  { %3751 = vmatprep.subr.bf16.mxu1 %v4717_v29 }
 0x86a   :  { %3753 = vmatpush1.bf16.msra.mxu1 %v4723_v32 }
 0x930   :  { %v856_v26 = vpop.f32.mrb[4].mxu1 }
 0x931   :  { %v861_v27 = vadd.f32 %v856_v26, %v4769_v5  ;;  %v858_v30 = vpop.f32.mrb[5].mxu1 }
 0x932   :  { %v862_v33 = vadd.f32 %v858_v30, %v4773_v10 }
 0x933   :  { %v3405_v31 = vmul.f32 -1.442695, %v861_v27 }
 0x934   :  { %v3406_v45 = vmul.f32 -1.442695, %v862_v33 }
 0x935   :  { %4052 = vpow2.f32 %v3405_v31 }
 0x936   :  { %4054 = vtanh.f32 %v862_v33 }
 0x93f   :  { %v4053_v34 = vpop.eup %4052 }
 0x940   :  { %v869_v35 = vadd.f32 1.0, %v4053_v34  ;;  %v4055_v37 = vpop.eup %4054 }
 0x942   :  { %4056 = vrcp.f32 %v869_v35 }
 0x943   :  { %4058 = vpow2.f32 %v3406_v45 }
 0x94c   :  { %v4057_v40 = vpop.eup %4056 }
 0x94d   :  { %v880_v41 = vmul.f32 %v4057_v40, %v4055_v37  ;;  %v879_v43 = vmul.f32 %v4057_v40, %v877_v39  ;;  %v4059_v13 = vpop.eup %4058 }
 0x94e   :  { %v870_v46 = vadd.f32 1.0, %v4059_v13 }
 0x94f   :  { %882 = vrot.lane.b32.xlu0 %v880_v41, %s4490_s0 }
 0x950   :  { %4060 = vrcp.f32 %v870_v46 }
 0x95a   :  { %v4061_v50 = vpop.eup %4060 }
 0x9c1   :  { %v883_v48 = vpop.permute.xlu0 %882 }
 0x9c2   :  { %v885_v15 = vadd.f32 %v883_v48, %v879_v43 }
 0x9c4   :  { %4062 = vtanh.f32 %v885_v15 }
 0x9ce   :  { %v4063_v52 = vpop.eup %4062 }
 0x9cf   :  { %v887_v53 = vmul.f32 %v4063_v52, %v4061_v50 }
 0x9d1   :  { %889 = vrot.lane.b32.xlu1 %v887_v53, %s4490_s0 }
 0xa43   :  { %v4855_v54 = vpop.permute.xlu1 %889 }
 0xa44   :  { %3407 = vmatmul.mubr.msk.f32.vlgmr.msra.gmra.mrb[8].mxu0 %vm312_vm3, %v4855_v54 }
 0xa45   :  { %3757 = vmatpush1.bf16.msra.mxu0 %v4691_v12  ;;  %1196 = vmatprep.mubr.f32.mxu0 %v4489_v0 }
 0xa46   :  { %3759 = vmatprep.subr.bf16.mxu0 %v4697_v17 }
 0xa49   :  { %3761 = vmatpush1.bf16.msra.mxu0 %v4700_v20 }
 0xa4a   :  { %3763 = vmatprep.subr.bf16.mxu0 %v4704_v22 }
 0xa4d   :  { %3765 = vmatpush1.bf16.msra.mxu0 %v4713_v28  ;;  %v995_v28 = vrot.slane %v885_v15, 6 }
 0xa4e   :  { %3767 = vmatprep.subr.bf16.mxu0 %v4717_v29 }
 0xa51   :  { %3769 = vmatpush1.bf16.msra.mxu0 %v4723_v32 }
 0xb17   :  { %v968_v55 = vpop.f32.mrb[8].mxu0 }
 0xb18   :  { %v975_v56 = vrot.slane %v968_v55, 6  ;;  %v970_v57 = vpop.f32.mrb[9].mxu0 }
 0xb19   :  { %v976_v59 = vrot.slane %v970_v57, 6 }
 0xb1a   :  { %v979_v58 = vadd.f32 %v975_v56, %v4771_v6 }
 0xb1b   :  { %v980_v17 = vadd.f32 %v976_v59, %v4775_v11 }
 0xb1c   :  { %v3408_v12 = vmul.f32 -1.442695, %v979_v58 }
 0xb1d   :  { %v3409_v32 = vmul.f32 -1.442695, %v980_v17 }
 0xb1e   :  { %4064 = vpow2.f32 %v3408_v12 }
 0xb1f   :  { %4066 = vtanh.f32 %v980_v17 }
 0xb28   :  { %v4065_v60 = vpop.eup %4064 }
 0xb29   :  { %v987_v20 = vadd.f32 1.0, %v4065_v60  ;;  %v4067_v22 = vpop.eup %4066 }
 0xb2b   :  { %4068 = vrcp.f32 %v987_v20 }
 0xb2c   :  { %4070 = vpow2.f32 %v3409_v32  ;;  %v1249_v32 = vld [vmem:[%s5322_s5 + $0x28] sm:$0xff] }
 0xb35   :  { %v4069_v61 = vpop.eup %4068 }
 0xb36   :  { %v998_v29 = vmul.f32 %v4069_v61, %v4067_v22  ;;  %v997_v62 = vmul.f32 %v4069_v61, %v995_v28  ;;  %v4071_v63 = vpop.eup %4070  ;;  %v1247_v61 = vld [vmem:[%s5322_s5 + $0x18] sm:$0xff] }
 0xb37   :  { %v988_v1 = vadd.f32 1.0, %v4071_v63  ;;  %v1251_v63 = vld [vmem:[%s5322_s5 + $0x38] sm:$0xff] }
 0xb38   :  { %1000 = vrot.lane.b32.xlu0 %v998_v29, %s4490_s0 }
 0xb39   :  { %4072 = vrcp.f32 %v988_v1 }
 0xb43   :  { %v4073_v4 = vpop.eup %4072 }
 0xbaa   :  { %v1001_v2 = vpop.permute.xlu0 %1000 }
 0xbab   :  { %v1003_v3 = vadd.f32 %v1001_v2, %v997_v62  ;;  %v1246_v62 = vld [vmem:[%s5322_s5 + $0x10] sm:$0xff]  ;;  %v3774_v2 = vpack.c.bf16 %v1251_v63, %v1249_v32 }
 0xbac   :  { %v1260_v63 = vld [vmem:[#allocation13] sm:$0x3] }
 0xbad   :  { %4074 = vtanh.f32 %v1003_v3  ;;  %v1110_v34 = vrot.slane %v1003_v3, 6  ;;  %v1248_v3 = vld [vmem:[%s5322_s5 + $0x20] sm:$0xff] }
 0xbb7   :  { %v4075_v8 = vpop.eup %4074 }
 0xbb8   :  { %v4870_v7 = vmul.f32 %v4075_v8, %v4073_v4  ;;  %v1250_v4 = vld [vmem:[%s5322_s5 + $0x30] sm:$0xff] }
 0xbb9   :  { %v3776_v8 = vpack.c.bf16 %v1250_v4, %v1248_v3 }
 0xbba   :  { %v1012_v14 = vrot.slane %v4870_v7, 2 }
 0xbbc   :  { %1013 = vrot.lane.b32.xlu1 %v1012_v14, %s4490_s0 }
 0xc2e   :  { %v1014_v9 = vpop.permute.xlu1 %1013 }
 0xc2f   :  { %3410 = vmatmul.mubr.msk.f32.vlgmr.msra.gmra.mrb[6].mxu1 %vm312_vm3, %v1014_v9 }
 0xc30   :  { %1342 = vmatprep.mubr.f32.mxu1 %v4489_v0 }
 0xd02   :  { %v1083_v19 = vpop.f32.mrb[6].mxu1 }
 0xd03   :  { %v1090_v16 = vrot.slane %v1083_v19, 4  ;;  %v1085_v21 = vpop.f32.mrb[7].mxu1 }
 0xd04   :  { %v1091_v26 = vrot.slane %v1085_v21, 4  ;;  %v1255_v21 = vld [vmem:[%s5322_s5 + $0x58] sm:$0xff] }
 0xd05   :  { %v1094_v24 = vadd.f32 %v1090_v16, %v4769_v5  ;;  %v1253_v16 = vld [vmem:[%s5322_s5 + $0x48] sm:$0xff] }
 0xd06   :  { %v1095_v27 = vadd.f32 %v1091_v26, %v4773_v10  ;;  %v1254_v26 = vld [vmem:[%s5322_s5 + $0x50] sm:$0xff] }
 0xd07   :  { %v3411_v25 = vmul.f32 -1.442695, %v1094_v24 }
 0xd08   :  { %v3412_v40 = vmul.f32 -1.442695, %v1095_v27 }
 0xd09   :  { %4076 = vpow2.f32 %v3411_v25  ;;  %v3778_v25 = vpack.c.bf16 %v1255_v21, %v1253_v16 }
 0xd0a   :  { %4078 = vtanh.f32 %v1095_v27 }
 0xd13   :  { %v4077_v30 = vpop.eup %4076 }
 0xd14   :  { %v1102_v31 = vadd.f32 1.0, %v4077_v30  ;;  %v4079_v33 = vpop.eup %4078  ;;  %v1356_v30 = vld [vmem:[#allocation12 + $0x8] sm:$0xff] }
 0xd16   :  { %4080 = vrcp.f32 %v1102_v31  ;;  %v1358_v31 = vld [vmem:[#allocation12 + $0x18] sm:$0xff] }
 0xd17   :  { %4082 = vpow2.f32 %v3412_v40  ;;  %v1357_v40 = vld [vmem:[#allocation12 + $0x10] sm:$0xff] }
 0xd20   :  { %v4081_v35 = vpop.eup %4080 }
 0xd21   :  { %v1113_v37 = vmul.f32 %v4081_v35, %v4079_v33  ;;  %v1112_v39 = vmul.f32 %v4081_v35, %v1110_v34  ;;  %v4083_v41 = vpop.eup %4082  ;;  %v1257_v33 = vld [vmem:[%s5322_s5 + $0x68] sm:$0xff]  ;;  %v4943_v35 = vpack.c.bf16 %v1358_v31, %v1356_v30 }
 0xd22   :  { %v1103_v5 = vadd.f32 1.0, %v4083_v41 }
 0xd23   :  { %1115 = vrot.lane.b32.xlu0 %v1113_v37, %s4490_s0  ;;  %v1259_v37 = vld [vmem:[%s5322_s5 + $0x78] sm:$0xff]  ;;  %3787 = vmatprep.subr.bf16.mxu0 %v4943_v35 }
 0xd24   :  { %4084 = vrcp.f32 %v1103_v5  ;;  %v3782_v41 = vpack.c.bf16 %v1259_v37, %v1257_v33 }
 0xd2e   :  { %v4085_v10 = vpop.eup %4084 }
 0xd95   :  { %v1116_v43 = vpop.permute.xlu0 %1115 }
 0xd96   :  { %v1118_v45 = vadd.f32 %v1116_v43, %v1112_v39  ;;  %v1355_v39 = vld [vmem:[#allocation12] sm:$0xff]  ;;  %v1256_v43 = vld [vmem:[%s5322_s5 + $0x60] sm:$0xff] }
 0xd97   :  { %v4950_v5 = vpack.c.bf16 %v1357_v40, %v1355_v39 }
 0xd98   :  { %4086 = vtanh.f32 %v1118_v45  ;;  %v1225_v60 = vrot.slane %v1118_v45, 6  ;;  %v1258_v45 = vld [vmem:[%s5322_s5 + $0x70] sm:$0xff] }
 0xda2   :  { %v4087_v13 = vpop.eup %4086 }
 0xda3   :  { %v1120_v46 = vmul.f32 %v4087_v13, %v4085_v10  ;;  %v1360_v10 = vld [vmem:[#allocation12 + $0x28] sm:$0xff]  ;;  %v3784_v13 = vpack.c.bf16 %v1258_v45, %v1256_v43 }
 0xda5   :  { %v1127_v48 = vrot.slane %v1120_v46, 4 }
 0xda7   :  { %1128 = vrot.lane.b32.xlu1 %v1127_v48, %s4490_s0 }
 0xdab   :  { %532 = vrot.lane.b32.xlu1 %v4804_v18, %s4490_s0 }
 0xdaf   :  { %766 = vrot.lane.b32.xlu1 %v4838_v23, %s4490_s0 }
 0xdb3   :  { %1122 = vrot.lane.b32.xlu1 %v1120_v46, %s4490_s0  ;;  %v1362_v46 = vld [vmem:[#allocation12 + $0x38] sm:$0xff] }
 0xdb4   :  { %v4960_v48 = vpack.c.bf16 %v1362_v46, %v1360_v10 }
 0xe19   :  { %v1129_v15 = vpop.permute.xlu1 %1128 }
 0xe1a   :  { %3413 = vmatmul.mubr.msk.f32.vlgmr.msra.gmra.mrb[10].mxu0 %vm312_vm3, %v1129_v15 }
 0xe1b   :  { %1447 = vmatprep.mubr.f32.mxu0 %v4489_v0  ;;  %3789 = vmatpush1.bf16.msra.mxu0 %v4950_v5 }
 0xe1c   :  { %3791 = vmatprep.subr.bf16.mxu0 %v4960_v48 }
 0xe1d   :  { %v533_v50 = vpop.permute.xlu1 %532 }
 0xe1e   :  { %536 = vst.msk [vmem:[#allocation2] sm:$0xc] %vm535_vm4, %v533_v50 }
 0xe1f   :  { %538 = vst.msk [vmem:[#allocation2 + $0xa] sm:$0xc] %vm537_vm5, %v533_v50  ;;  %v1359_v50 = vld [vmem:[#allocation12 + $0x20] sm:$0xff] }
 0xe21   :  { %v767_v18 = vpop.permute.xlu1 %766 }
 0xe22   :  { %770 = vst.msk [vmem:[#allocation2] sm:$0xc0] %vm769_vm6, %v767_v18 }
 0xe23   :  { %772 = vst.msk [vmem:[#allocation2 + $0x2] sm:$0xc0] %vm771_vm7, %v767_v18  ;;  %v1361_v18 = vld [vmem:[#allocation12 + $0x30] sm:$0xff] }
 0xe24   :  { %892 = vst.msk [vmem:[#allocation2 + $0x8] sm:$0x3] %vm415_vm1, %v4855_v54 }
 0xe25   :  { %893 = vst.msk [vmem:[#allocation2 + $0x6] sm:$0x3] %vm417_vm2, %v4855_v54  ;;  %v1123_v23 = vpop.permute.xlu1 %1122 }
 0xe26   :  { %1125 = vst.msk [vmem:[#allocation2 + $0x8] sm:$0x30] %vm652_vm8, %v1123_v23 }
 0xe27   :  { %1126 = vst.msk [vmem:[#allocation2 - $0x2] sm:$0x30] %vm654_vm9, %v1123_v23  ;;  %v4965_v23 = vpack.c.bf16 %v1361_v18, %v1359_v50 }
 0xe29   :  { %3793 = vmatpush1.bf16.msra.mxu0 %v4965_v23 }
 0xeed   :  { %v1198_v52 = vpop.f32.mrb[10].mxu0 }
 0xeee   :  { %v1205_v53 = vrot.slane %v1198_v52, 2  ;;  %v1200_v55 = vpop.f32.mrb[11].mxu0  ;;  %v1364_v52 = vld [vmem:[#allocation12 + $0x48] sm:$0xff] }
 0xeef   :  { %v1206_v58 = vrot.slane %v1200_v55, 2 }
 0xef0   :  { %v1209_v56 = vadd.f32 %v1205_v53, %v4771_v6  ;;  %v1245_v6 = vld [vmem:[%s5322_s5 + $0x8] sm:$0xff] }
 0xef1   :  { %v1210_v12 = vadd.f32 %v1206_v58, %v4775_v11  ;;  %v1244_v11 = vld [vmem:[%s5322_s5] sm:$0xff]  ;;  %v3770_v29 = vpack.c.bf16 %v1247_v61, %v1245_v6  ;;  %v1366_v53 = vld [vmem:[#allocation12 + $0x58] sm:$0xff] }
 0xef2   :  { %v3414_v57 = vmul.f32 -1.442695, %v1209_v56  ;;  %v3772_v1 = vpack.c.bf16 %v1246_v62, %v1244_v11  ;;  %v4969_v56 = vpack.c.bf16 %v1366_v53, %v1364_v52  ;;  %v1365_v58 = vld [vmem:[#allocation12 + $0x50] sm:$0xff] }
 0xef3   :  { %3771 = vmatprep.subr.bf16.mxu1 %v3770_v29  ;;  %v3415_v14 = vmul.f32 -1.442695, %v1210_v12 }
 0xef4   :  { %4088 = vpow2.f32 %v3414_v57  ;;  %3773 = vmatpush1.bf16.msra.mxu1 %v3772_v1  ;;  %v1363_v57 = vld [vmem:[#allocation12 + $0x40] sm:$0xff]  ;;  %3795 = vmatprep.subr.bf16.mxu0 %v4969_v56  ;;  %v1265_v1 = vrot.slane %v1260_v63, %v4743_v36 }
 0xef5   :  { %4090 = vtanh.f32 %v1210_v12  ;;  %3775 = vmatprep.subr.bf16.mxu1 %v3774_v2  ;;  %v1269_v2 = vrot.slane %v1260_v63, %v4745_v38 }
 0xef8   :  { %3777 = vmatpush1.bf16.msra.mxu1 %v3776_v8 }
 0xef9   :  { %3779 = vmatprep.subr.bf16.mxu1 %v3778_v25 }
 0xefe   :  { %v4089_v59 = vpop.eup %4088 }
 0xeff   :  { %v1217_v17 = vadd.f32 1.0, %v4089_v59  ;;  %v4091_v54 = vpop.eup %4090  ;;  %v4971_v59 = vpack.c.bf16 %v1365_v58, %v1363_v57 }
 0xf01   :  { %4092 = vrcp.f32 %v1217_v17  ;;  %3797 = vmatpush1.bf16.msra.mxu0 %v4971_v59 }
 0xf02   :  { %4094 = vpow2.f32 %v3415_v14 }
 0xf0b   :  { %v4093_v20 = vpop.eup %4092 }
 0xf0c   :  { %v1228_v22 = vmul.f32 %v4093_v20, %v4091_v54  ;;  %v1227_v28 = vmul.f32 %v4093_v20, %v1225_v60  ;;  %v1368_v54 = vld [vmem:[#allocation12 + $0x68] sm:$0xff]  ;;  %v1370_v60 = vld [vmem:[#allocation12 + $0x78] sm:$0xff]  ;;  %v1367_v20 = vld [vmem:[#allocation12 + $0x60] sm:$0xff] }
 0xf0e   :  { %1230 = vrot.lane.b32.xlu0 %v1228_v22, %s4490_s0  ;;  %v4976_v22 = vpack.c.bf16 %v1370_v60, %v1368_v54 }
 0xf10   :  { %3799 = vmatprep.subr.bf16.mxu0 %v4976_v22 }
 0xf12   :  { %649 = vrot.lane.b32.xlu0 %v4821_v51, %s4490_s0  ;;  %v4095_v51 = vpop.eup %4094 }
 0xf13   :  { %v1218_v9 = vadd.f32 1.0, %v4095_v51 }
 0xf15   :  { %4096 = vrcp.f32 %v1218_v9 }
 0xf16   :  { %1007 = vrot.lane.b32.xlu0 %v4870_v7, %s4490_s0  ;;  %v1252_v7 = vld [vmem:[%s5322_s5 + $0x40] sm:$0xff] }
 0xf17   :  { %v3780_v27 = vpack.c.bf16 %v1254_v26, %v1252_v7 }
 0xf19   :  { %3781 = vmatpush1.bf16.msra.mxu1 %v3780_v27 }
 0xf1a   :  { %3783 = vmatprep.subr.bf16.mxu1 %v3782_v41 }
 0xf1d   :  { %3785 = vmatpush1.bf16.msra.mxu1 %v3784_v13 }
 0xf1e   :  { %3803 = vmatprep.subr.bf16.mxu1 %v4943_v35 }
 0xf1f   :  { %v4097_v55 = vpop.eup %4096 }
 0xf80   :  { %v1231_v19 = vpop.permute.xlu0 %1230 }
 0xf81   :  { %v1233_v24 = vadd.f32 %v1231_v19, %v1227_v28  ;;  %v1369_v28 = vld [vmem:[#allocation12 + $0x70] sm:$0xff] }
 0xf82   :  { %v4978_v6 = vpack.c.bf16 %v1369_v28, %v1367_v20 }
 0xf83   :  { %4098 = vtanh.f32 %v1233_v24 }
 0xf84   :  { %v650_v34 = vpop.permute.xlu0 %649  ;;  %3801 = vmatpush1.bf16.msra.mxu0 %v4978_v6 }
 0xf85   :  { %653 = vst.msk [vmem:[#allocation2] sm:$0x30] %vm652_vm8, %v650_v34  ;;  %3819 = vmatprep.subr.bf16.mxu0 %v4943_v35 }
 0xf86   :  { %655 = vst.msk [vmem:[#allocation2 + $0x6] sm:$0x30] %vm654_vm9, %v650_v34 }
 0xf87   :  { %1448 = vmatmul.mubr.f32.vlgmr.msra.gmra.mrb[12].mxu0 %v4489_v0 }
 0xf88   :  { %v1008_v15 = vpop.permute.xlu0 %1007  ;;  %3821 = vmatpush1.bf16.msra.mxu0 %v4950_v5  ;;  %1671 = vmatprep.mubr.f32.mxu0 %v4489_v0 }
 0xf89   :  { %1010 = vst.msk [vmem:[#allocation2 + $0x8] sm:$0xc] %vm535_vm4, %v1008_v15  ;;  %3823 = vmatprep.subr.bf16.mxu0 %v4960_v48 }
 0xf8a   :  { %1011 = vst.msk [vmem:[#allocation2 + $0x2] sm:$0xc] %vm537_vm5, %v1008_v15 }
 0xf8c   :  { %3825 = vmatpush1.bf16.msra.mxu0 %v4965_v23 }
 0xf8d   :  { %v4099_v12 = vpop.eup %4098  ;;  %3827 = vmatprep.subr.bf16.mxu0 %v4969_v56 }
 0xf8e   :  { %v1235_v17 = vmul.f32 %v4099_v12, %v4097_v55 }
 0xf90   :  { %1237 = vrot.lane.b32.xlu0 %v1235_v17, %s4490_s0  ;;  %3829 = vmatpush1.bf16.msra.mxu0 %v4971_v59 }
 0xf91   :  { %3831 = vmatprep.subr.bf16.mxu0 %v4976_v22 }
 0xf94   :  { %3833 = vmatpush1.bf16.msra.mxu0 %v4978_v6 }
 0xf95   :  { %3851 = vmatprep.subr.bf16.mxu0 %v4943_v35 }
0x1002   :  { %v1238_v61 = vpop.permute.xlu0 %1237 }
0x1003   :  { %1240 = vst.msk [vmem:[#allocation2 + $0x8] sm:$0xc0] %vm769_vm6, %v1238_v61 }
0x1004   :  { %1241 = vst.msk [vmem:[#allocation2 - $0x6] sm:$0xc0] %vm771_vm7, %v1238_v61 }
0x100a   :  { %v1243_v29 = vld [vmem:[#allocation2 + $0x8] sm:$0xff] }
0x100b   :  { %v1242_v11 = vld [vmem:[#allocation2] sm:$0xff] }
0x100c   :  { %3416 = vmatmul.mubr.msk.f32.vlgmr.msra.gmra.mrb[8].mxu1 %vm312_vm3, %v1242_v11 }
0x100d   :  { %1348 = vmatprep.mubr.f32.mxu1 %v4489_v0  ;;  %3805 = vmatpush1.bf16.msra.mxu1 %v4950_v5 }
0x100e   :  { %3807 = vmatprep.subr.bf16.mxu1 %v4960_v48 }
0x1010   :  { %3417 = vmatmul.mubr.msk.f32.gmra.mrb[10].mxu1 %vm312_vm3, %v1243_v29 }
0x1011   :  { %3809 = vmatpush1.bf16.msra.mxu1 %v4965_v23  ;;  %1556 = vmatprep.mubr.f32.mxu1 %v4489_v0 }
0x1012   :  { %3811 = vmatprep.subr.bf16.mxu1 %v4969_v56 }
0x1015   :  { %3813 = vmatpush1.bf16.msra.mxu1 %v4971_v59 }
0x1016   :  { %3815 = vmatprep.subr.bf16.mxu1 %v4976_v22 }
0x1019   :  { %3817 = vmatpush1.bf16.msra.mxu1 %v4978_v6 }
0x101a   :  { %3835 = vmatprep.subr.bf16.mxu1 %v4943_v35 }
0x105a   :  { %v1449_v62 = vpop.f32.mrb[12].mxu0 }
0x105b   :  { %v1451_v32 = vpop.f32.mrb[13].mxu0 }
0x10df   :  { %v1344_v3 = vpop.f32.mrb[8].mxu1 }
0x10e0   :  { %v1345_v4 = vadd.f32 %v1344_v3, %v1265_v1  ;;  %v1346_v8 = vpop.f32.mrb[9].mxu1 }
0x10e1   :  { %v1347_v14 = vadd.f32 %v1346_v8, %v1269_v2 }
0x10e2   :  { %v1834_v51 = vmul.f32 %v1345_v4, %v4750_v42  ;;  %v1371_v24 = vmul.f32 %v1345_v4, %v4756_v47 }
0x10e3   :  { %v1835_v9 = vmul.f32 %v1347_v14, %v4753_v44  ;;  %v1350_v19 = vpop.f32.mrb[10].mxu1  ;;  %v1372_v25 = vmul.f32 %v1347_v14, %v4759_v49 }
0x10e4   :  { %v1351_v16 = vadd.f32 %v1350_v19, %v1265_v1  ;;  %v1352_v21 = vpop.f32.mrb[11].mxu1  ;;  %v1953_v26 = vrot.slane %v1834_v51, 2  ;;  %v1838_v27 = vrot.slane %v1834_v51, 6 }
0x10e5   :  { %v1353_v7 = vadd.f32 %v1352_v21, %v1269_v2  ;;  %v1954_v30 = vrot.slane %v1835_v9, 2  ;;  %v1839_v34 = vrot.slane %v1835_v9, 6 }
0x10e6   :  { %v1373_v36 = vmul.f32 %v1351_v16, %v4750_v42  ;;  %v1832_v38 = vmul.f32 %v1351_v16, %v4756_v47 }
0x10e7   :  { %v1374_v31 = vmul.f32 %v1353_v7, %v4753_v44  ;;  %v1833_v33 = vmul.f32 %v1353_v7, %v4759_v49 }
0x10e8   :  { %v1484_v37 = vrot.slane %v1373_v36, 2  ;;  %v1377_v39 = vrot.slane %v1373_v36, 6  ;;  %v5017_v40 = vadd.f32 %v1838_v27, %v1832_v38  ;;  %v5019_v41 = vadd.f32 %v1953_v26, %v1832_v38 }
0x10e9   :  { %v1485_v43 = vrot.slane %v1374_v31, 2  ;;  %v1378_v45 = vrot.slane %v1374_v31, 6  ;;  %v5021_v10 = vadd.f32 %v1839_v34, %v1833_v33  ;;  %v5023_v42 = vadd.f32 %v1954_v30, %v1833_v33 }
0x10ea   :  { %v5025_v47 = vadd.f32 %v1377_v39, %v1371_v24  ;;  %v5027_v13 = vadd.f32 %v1484_v37, %v1371_v24 }
0x10eb   :  { %v5029_v44 = vadd.f32 %v1378_v45, %v1372_v25  ;;  %v5031_v49 = vadd.f32 %v1485_v43, %v1372_v25 }
0x10ec   :  { %v1454_v46 = vadd.f32 %v1449_v62, %v5025_v47 }
0x10ed   :  { %v1455_v50 = vadd.f32 %v1451_v32, %v5029_v44 }
0x10ee   :  { %v3418_v15 = vmul.f32 -1.442695, %v1454_v46 }
0x10ef   :  { %v3419_v58 = vmul.f32 -1.442695, %v1455_v50 }
0x10f0   :  { %4100 = vpow2.f32 %v3418_v15 }
0x10f1   :  { %4102 = vtanh.f32 %v1455_v50 }
0x10fa   :  { %v4101_v18 = vpop.eup %4100 }
0x10fb   :  { %v1462_v52 = vadd.f32 1.0, %v4101_v18  ;;  %v4103_v53 = vpop.eup %4102 }
0x10fd   :  { %4104 = vrcp.f32 %v1462_v52 }
0x10fe   :  { %4106 = vpow2.f32 %v3419_v58 }
0x1107   :  { %v4105_v55 = vpop.eup %4104 }
0x1108   :  { %v1470_v57 = vmul.f32 %v4105_v55, %v4103_v53  ;;  %v4107_v12 = vpop.eup %4106  ;;  %v1469_v54 = vmul.f32 0.0, %v4105_v55 }
0x1109   :  { %v1463_v17 = vadd.f32 1.0, %v4107_v12 }
0x110a   :  { %1472 = vrot.lane.b32.xlu1 %v1470_v57, %s4490_s0 }
0x110b   :  { %4108 = vrcp.f32 %v1463_v17 }
0x1115   :  { %v4109_v28 = vpop.eup %4108 }
0x117c   :  { %v1473_v60 = vpop.permute.xlu1 %1472 }
0x117d   :  { %v1475_v20 = vadd.f32 %v1473_v60, %v1469_v54 }
0x117f   :  { %4110 = vtanh.f32 %v1475_v20  ;;  %v1585_v9 = vrot.slane %v1475_v20, 6 }
0x1189   :  { %v4111_v61 = vpop.eup %4110 }
0x118a   :  { %v1477_v11 = vmul.f32 %v4111_v61, %v4109_v28 }
0x118c   :  { %1479 = vrot.lane.b32.xlu0 %v1477_v11, %s4490_s0 }
0x11fe   :  { %v1480_v29 = vpop.permute.xlu0 %1479 }
0x11ff   :  { %1482 = vst.msk [vmem:[#allocation3] sm:$0x3] %vm415_vm1, %v1480_v29  ;;  %3420 = vmatmul.mubr.msk.f32.vlgmr.msra.gmra.mrb[12].mxu1 %vm312_vm3, %v1480_v29 }
0x1200   :  { %1483 = vst.msk [vmem:[#allocation3 + $0xe] sm:$0x3] %vm417_vm2, %v1480_v29  ;;  %3837 = vmatpush1.bf16.msra.mxu1 %v4950_v5  ;;  %1786 = vmatprep.mubr.f32.mxu1 %v4489_v0 }
0x1201   :  { %3839 = vmatprep.subr.bf16.mxu1 %v4960_v48 }
0x1204   :  { %3841 = vmatpush1.bf16.msra.mxu1 %v4965_v23 }
0x1205   :  { %3843 = vmatprep.subr.bf16.mxu1 %v4969_v56 }
0x1208   :  { %3845 = vmatpush1.bf16.msra.mxu1 %v4971_v59 }
0x1209   :  { %3847 = vmatprep.subr.bf16.mxu1 %v4976_v22 }
0x120c   :  { %3849 = vmatpush1.bf16.msra.mxu1 %v4978_v6 }
0x120d   :  { %3867 = vmatprep.subr.bf16.mxu1 %v4943_v35 }
0x12d2   :  { %v1558_v62 = vpop.f32.mrb[12].mxu1 }
0x12d3   :  { %v1565_v32 = vrot.slane %v1558_v62, 6  ;;  %v1560_v63 = vpop.f32.mrb[13].mxu1 }
0x12d4   :  { %v1566_v3 = vrot.slane %v1560_v63, 6 }
0x12d5   :  { %v1569_v1 = vadd.f32 %v1565_v32, %v5027_v13 }
0x12d6   :  { %v1570_v4 = vadd.f32 %v1566_v3, %v5031_v49 }
0x12d7   :  { %v3421_v2 = vmul.f32 -1.442695, %v1569_v1 }
0x12d8   :  { %v3422_v24 = vmul.f32 -1.442695, %v1570_v4 }
0x12d9   :  { %4112 = vpow2.f32 %v3421_v2 }
0x12da   :  { %4114 = vtanh.f32 %v1570_v4 }
0x12e3   :  { %v4113_v8 = vpop.eup %4112 }
0x12e4   :  { %v1577_v14 = vadd.f32 1.0, %v4113_v8  ;;  %v4115_v51 = vpop.eup %4114 }
0x12e6   :  { %4116 = vrcp.f32 %v1577_v14 }
0x12e7   :  { %4118 = vpow2.f32 %v3422_v24 }
0x12f0   :  { %v4117_v19 = vpop.eup %4116 }
0x12f1   :  { %v1588_v16 = vmul.f32 %v4117_v19, %v4115_v51  ;;  %v1587_v21 = vmul.f32 %v4117_v19, %v1585_v9  ;;  %v4119_v25 = vpop.eup %4118 }
0x12f2   :  { %v1578_v7 = vadd.f32 1.0, %v4119_v25 }
0x12f3   :  { %1590 = vrot.lane.b32.xlu1 %v1588_v16, %s4490_s0 }
0x12f4   :  { %4120 = vrcp.f32 %v1578_v7 }
0x12fe   :  { %v4121_v38 = vpop.eup %4120 }
0x1365   :  { %v1591_v26 = vpop.permute.xlu1 %1590 }
0x1366   :  { %v1593_v36 = vadd.f32 %v1591_v26, %v1587_v21 }
0x1368   :  { %4122 = vtanh.f32 %v1593_v36  ;;  %v1700_v53 = vrot.slane %v1593_v36, 6 }
0x1372   :  { %v4123_v27 = vpop.eup %4122 }
0x1373   :  { %v5052_v30 = vmul.f32 %v4123_v27, %v4121_v38 }
0x1375   :  { %v1602_v31 = vrot.slane %v5052_v30, 2 }
0x1377   :  { %1603 = vrot.lane.b32.xlu0 %v1602_v31, %s4490_s0 }
0x13e9   :  { %v1604_v33 = vpop.permute.xlu0 %1603 }
0x13ea   :  { %3423 = vmatmul.mubr.msk.f32.vlgmr.msra.gmra.mrb[14].mxu0 %vm312_vm3, %v1604_v33 }
0x13eb   :  { %3853 = vmatpush1.bf16.msra.mxu0 %v4950_v5  ;;  %1913 = vmatprep.mubr.f32.mxu0 %v4489_v0 }
0x13ec   :  { %3855 = vmatprep.subr.bf16.mxu0 %v4960_v48 }
0x13ef   :  { %3857 = vmatpush1.bf16.msra.mxu0 %v4965_v23 }
0x13f0   :  { %3859 = vmatprep.subr.bf16.mxu0 %v4969_v56 }
0x13f3   :  { %3861 = vmatpush1.bf16.msra.mxu0 %v4971_v59 }
0x13f4   :  { %3863 = vmatprep.subr.bf16.mxu0 %v4976_v22 }
0x13f7   :  { %3865 = vmatpush1.bf16.msra.mxu0 %v4978_v6 }
0x13f8   :  { %3883 = vmatprep.subr.bf16.mxu0 %v4943_v35 }
0x14bd   :  { %v1673_v34 = vpop.f32.mrb[14].mxu0 }
0x14be   :  { %v1680_v37 = vrot.slane %v1673_v34, 4  ;;  %v1675_v39 = vpop.f32.mrb[15].mxu0 }
0x14bf   :  { %v1681_v46 = vrot.slane %v1675_v39, 4 }
0x14c0   :  { %v1684_v43 = vadd.f32 %v1680_v37, %v5025_v47 }
0x14c1   :  { %v1685_v15 = vadd.f32 %v1681_v46, %v5029_v44 }
0x14c2   :  { %v3424_v45 = vmul.f32 -1.442695, %v1684_v43 }
0x14c3   :  { %v3425_v12 = vmul.f32 -1.442695, %v1685_v15 }
0x14c4   :  { %4124 = vpow2.f32 %v3424_v45 }
0x14c5   :  { %4126 = vtanh.f32 %v1685_v15 }
0x14ce   :  { %v4125_v50 = vpop.eup %4124 }
0x14cf   :  { %v1692_v18 = vadd.f32 1.0, %v4125_v50  ;;  %v4127_v52 = vpop.eup %4126 }
0x14d1   :  { %4128 = vrcp.f32 %v1692_v18 }
0x14d2   :  { %4130 = vpow2.f32 %v3425_v12 }
0x14db   :  { %v4129_v55 = vpop.eup %4128 }
0x14dc   :  { %v1703_v57 = vmul.f32 %v4129_v55, %v4127_v52  ;;  %v1702_v58 = vmul.f32 %v4129_v55, %v1700_v53  ;;  %v4131_v17 = vpop.eup %4130 }
0x14dd   :  { %v1693_v47 = vadd.f32 1.0, %v4131_v17 }
0x14de   :  { %1705 = vrot.lane.b32.xlu1 %v1703_v57, %s4490_s0 }
0x14df   :  { %4132 = vrcp.f32 %v1693_v47 }
0x14e9   :  { %v4133_v44 = vpop.eup %4132 }
0x1550   :  { %v1706_v54 = vpop.permute.xlu1 %1705 }
0x1551   :  { %v1708_v60 = vadd.f32 %v1706_v54, %v1702_v58 }
0x1553   :  { %4134 = vtanh.f32 %v1708_v60  ;;  %v1815_v51 = vrot.slane %v1708_v60, 6 }
0x155d   :  { %v4135_v20 = vpop.eup %4134 }
0x155e   :  { %v5069_v28 = vmul.f32 %v4135_v20, %v4133_v44 }
0x1560   :  { %v1717_v61 = vrot.slane %v5069_v28, 4 }
0x1562   :  { %1718 = vrot.lane.b32.xlu0 %v1717_v61, %s4490_s0 }
0x15d4   :  { %v1719_v11 = vpop.permute.xlu0 %1718 }
0x15d5   :  { %3426 = vmatmul.mubr.msk.f32.vlgmr.msra.gmra.mrb[14].mxu1 %vm312_vm3, %v1719_v11 }
0x15d6   :  { %3869 = vmatpush1.bf16.msra.mxu1 %v4950_v5  ;;  %2025 = vmatprep.mubr.f32.mxu1 %v4489_v0 }
0x15d7   :  { %3871 = vmatprep.subr.bf16.mxu1 %v4960_v48 }
0x15da   :  { %3873 = vmatpush1.bf16.msra.mxu1 %v4965_v23 }
0x15db   :  { %3875 = vmatprep.subr.bf16.mxu1 %v4969_v56 }
0x15de   :  { %3877 = vmatpush1.bf16.msra.mxu1 %v4971_v59 }
0x15df   :  { %3879 = vmatprep.subr.bf16.mxu1 %v4976_v22 }
0x15e2   :  { %3881 = vmatpush1.bf16.msra.mxu1 %v4978_v6 }
0x15e3   :  { %3899 = vmatprep.subr.bf16.mxu1 %v4943_v35 }
0x16a8   :  { %v1788_v29 = vpop.f32.mrb[14].mxu1 }
0x16a9   :  { %v1795_v62 = vrot.slane %v1788_v29, 2  ;;  %v1790_v32 = vpop.f32.mrb[15].mxu1 }
0x16aa   :  { %v1796_v2 = vrot.slane %v1790_v32, 2 }
0x16ab   :  { %v1799_v63 = vadd.f32 %v1795_v62, %v5027_v13 }
0x16ac   :  { %v1800_v3 = vadd.f32 %v1796_v2, %v5031_v49 }
0x16ad   :  { %v3427_v1 = vmul.f32 -1.442695, %v1799_v63 }
0x16ae   :  { %v3428_v35 = vmul.f32 -1.442695, %v1800_v3 }
0x16af   :  { %4136 = vpow2.f32 %v3427_v1 }
0x16b0   :  { %4138 = vtanh.f32 %v1800_v3 }
0x16b9   :  { %v4137_v4 = vpop.eup %4136 }
0x16ba   :  { %v1807_v8 = vadd.f32 1.0, %v4137_v4  ;;  %v4139_v14 = vpop.eup %4138 }
0x16bc   :  { %4140 = vrcp.f32 %v1807_v8 }
0x16bd   :  { %4142 = vpow2.f32 %v3428_v35 }
0x16c6   :  { %v4141_v9 = vpop.eup %4140 }
0x16c7   :  { %v1818_v19 = vmul.f32 %v4141_v9, %v4139_v14  ;;  %v1817_v16 = vmul.f32 %v4141_v9, %v1815_v51  ;;  %v4143_v21 = vpop.eup %4142 }
0x16c8   :  { %v1808_v13 = vadd.f32 1.0, %v4143_v21 }
0x16c9   :  { %1820 = vrot.lane.b32.xlu1 %v1818_v19, %s4490_s0 }
0x16ca   :  { %4144 = vrcp.f32 %v1808_v13 }
0x16d4   :  { %v4145_v49 = vpop.eup %4144 }
0x173b   :  { %v1821_v24 = vpop.permute.xlu1 %1820 }
0x173c   :  { %v1823_v25 = vadd.f32 %v1821_v24, %v1817_v16 }
0x173e   :  { %4146 = vtanh.f32 %v1823_v25  ;;  %v1936_v46 = vrot.slane %v1823_v25, 6 }
0x1748   :  { %v4147_v7 = vpop.eup %4146 }
0x1749   :  { %v5086_v26 = vmul.f32 %v4147_v7, %v4145_v49 }
0x174b   :  { %v1844_v36 = vrot.slane %v5086_v26, 6 }
0x174d   :  { %1845 = vrot.lane.b32.xlu0 %v1844_v36, %s4490_s0 }
0x17bf   :  { %v1846_v38 = vpop.permute.xlu0 %1845 }
0x17c0   :  { %3429 = vmatmul.mubr.msk.f32.vlgmr.msra.gmra.mrb[16].mxu0 %vm312_vm3, %v1846_v38 }
0x17c1   :  { %3885 = vmatpush1.bf16.msra.mxu0 %v4950_v5  ;;  %2140 = vmatprep.mubr.f32.mxu0 %v4489_v0 }
0x17c2   :  { %3887 = vmatprep.subr.bf16.mxu0 %v4960_v48 }
0x17c5   :  { %3889 = vmatpush1.bf16.msra.mxu0 %v4965_v23 }
0x17c6   :  { %3891 = vmatprep.subr.bf16.mxu0 %v4969_v56 }
0x17c9   :  { %3893 = vmatpush1.bf16.msra.mxu0 %v4971_v59 }
0x17ca   :  { %3895 = vmatprep.subr.bf16.mxu0 %v4976_v22 }
0x17cd   :  { %3897 = vmatpush1.bf16.msra.mxu0 %v4978_v6 }
0x1893   :  { %v1915_v27 = vpop.f32.mrb[16].mxu0 }
0x1894   :  { %v1920_v31 = vadd.f32 %v1915_v27, %v5017_v40  ;;  %v1917_v33 = vpop.f32.mrb[17].mxu0 }
0x1895   :  { %v1921_v37 = vadd.f32 %v1917_v33, %v5021_v10 }
0x1896   :  { %v3430_v34 = vmul.f32 -1.442695, %v1920_v31 }
0x1897   :  { %v3431_v52 = vmul.f32 -1.442695, %v1921_v37 }
0x1898   :  { %4148 = vpow2.f32 %v3430_v34 }
0x1899   :  { %4150 = vtanh.f32 %v1921_v37 }
0x18a2   :  { %v4149_v39 = vpop.eup %4148 }
0x18a3   :  { %v1928_v43 = vadd.f32 1.0, %v4149_v39  ;;  %v4151_v45 = vpop.eup %4150 }
0x18a5   :  { %4152 = vrcp.f32 %v1928_v43 }
0x18a6   :  { %4154 = vpow2.f32 %v3431_v52 }
0x18af   :  { %v4153_v15 = vpop.eup %4152 }
0x18b0   :  { %v1939_v50 = vmul.f32 %v4153_v15, %v4151_v45  ;;  %v1938_v18 = vmul.f32 %v4153_v15, %v1936_v46  ;;  %v4155_v53 = vpop.eup %4154 }
0x18b1   :  { %v1929_v55 = vadd.f32 1.0, %v4155_v53 }
0x18b2   :  { %1941 = vrot.lane.b32.xlu1 %v1939_v50, %s4490_s0 }
0x18b3   :  { %4156 = vrcp.f32 %v1929_v55 }
0x18bd   :  { %v4157_v12 = vpop.eup %4156 }
0x1924   :  { %v1942_v57 = vpop.permute.xlu1 %1941 }
0x1925   :  { %v1944_v58 = vadd.f32 %v1942_v57, %v1938_v18 }
0x1927   :  { %4158 = vtanh.f32 %v1944_v58 }
0x1931   :  { %v4159_v17 = vpop.eup %4158 }
0x1932   :  { %v1946_v47 = vmul.f32 %v4159_v17, %v4157_v12 }
0x1934   :  { %1948 = vrot.lane.b32.xlu0 %v1946_v47, %s4490_s0 }
0x19a6   :  { %v5103_v54 = vpop.permute.xlu0 %1948 }
0x19a7   :  { %3432 = vmatmul.mubr.msk.f32.vlgmr.msra.gmra.mrb[16].mxu1 %vm312_vm3, %v5103_v54 }
0x19a8   :  { %3901 = vmatpush1.bf16.msra.mxu1 %v4950_v5  ;;  %2255 = vmatprep.mubr.f32.mxu1 %v4489_v0 }
0x19a9   :  { %3903 = vmatprep.subr.bf16.mxu1 %v4960_v48 }
0x19ac   :  { %3905 = vmatpush1.bf16.msra.mxu1 %v4965_v23 }
0x19ad   :  { %3907 = vmatprep.subr.bf16.mxu1 %v4969_v56 }
0x19b0   :  { %3909 = vmatpush1.bf16.msra.mxu1 %v4971_v59  ;;  %v2054_v59 = vrot.slane %v1944_v58, 6 }
0x19b1   :  { %3911 = vmatprep.subr.bf16.mxu1 %v4976_v22 }
0x19b4   :  { %3913 = vmatpush1.bf16.msra.mxu1 %v4978_v6 }
0x1a7a   :  { %v2027_v60 = vpop.f32.mrb[16].mxu1 }
0x1a7b   :  { %v2034_v44 = vrot.slane %v2027_v60, 6  ;;  %v2029_v20 = vpop.f32.mrb[17].mxu1 }
0x1a7c   :  { %v2035_v11 = vrot.slane %v2029_v20, 6 }
0x1a7d   :  { %v2038_v61 = vadd.f32 %v2034_v44, %v5019_v41 }
0x1a7e   :  { %v2039_v48 = vadd.f32 %v2035_v11, %v5023_v42  ;;  %v2303_v11 = vld [vmem:[#allocation15] sm:$0xff] }
0x1a7f   :  { %v3433_v5 = vmul.f32 -1.442695, %v2038_v61 }
0x1a80   :  { %v3434_v6 = vmul.f32 -1.442695, %v2039_v48 }
0x1a81   :  { %4160 = vpow2.f32 %v3433_v5 }
0x1a82   :  { %4162 = vtanh.f32 %v2039_v48  ;;  %v2304_v48 = vld [vmem:[#allocation15 + $0x8] sm:$0xff] }
0x1a8b   :  { %v4161_v29 = vpop.eup %4160 }
0x1a8c   :  { %v2046_v23 = vadd.f32 1.0, %v4161_v29  ;;  %v4163_v56 = vpop.eup %4162  ;;  %v2305_v29 = vld [vmem:[#allocation15 + $0x10] sm:$0xff] }
0x1a8e   :  { %4164 = vrcp.f32 %v2046_v23  ;;  %v2306_v23 = vld [vmem:[#allocation15 + $0x18] sm:$0xff] }
0x1a8f   :  { %4166 = vpow2.f32 %v3434_v6  ;;  %v2307_v6 = vld [vmem:[#allocation15 + $0x20] sm:$0xff] }
0x1a98   :  { %v4165_v62 = vpop.eup %4164 }
0x1a99   :  { %v2057_v22 = vmul.f32 %v4165_v62, %v4163_v56  ;;  %v2056_v32 = vmul.f32 %v4165_v62, %v2054_v59  ;;  %v4167_v63 = vpop.eup %4166 }
0x1a9a   :  { %v2047_v1 = vadd.f32 1.0, %v4167_v63  ;;  %v2308_v63 = vld [vmem:[#allocation15 + $0x28] sm:$0xff] }
0x1a9b   :  { %2059 = vrot.lane.b32.xlu1 %v2057_v22, %s4490_s0 }
0x1a9c   :  { %4168 = vrcp.f32 %v2047_v1  ;;  %v3922_v1 = vpack.c.bf16 %v2308_v63, %v2307_v6 }
0x1aa6   :  { %v4169_v4 = vpop.eup %4168 }
0x1b0d   :  { %v2060_v2 = vpop.permute.xlu1 %2059 }
0x1b0e   :  { %v2062_v3 = vadd.f32 %v2060_v2, %v2056_v32  ;;  %v2400_v2 = vld [vmem:[#allocation16 + $0x8] sm:$0xff] }
0x1b10   :  { %4170 = vtanh.f32 %v2062_v3  ;;  %v2169_v38 = vrot.slane %v2062_v3, 6  ;;  %v2309_v3 = vld [vmem:[#allocation15 + $0x30] sm:$0xff] }
0x1b1a   :  { %v4171_v8 = vpop.eup %4170 }
0x1b1b   :  { %v5118_v14 = vmul.f32 %v4171_v8, %v4169_v4  ;;  %v4491_v8 = vmov 0.0|0.0  }
0x1b1c   :  { %3930 = vmatprep.subr.bf16.mxu1 %v4491_v8 }
0x1b1d   :  { %v2071_v51 = vrot.slane %v5118_v14, 2 }
0x1b1f   :  { %2072 = vrot.lane.b32.xlu0 %v2071_v51, %s4490_s0  ;;  %v2310_v51 = vld [vmem:[#allocation15 + $0x38] sm:$0xff] }
0x1b91   :  { %v2073_v9 = vpop.permute.xlu0 %2072 }
0x1b92   :  { %3435 = vmatmul.mubr.msk.f32.vlgmr.msra.gmra.mrb[18].mxu0 %vm312_vm3, %v2073_v9  ;;  %v3926_v9 = vpack.c.bf16 %v2310_v51, %v2309_v3 }
0x1c65   :  { %v2142_v19 = vpop.f32.mrb[18].mxu0 }
0x1c66   :  { %v2149_v16 = vrot.slane %v2142_v19, 4  ;;  %v2144_v35 = vpop.f32.mrb[19].mxu0 }
0x1c67   :  { %v2150_v24 = vrot.slane %v2144_v35, 4  ;;  %v2402_v35 = vld [vmem:[#allocation16 + $0x18] sm:$0xff] }
0x1c68   :  { %v2153_v21 = vadd.f32 %v2149_v16, %v5017_v40  ;;  %v2401_v16 = vld [vmem:[#allocation16 + $0x10] sm:$0xff] }
0x1c69   :  { %v2154_v25 = vadd.f32 %v2150_v24, %v5021_v10 }
0x1c6a   :  { %v3436_v13 = vmul.f32 -1.442695, %v2153_v21  ;;  %v5159_v21 = vpack.c.bf16 %v2402_v35, %v2401_v16 }
0x1c6b   :  { %v3437_v34 = vmul.f32 -1.442695, %v2154_v25 }
0x1c6c   :  { %4172 = vpow2.f32 %v3436_v13 }
0x1c6d   :  { %4174 = vtanh.f32 %v2154_v25 }
0x1c76   :  { %v4173_v49 = vpop.eup %4172 }
0x1c77   :  { %v2161_v7 = vadd.f32 1.0, %v4173_v49  ;;  %v4175_v36 = vpop.eup %4174 }
0x1c79   :  { %4176 = vrcp.f32 %v2161_v7 }
0x1c7a   :  { %4178 = vpow2.f32 %v3437_v34 }
0x1c83   :  { %v4177_v27 = vpop.eup %4176 }
0x1c84   :  { %v2172_v31 = vmul.f32 %v4177_v27, %v4175_v36  ;;  %v2171_v33 = vmul.f32 %v4177_v27, %v2169_v38  ;;  %v4179_v37 = vpop.eup %4178 }
0x1c85   :  { %v2162_v40 = vadd.f32 1.0, %v4179_v37 }
0x1c86   :  { %2174 = vrot.lane.b32.xlu1 %v2172_v31, %s4490_s0  ;;  %v3441_v31 = vld [vmem:[%s5327_s10] ss:$0 sm:$0xff]  ;;  %s4493_s10 = smov 32  }
0x1c87   :  { %4180 = vrcp.f32 %v2162_v40 }
0x1c91   :  { %v4181_v10 = vpop.eup %4180 }
0x1cf8   :  { %v2175_v39 = vpop.permute.xlu1 %2174 }
0x1cf9   :  { %v2177_v43 = vadd.f32 %v2175_v39, %v2171_v33 }
0x1cfb   :  { %4182 = vtanh.f32 %v2177_v43  ;;  %v2284_v44 = vrot.slane %v2177_v43, 6 }
0x1d05   :  { %v4183_v45 = vpop.eup %4182 }
0x1d06   :  { %v2179_v46 = vmul.f32 %v4183_v45, %v4181_v10 }
0x1d08   :  { %v2186_v15 = vrot.slane %v2179_v46, 4 }
0x1d0a   :  { %2187 = vrot.lane.b32.xlu0 %v2186_v15, %s4490_s0 }
0x1d0e   :  { %1597 = vrot.lane.b32.xlu0 %v5052_v30, %s4490_s0 }
0x1d12   :  { %1827 = vrot.lane.b32.xlu0 %v5086_v26, %s4490_s0 }
0x1d16   :  { %2181 = vrot.lane.b32.xlu0 %v2179_v46, %s4490_s0 }
0x1d7c   :  { %v2188_v50 = vpop.permute.xlu0 %2187 }
0x1d7d   :  { %3438 = vmatmul.mubr.msk.f32.vlgmr.msra.gmra.mrb[18].mxu1 %vm312_vm3, %v2188_v50 }
0x1d7e   :  { %3547 = vmatprep.mubr.msk.f32.mxu1 %vm4492_vm10, %v4489_v0 }
0x1d80   :  { %v1598_v18 = vpop.permute.xlu0 %1597 }
0x1d81   :  { %1600 = vst.msk [vmem:[#allocation3] sm:$0xc] %vm535_vm4, %v1598_v18 }
0x1d82   :  { %1601 = vst.msk [vmem:[#allocation3 + $0xa] sm:$0xc] %vm537_vm5, %v1598_v18 }
0x1d84   :  { %v1828_v52 = vpop.permute.xlu0 %1827 }
0x1d85   :  { %1830 = vst.msk [vmem:[#allocation3] sm:$0xc0] %vm769_vm6, %v1828_v52 }
0x1d86   :  { %1831 = vst.msk [vmem:[#allocation3 + $0x2] sm:$0xc0] %vm771_vm7, %v1828_v52 }
0x1d87   :  { %1951 = vst.msk [vmem:[#allocation3 + $0x8] sm:$0x3] %vm415_vm1, %v5103_v54 }
0x1d88   :  { %1952 = vst.msk [vmem:[#allocation3 + $0x6] sm:$0x3] %vm417_vm2, %v5103_v54  ;;  %v2182_v30 = vpop.permute.xlu0 %2181 }
0x1d89   :  { %2184 = vst.msk [vmem:[#allocation3 + $0x8] sm:$0x30] %vm652_vm8, %v2182_v30 }
0x1d8a   :  { %2185 = vst.msk [vmem:[#allocation3 - $0x2] sm:$0x30] %vm654_vm9, %v2182_v30 }
0x1e50   :  { %v2257_v26 = vpop.f32.mrb[18].mxu1 }
0x1e51   :  { %v2264_v53 = vrot.slane %v2257_v26, 2  ;;  %v2259_v55 = vpop.f32.mrb[19].mxu1 }
0x1e52   :  { %v2265_v12 = vrot.slane %v2259_v55, 2 }
0x1e53   :  { %v2268_v57 = vadd.f32 %v2264_v53, %v5019_v41  ;;  %v3914_v41 = vpack.c.bf16 %v2304_v48, %v2303_v11 }
0x1e54   :  { %v2269_v17 = vadd.f32 %v2265_v12, %v5023_v42  ;;  %v3918_v42 = vpack.c.bf16 %v2306_v23, %v2305_v29 }
0x1e55   :  { %v3439_v58 = vmul.f32 -1.442695, %v2268_v57  ;;  %3915 = vmatprep.subr.bf16.mxu0 %v3914_v41 }
0x1e56   :  { %3917 = vmatpush3.bf16.msra.mxu0 %v3914_v41  ;;  %v3440_v56 = vmul.f32 -1.442695, %v2269_v17 }
0x1e57   :  { %4184 = vpow2.f32 %v3439_v58  ;;  %3919 = vmatprep.subr.bf16.mxu0 %v3918_v42 }
0x1e58   :  { %4186 = vtanh.f32 %v2269_v17 }
0x1e5a   :  { %3921 = vmatpush3.bf16.msra.mxu0 %v3918_v42 }
0x1e5b   :  { %3923 = vmatprep.subr.bf16.mxu0 %v3922_v1 }
0x1e5e   :  { %3925 = vmatpush3.bf16.msra.mxu0 %v3922_v1 }
0x1e5f   :  { %3927 = vmatprep.subr.bf16.mxu0 %v3926_v9 }
0x1e61   :  { %v4185_v47 = vpop.eup %4184 }
0x1e62   :  { %v2276_v60 = vadd.f32 1.0, %v4185_v47  ;;  %v4187_v54 = vpop.eup %4186  ;;  %3929 = vmatpush3.bf16.msra.mxu0 %v3926_v9 }
0x1e63   :  { %3936 = vmatprep.subr.bf16.mxu0 %v4491_v8 }
0x1e64   :  { %4188 = vrcp.f32 %v2276_v60 }
0x1e65   :  { %4190 = vpow2.f32 %v3440_v56 }
0x1e6e   :  { %v4189_v20 = vpop.eup %4188 }
0x1e6f   :  { %v2287_v61 = vmul.f32 %v4189_v20, %v4187_v54  ;;  %v2286_v5 = vmul.f32 %v4189_v20, %v2284_v44  ;;  %v4191_v59 = vpop.eup %4190 }
0x1e70   :  { %v2277_v62 = vadd.f32 1.0, %v4191_v59 }
0x1e71   :  { %2289 = vrot.lane.b32.xlu1 %v2287_v61, %s4490_s0 }
0x1e72   :  { %4192 = vrcp.f32 %v2277_v62 }
0x1e75   :  { %1712 = vrot.lane.b32.xlu1 %v5069_v28, %s4490_s0  ;;  %v2399_v28 = vld [vmem:[#allocation16] sm:$0xff] }
0x1e79   :  { %2066 = vrot.lane.b32.xlu1 %v5118_v14, %s4490_s0  ;;  %v5151_v14 = vpack.c.bf16 %v2400_v2, %v2399_v28 }
0x1e7b   :  { %3932 = vmatpush3.bf16.msra.mxu1 %v5151_v14 }
0x1e7c   :  { %3933 = vmatprep.subr.bf16.mxu1 %v4491_v8  ;;  %v4193_v13 = vpop.eup %4192 }
0x1e7f   :  { %3935 = vmatpush3.bf16.msra.mxu1 %v5159_v21 }
0x1e80   :  { %3942 = vmatprep.subr.bf16.mxu1 %v4491_v8 }
0x1e82   :  { %3548 = vmatmul.mubr.f32.vlgmr.msra.gmra.mrb[20].mxu1 %v4489_v0 }
0x1e83   :  { %3944 = vmatpush3.bf16.msra.mxu1 %v5151_v14  ;;  %3569 = vmatprep.mubr.msk.f32.mxu1 %vm4492_vm10, %v4489_v0 }
0x1e84   :  { %3945 = vmatprep.subr.bf16.mxu1 %v4491_v8 }
0x1e87   :  { %3947 = vmatpush3.bf16.msra.mxu1 %v5159_v21 }
0x1e88   :  { %3954 = vmatprep.subr.bf16.mxu1 %v4491_v8 }
0x1ee3   :  { %v2290_v22 = vpop.permute.xlu1 %2289 }
0x1ee4   :  { %v2292_v32 = vadd.f32 %v2290_v22, %v2286_v5 }
0x1ee6   :  { %4194 = vtanh.f32 %v2292_v32 }
0x1ee7   :  { %v1713_v4 = vpop.permute.xlu1 %1712 }
0x1ee8   :  { %1715 = vst.msk [vmem:[#allocation3] sm:$0x30] %vm652_vm8, %v1713_v4 }
0x1ee9   :  { %1716 = vst.msk [vmem:[#allocation3 + $0x6] sm:$0x30] %vm654_vm9, %v1713_v4 }
0x1eeb   :  { %v2067_v19 = vpop.permute.xlu1 %2066 }
0x1eec   :  { %2069 = vst.msk [vmem:[#allocation3 + $0x8] sm:$0xc] %vm535_vm4, %v2067_v19 }
0x1eed   :  { %2070 = vst.msk [vmem:[#allocation3 + $0x2] sm:$0xc] %vm537_vm5, %v2067_v19 }
0x1ef0   :  { %v4195_v24 = vpop.eup %4194 }
0x1ef1   :  { %v2294_v25 = vmul.f32 %v4195_v24, %v4193_v13 }
0x1ef3   :  { %2296 = vrot.lane.b32.xlu1 %v2294_v25, %s4490_s0 }
0x1f55   :  { %v2472_v38 = vpop.f32.mrb[20].mxu1 }
0x1f56   :  { %v3549_v27 = vpop.f32.mrb[21].mxu1 }
0x1f65   :  { %v2297_v49 = vpop.permute.xlu1 %2296 }
0x1f66   :  { %2299 = vst.msk [vmem:[#allocation3 + $0x8] sm:$0xc0] %vm769_vm6, %v2297_v49 }
0x1f67   :  { %2300 = vst.msk [vmem:[#allocation3 - $0x6] sm:$0xc0] %vm771_vm7, %v2297_v49 }
0x1f6d   :  { %v2302_v36 = vld [vmem:[#allocation3 + $0x8] sm:$0xff] }
0x1f6e   :  { %v2301_v7 = vld [vmem:[#allocation3] sm:$0xff] }
0x1f6f   :  { %3536 = vmatprep.mubr.msk.f32.mxu0 %vm312_vm3, %v2301_v7 }
0x1f70   :  { %3537 = vmatmul.mubr.msk.f32.vlgmr.msra.gmra.mrb[20].mxu0 %vm312_vm3, %v2302_v36 }
0x1f71   :  { %3938 = vmatpush3.bf16.msra.mxu0 %v5151_v14  ;;  %3558 = vmatprep.mubr.msk.f32.mxu0 %vm4492_vm10, %v4489_v0 }
0x1f72   :  { %3939 = vmatprep.subr.bf16.mxu0 %v4491_v8 }
0x1f75   :  { %3941 = vmatpush3.bf16.msra.mxu0 %v5159_v21 }
0x1f76   :  { %3948 = vmatprep.subr.bf16.mxu0 %v4491_v8 }
0x2043   :  { %v3538_v33 = vpop.f32.mrb[20].mxu0 }
0x2044   :  { %v5187_v34 = vadd.f32 %v3538_v33, %v3441_v31  ;;  %v2390_v37 = vpop.f32.mrb[21].mxu0 }
0x2045   :  { %v5189_v40 = vadd.f32 %v3441_v31, %v2390_v37 }
0x2047   :  { %v2476_v39 = vadd.f32 %v2472_v38, %v5189_v40 }
0x2049   :  { %4196 = vtanh.f32 %v2476_v39  ;;  %v3444_v10 = vmul.f32 -1.442695, %v2476_v39 }
0x204b   :  { %4198 = vpow2.f32 %v3444_v10 }
0x2053   :  { %v4197_v43 = vpop.eup %4196 }
0x2054   :  { %2486 = vrot.lane.b32.xlu0 %v4197_v43, %s4490_s0 }
0x2055   :  { %v4199_v45 = vpop.eup %4198 }
0x2056   :  { %v2480_v46 = vadd.f32 1.0, %v4199_v45 }
0x2058   :  { %4200 = vrcp.f32 %v2480_v46 }
0x2062   :  { %v4201_v15 = vpop.eup %4200 }
0x2063   :  { %v2484_v52 = vmul.f32 0.0, %v4201_v15 }
0x20c6   :  { %v2487_v50 = vpop.permute.xlu0 %2486 }
0x20c7   :  { %v2489_v18 = vmul.f32 %v4201_v15, %v2487_v50 }
0x20c9   :  { %2491 = vrot.lane.b32.xlu1 %v2489_v18, %s4493_s10 }
0x213b   :  { %v2492_v30 = vpop.permute.xlu1 %2491 }
0x213c   :  { %v2494_v26 = vadd.f32 %v2492_v30, %v2484_v52 }
0x213e   :  { %4202 = vtanh.f32 %v2494_v26  ;;  %v2590_v29 = vrot.slane %v2494_v26, 6 }
0x2148   :  { %v4203_v53 = vpop.eup %4202 }
0x2149   :  { %2497 = vrot.lane.b32.xlu0 %v4203_v53, %s4490_s0 }
0x21bb   :  { %v2498_v55 = vpop.permute.xlu0 %2497 }
0x21bc   :  { %v2500_v57 = vmul.f32 %v4201_v15, %v2498_v55 }
0x21be   :  { %2502 = vrot.lane.b32.xlu1 %v2500_v57, %s4493_s10 }
0x2230   :  { %v2503_v58 = vpop.permute.xlu1 %2502 }
0x2231   :  { %2505 = vst.msk [vmem:[#allocation4] sm:$0x3] %vm415_vm1, %v2503_v58  ;;  %3559 = vmatmul.mubr.msk.f32.vlgmr.msra.gmra.mrb[22].mxu0 %vm2403_vm11, %v2503_v58 }
0x2232   :  { %3950 = vmatpush3.bf16.msra.mxu0 %v5151_v14  ;;  %3580 = vmatprep.mubr.msk.f32.mxu0 %vm4492_vm10, %v4489_v0 }
0x2233   :  { %3951 = vmatprep.subr.bf16.mxu0 %v4491_v8 }
0x2236   :  { %3953 = vmatpush3.bf16.msra.mxu0 %v5159_v21 }
0x2237   :  { %3960 = vmatprep.subr.bf16.mxu0 %v4491_v8 }
0x2304   :  { %v2574_v12 = vpop.f32.mrb[22].mxu0 }
0x2305   :  { %v2579_v17 = vrot.slane %v2574_v12, 6  ;;  %v3560_v47 = vpop.f32.mrb[23].mxu0 }
0x2307   :  { %v2581_v60 = vadd.f32 %v2579_v17, %v5189_v40 }
0x2309   :  { %4204 = vtanh.f32 %v2581_v60  ;;  %v3446_v44 = vmul.f32 -1.442695, %v2581_v60 }
0x230b   :  { %4206 = vpow2.f32 %v3446_v44 }
0x2313   :  { %v4205_v54 = vpop.eup %4204 }
0x2314   :  { %2594 = vrot.lane.b32.xlu0 %v4205_v54, %s4490_s0 }
0x2315   :  { %v4207_v20 = vpop.eup %4206 }
0x2316   :  { %v2585_v61 = vadd.f32 1.0, %v4207_v20 }
0x2318   :  { %4208 = vrcp.f32 %v2585_v61 }
0x2322   :  { %v4209_v5 = vpop.eup %4208 }
0x2323   :  { %v2592_v41 = vmul.f32 %v4209_v5, %v2590_v29 }
0x2386   :  { %v2595_v11 = vpop.permute.xlu0 %2594 }
0x2387   :  { %v2597_v48 = vmul.f32 %v4209_v5, %v2595_v11 }
0x2389   :  { %2599 = vrot.lane.b32.xlu1 %v2597_v48, %s4493_s10 }
0x23fb   :  { %v2600_v23 = vpop.permute.xlu1 %2599 }
0x23fc   :  { %v2602_v42 = vadd.f32 %v2600_v23, %v2592_v41 }
0x23fe   :  { %4210 = vtanh.f32 %v2602_v42  ;;  %v2701_v35 = vrot.slane %v2602_v42, 6 }
0x2408   :  { %v4211_v56 = vpop.eup %4210 }
0x2409   :  { %2605 = vrot.lane.b32.xlu0 %v4211_v56, %s4490_s0 }
0x247b   :  { %v2606_v59 = vpop.permute.xlu0 %2605 }
0x247c   :  { %v5208_v62 = vmul.f32 %v4209_v5, %v2606_v59 }
0x247e   :  { %v2614_v22 = vrot.slane %v5208_v62, 2 }
0x2480   :  { %2615 = vrot.lane.b32.xlu1 %v2614_v22, %s4493_s10 }
0x24f2   :  { %v2616_v32 = vpop.permute.xlu1 %2615 }
0x24f3   :  { %3570 = vmatmul.mubr.msk.f32.vlgmr.msra.gmra.mrb[22].mxu1 %vm2403_vm11, %v2616_v32 }
0x24f4   :  { %3956 = vmatpush3.bf16.msra.mxu1 %v5151_v14  ;;  %3591 = vmatprep.mubr.msk.f32.mxu1 %vm4492_vm10, %v4489_v0 }
0x24f5   :  { %3957 = vmatprep.subr.bf16.mxu1 %v4491_v8 }
0x24f8   :  { %3959 = vmatpush3.bf16.msra.mxu1 %v5159_v21 }
0x24f9   :  { %3966 = vmatprep.subr.bf16.mxu1 %v4491_v8 }
0x25c6   :  { %v2685_v6 = vpop.f32.mrb[22].mxu1 }
0x25c7   :  { %v2690_v63 = vrot.slane %v2685_v6, 4  ;;  %v3571_v1 = vpop.f32.mrb[23].mxu1 }
0x25c9   :  { %v2692_v28 = vadd.f32 %v2690_v63, %v5189_v40 }
0x25cb   :  { %4212 = vtanh.f32 %v2692_v28  ;;  %v3448_v3 = vmul.f32 -1.442695, %v2692_v28 }
0x25cd   :  { %4214 = vpow2.f32 %v3448_v3 }
0x25d5   :  { %v4213_v2 = vpop.eup %4212 }
0x25d6   :  { %2705 = vrot.lane.b32.xlu0 %v4213_v2, %s4490_s0 }
0x25d7   :  { %v4215_v4 = vpop.eup %4214 }
0x25d8   :  { %v2696_v51 = vadd.f32 1.0, %v4215_v4 }
0x25da   :  { %4216 = vrcp.f32 %v2696_v51 }
0x25e4   :  { %v4217_v9 = vpop.eup %4216 }
0x25e5   :  { %v2703_v13 = vmul.f32 %v4217_v9, %v2701_v35 }
0x2648   :  { %v2706_v19 = vpop.permute.xlu0 %2705 }
0x2649   :  { %v2708_v16 = vmul.f32 %v4217_v9, %v2706_v19 }
0x264b   :  { %2710 = vrot.lane.b32.xlu1 %v2708_v16, %s4493_s10 }
0x26bd   :  { %v2711_v24 = vpop.permute.xlu1 %2710 }
0x26be   :  { %v2713_v25 = vadd.f32 %v2711_v24, %v2703_v13 }
0x26c0   :  { %4218 = vtanh.f32 %v2713_v25  ;;  %v2812_v52 = vrot.slane %v2713_v25, 6 }
0x26ca   :  { %v4219_v49 = vpop.eup %4218 }
0x26cb   :  { %2716 = vrot.lane.b32.xlu0 %v4219_v49, %s4490_s0 }
0x273d   :  { %v2717_v7 = vpop.permute.xlu0 %2716 }
0x273e   :  { %v5223_v36 = vmul.f32 %v4217_v9, %v2717_v7 }
0x2740   :  { %v2725_v38 = vrot.slane %v5223_v36, 4 }
0x2742   :  { %2726 = vrot.lane.b32.xlu1 %v2725_v38, %s4493_s10 }
0x27b4   :  { %v2727_v27 = vpop.permute.xlu1 %2726 }
0x27b5   :  { %3581 = vmatmul.mubr.msk.f32.vlgmr.msra.gmra.mrb[24].mxu0 %vm2403_vm11, %v2727_v27 }
0x27b6   :  { %3962 = vmatpush3.bf16.msra.mxu0 %v5151_v14  ;;  %3602 = vmatprep.mubr.msk.f32.mxu0 %vm4492_vm10, %v4489_v0 }
0x27b7   :  { %3963 = vmatprep.subr.bf16.mxu0 %v4491_v8 }
0x27ba   :  { %3965 = vmatpush3.bf16.msra.mxu0 %v5159_v21 }
0x27bb   :  { %3972 = vmatprep.subr.bf16.mxu0 %v4491_v8 }
0x2888   :  { %v2796_v31 = vpop.f32.mrb[24].mxu0 }
0x2889   :  { %v2801_v33 = vrot.slane %v2796_v31, 2  ;;  %v3582_v37 = vpop.f32.mrb[25].mxu0 }
0x288b   :  { %v2803_v39 = vadd.f32 %v2801_v33, %v5189_v40 }
0x288d   :  { %4220 = vtanh.f32 %v2803_v39  ;;  %v3450_v10 = vmul.f32 -1.442695, %v2803_v39 }
0x288f   :  { %4222 = vpow2.f32 %v3450_v10 }
0x2897   :  { %v4221_v43 = vpop.eup %4220 }
0x2898   :  { %2816 = vrot.lane.b32.xlu0 %v4221_v43, %s4490_s0 }
0x2899   :  { %v4223_v45 = vpop.eup %4222 }
0x289a   :  { %v2807_v46 = vadd.f32 1.0, %v4223_v45 }
0x289c   :  { %4224 = vrcp.f32 %v2807_v46 }
0x28a6   :  { %v4225_v15 = vpop.eup %4224 }
0x28a7   :  { %v2814_v30 = vmul.f32 %v4225_v15, %v2812_v52 }
0x290a   :  { %v2817_v50 = vpop.permute.xlu0 %2816 }
0x290b   :  { %v2819_v18 = vmul.f32 %v4225_v15, %v2817_v50 }
0x290d   :  { %2821 = vrot.lane.b32.xlu1 %v2819_v18, %s4493_s10 }
0x297f   :  { %v2822_v26 = vpop.permute.xlu1 %2821 }
0x2980   :  { %v2824_v53 = vadd.f32 %v2822_v26, %v2814_v30 }
0x2982   :  { %4226 = vtanh.f32 %v2824_v53  ;;  %v2920_v29 = vrot.slane %v2824_v53, 6 }
0x298c   :  { %v4227_v40 = vpop.eup %4226 }
0x298d   :  { %2827 = vrot.lane.b32.xlu0 %v4227_v40, %s4490_s0 }
0x29ff   :  { %v2828_v55 = vpop.permute.xlu0 %2827 }
0x2a00   :  { %v5238_v57 = vmul.f32 %v4225_v15, %v2828_v55 }
0x2a02   :  { %v2836_v58 = vrot.slane %v5238_v57, 6 }
0x2a04   :  { %2837 = vrot.lane.b32.xlu1 %v2836_v58, %s4493_s10 }
0x2a76   :  { %v2838_v12 = vpop.permute.xlu1 %2837 }
0x2a77   :  { %3592 = vmatmul.mubr.msk.f32.vlgmr.msra.gmra.mrb[24].mxu1 %vm2403_vm11, %v2838_v12 }
0x2a78   :  { %3968 = vmatpush3.bf16.msra.mxu1 %v5151_v14  ;;  %3613 = vmatprep.mubr.msk.f32.mxu1 %vm4492_vm10, %v4489_v0 }
0x2a79   :  { %3969 = vmatprep.subr.bf16.mxu1 %v4491_v8 }
0x2a7c   :  { %3971 = vmatpush3.bf16.msra.mxu1 %v5159_v21 }
0x2b4a   :  { %v2907_v17 = vpop.f32.mrb[24].mxu1 }
0x2b4b   :  { %v2911_v47 = vadd.f32 %v2907_v17, %v5187_v34  ;;  %v3593_v60 = vpop.f32.mrb[25].mxu1 }
0x2b4d   :  { %4228 = vtanh.f32 %v2911_v47  ;;  %v3452_v44 = vmul.f32 -1.442695, %v2911_v47 }
0x2b4f   :  { %4230 = vpow2.f32 %v3452_v44 }
0x2b57   :  { %v4229_v54 = vpop.eup %4228 }
0x2b58   :  { %2924 = vrot.lane.b32.xlu0 %v4229_v54, %s4490_s0 }
0x2b59   :  { %v4231_v20 = vpop.eup %4230 }
0x2b5a   :  { %v2915_v61 = vadd.f32 1.0, %v4231_v20 }
0x2b5c   :  { %4232 = vrcp.f32 %v2915_v61 }
0x2b66   :  { %v4233_v5 = vpop.eup %4232 }
0x2b67   :  { %v2922_v41 = vmul.f32 %v4233_v5, %v2920_v29 }
0x2bca   :  { %v2925_v11 = vpop.permute.xlu0 %2924 }
0x2bcb   :  { %v2927_v48 = vmul.f32 %v4233_v5, %v2925_v11 }
0x2bcd   :  { %2929 = vrot.lane.b32.xlu1 %v2927_v48, %s4493_s10 }
0x2c3f   :  { %v2930_v23 = vpop.permute.xlu1 %2929 }
0x2c40   :  { %v2932_v42 = vadd.f32 %v2930_v23, %v2922_v41 }
0x2c42   :  { %4234 = vtanh.f32 %v2932_v42 }
0x2c4c   :  { %v4235_v56 = vpop.eup %4234 }
0x2c4d   :  { %2935 = vrot.lane.b32.xlu0 %v4235_v56, %s4490_s0 }
0x2cbf   :  { %v2936_v59 = vpop.permute.xlu0 %2935 }
0x2cc0   :  { %v2938_v22 = vmul.f32 %v4233_v5, %v2936_v59 }
0x2cc2   :  { %2940 = vrot.lane.b32.xlu1 %v2938_v22, %s4493_s10 }
0x2d34   :  { %v2941_v32 = vpop.permute.xlu1 %2940 }
0x2d35   :  { %2943 = vst.msk [vmem:[#allocation4 + $0x8] sm:$0x3] %vm415_vm1, %v2941_v32  ;;  %3603 = vmatmul.mubr.msk.f32.vlgmr.msra.gmra.mrb[26].mxu0 %vm2403_vm11, %v2941_v32  ;;  %v3278_v32 = vld [vmem:[%s5328_s11 + $0x10] sm:$0xff] }
0x2d36   :  { %3974 = vmatpush3.bf16.msra.mxu0 %v5151_v14  ;;  %3624 = vmatprep.mubr.msk.f32.mxu0 %vm4492_vm10, %v4489_v0 }
0x2d37   :  { %3975 = vmatprep.subr.bf16.mxu0 %v4491_v8  ;;  %v3028_v8 = vrot.slane %v2932_v42, 6 }
0x2d3a   :  { %3977 = vmatpush3.bf16.msra.mxu0 %v5159_v21 }
0x2e08   :  { %v3012_v6 = vpop.f32.mrb[26].mxu0 }
0x2e09   :  { %v3017_v63 = vrot.slane %v3012_v6, 6  ;;  %v3604_v1 = vpop.f32.mrb[27].mxu0 }
0x2e0b   :  { %v3019_v28 = vadd.f32 %v3017_v63, %v5187_v34 }
0x2e0d   :  { %4236 = vtanh.f32 %v3019_v28  ;;  %v3454_v3 = vmul.f32 -1.442695, %v3019_v28 }
0x2e0f   :  { %4238 = vpow2.f32 %v3454_v3 }
0x2e17   :  { %v4237_v2 = vpop.eup %4236 }
0x2e18   :  { %3032 = vrot.lane.b32.xlu0 %v4237_v2, %s4490_s0 }
0x2e19   :  { %v4239_v4 = vpop.eup %4238 }
0x2e1a   :  { %v3023_v14 = vadd.f32 1.0, %v4239_v4 }
0x2e1c   :  { %4240 = vrcp.f32 %v3023_v14 }
0x2e26   :  { %v4241_v51 = vpop.eup %4240 }
0x2e27   :  { %v3030_v21 = vmul.f32 %v4241_v51, %v3028_v8 }
0x2e8a   :  { %v3033_v0 = vpop.permute.xlu0 %3032 }
0x2e8b   :  { %v3035_v9 = vmul.f32 %v4241_v51, %v3033_v0 }
0x2e8d   :  { %3037 = vrot.lane.b32.xlu1 %v3035_v9, %s4493_s10 }
0x2eff   :  { %v3038_v19 = vpop.permute.xlu1 %3037 }
0x2f00   :  { %v3040_v16 = vadd.f32 %v3038_v19, %v3030_v21 }
0x2f02   :  { %4242 = vtanh.f32 %v3040_v16  ;;  %v3139_v15 = vrot.slane %v3040_v16, 6 }
0x2f0c   :  { %v4243_v35 = vpop.eup %4242 }
0x2f0d   :  { %3043 = vrot.lane.b32.xlu0 %v4243_v35, %s4490_s0 }
0x2f7f   :  { %v3044_v13 = vpop.permute.xlu0 %3043 }
0x2f80   :  { %v5264_v24 = vmul.f32 %v4241_v51, %v3044_v13  ;;  %v3459_v51 = vld [vmem:[#allocation18] ss:$0 sm:$0xff] }
0x2f82   :  { %v3052_v25 = vrot.slane %v5264_v24, 2 }
0x2f84   :  { %3053 = vrot.lane.b32.xlu1 %v3052_v25, %s4493_s10 }
0x2ff6   :  { %v3054_v49 = vpop.permute.xlu1 %3053 }
0x2ff7   :  { %3614 = vmatmul.mubr.msk.f32.vlgmr.msra.gmra.mrb[26].mxu1 %vm2403_vm11, %v3054_v49 }
0x30ca   :  { %v3123_v7 = vpop.f32.mrb[26].mxu1 }
0x30cb   :  { %v3128_v38 = vrot.slane %v3123_v7, 4  ;;  %v3615_v27 = vpop.f32.mrb[27].mxu1 }
0x30cd   :  { %v3130_v31 = vadd.f32 %v3128_v38, %v5187_v34 }
0x30cf   :  { %4244 = vtanh.f32 %v3130_v31  ;;  %v3456_v37 = vmul.f32 -1.442695, %v3130_v31 }
0x30d1   :  { %4246 = vpow2.f32 %v3456_v37 }
0x30d9   :  { %v4245_v33 = vpop.eup %4244 }
0x30da   :  { %3143 = vrot.lane.b32.xlu0 %v4245_v33, %s4490_s0 }
0x30db   :  { %v4247_v39 = vpop.eup %4246 }
0x30dc   :  { %v3134_v43 = vadd.f32 1.0, %v4247_v39 }
0x30de   :  { %4248 = vrcp.f32 %v3134_v43 }
0x30e8   :  { %v4249_v10 = vpop.eup %4248 }
0x30e9   :  { %v3141_v50 = vmul.f32 %v4249_v10, %v3139_v15 }
0x314c   :  { %v3144_v45 = vpop.permute.xlu0 %3143 }
0x314d   :  { %v3146_v46 = vmul.f32 %v4249_v10, %v3144_v45 }
0x314f   :  { %3148 = vrot.lane.b32.xlu1 %v3146_v46, %s4493_s10 }
0x31c1   :  { %v3149_v18 = vpop.permute.xlu1 %3148 }
0x31c2   :  { %v3151_v52 = vadd.f32 %v3149_v18, %v3141_v50 }
0x31c4   :  { %4250 = vtanh.f32 %v3151_v52 }
0x31ce   :  { %v4251_v30 = vpop.eup %4250 }
0x31cf   :  { %3154 = vrot.lane.b32.xlu0 %v4251_v30, %s4490_s0 }
0x3241   :  { %v3155_v26 = vpop.permute.xlu0 %3154 }
0x3242   :  { %v3157_v53 = vmul.f32 %v4249_v10, %v3155_v26 }
0x3244   :  { %v3163_v40 = vrot.slane %v3157_v53, 4 }
0x3246   :  { %3164 = vrot.lane.b32.xlu1 %v3163_v40, %s4493_s10 }
0x32b8   :  { %v3165_v55 = vpop.permute.xlu1 %3164 }
0x32b9   :  { %3625 = vmatmul.mubr.msk.f32.vlgmr.msra.gmra.mrb[28].mxu0 %vm2403_vm11, %v3165_v55 }
0x338c   :  { %v3234_v58 = vpop.f32.mrb[28].mxu0 }
0x338d   :  { %v3239_v12 = vrot.slane %v3234_v58, 2  ;;  %v3626_v17 = vpop.f32.mrb[29].mxu0 }
0x338f   :  { %v3241_v47 = vadd.f32 %v3239_v12, %v5187_v34  ;;  %v3250_v34 = vrot.slane %v3151_v52, 6 }
0x3391   :  { %4252 = vtanh.f32 %v3241_v47  ;;  %v3458_v54 = vmul.f32 -1.442695, %v3241_v47 }
0x3393   :  { %4254 = vpow2.f32 %v3458_v54 }
0x339b   :  { %v4253_v60 = vpop.eup %4252 }
0x339c   :  { %3254 = vrot.lane.b32.xlu0 %v4253_v60, %s4490_s0 }
0x339d   :  { %v4255_v44 = vpop.eup %4254 }
0x339e   :  { %v3245_v20 = vadd.f32 1.0, %v4255_v44 }
0x33a0   :  { %4256 = vrcp.f32 %v3245_v20 }
0x33aa   :  { %v4257_v61 = vpop.eup %4256 }
0x33ab   :  { %v3252_v48 = vmul.f32 %v4257_v61, %v3250_v34 }
0x340e   :  { %v3255_v5 = vpop.permute.xlu0 %3254 }
0x340f   :  { %v3257_v11 = vmul.f32 %v4257_v61, %v3255_v5 }
0x3411   :  { %3259 = vrot.lane.b32.xlu1 %v3257_v11, %s4493_s10 }
0x3415   :  { %2610 = vrot.lane.b32.xlu1 %v5208_v62, %s4493_s10  ;;  %v3276_v62 = vld [vmem:[%s5328_s11] sm:$0xff] }
0x3419   :  { %2832 = vrot.lane.b32.xlu1 %v5238_v57, %s4493_s10  ;;  %v3277_v57 = vld [vmem:[%s5328_s11 + $0x8] sm:$0xff] }
0x341a   :  { %v3978_v22 = vpack.c.bf16 %v3277_v57, %v3276_v62 }
0x341c   :  { %3979 = vmatprep.subr.bf16.mxu1 %v3978_v22 }
0x341d   :  { %3159 = vrot.lane.b32.xlu1 %v3157_v53, %s4493_s10  ;;  %3981 = vmatpush3.bf16.msra.mxu1 %v3978_v22 }
0x3483   :  { %v3260_v29 = vpop.permute.xlu1 %3259 }
0x3484   :  { %v3262_v41 = vadd.f32 %v3260_v29, %v3252_v48 }
0x3486   :  { %4258 = vtanh.f32 %v3262_v41 }
0x3487   :  { %v2611_v23 = vpop.permute.xlu1 %2610 }
0x3488   :  { %2613 = vst.msk [vmem:[#allocation4] sm:$0xc] %vm535_vm4, %v2611_v23 }
0x348b   :  { %v2833_v42 = vpop.permute.xlu1 %2832 }
0x348c   :  { %2835 = vst.msk [vmem:[#allocation4] sm:$0xc0] %vm769_vm6, %v2833_v42 }
0x348f   :  { %v3160_v56 = vpop.permute.xlu1 %3159 }
0x3490   :  { %v4259_v59 = vpop.eup %4258  ;;  %3162 = vst.msk [vmem:[#allocation4 + $0x8] sm:$0x30] %vm652_vm8, %v3160_v56 }
0x3491   :  { %3265 = vrot.lane.b32.xlu0 %v4259_v59, %s4490_s0 }
0x3495   :  { %2721 = vrot.lane.b32.xlu0 %v5223_v36, %s4493_s10  ;;  %v3279_v36 = vld [vmem:[%s5328_s11 + $0x18] sm:$0xff] }
0x3496   :  { %v3982_v6 = vpack.c.bf16 %v3279_v36, %v3278_v32 }
0x3498   :  { %3983 = vmatprep.subr.bf16.mxu1 %v3982_v6 }
0x3499   :  { %3048 = vrot.lane.b32.xlu0 %v5264_v24, %s4493_s10  ;;  %3985 = vmatpush3.bf16.msra.mxu1 %v3982_v6 }
0x3503   :  { %v3266_v63 = vpop.permute.xlu0 %3265 }
0x3504   :  { %v3268_v1 = vmul.f32 %v4257_v61, %v3266_v63 }
0x3506   :  { %3270 = vrot.lane.b32.xlu0 %v3268_v1, %s4493_s10 }
0x3507   :  { %v2722_v28 = vpop.permute.xlu0 %2721 }
0x3508   :  { %2724 = vst.msk [vmem:[#allocation4] sm:$0x30] %vm652_vm8, %v2722_v28 }
0x350b   :  { %v3049_v2 = vpop.permute.xlu0 %3048 }
0x350c   :  { %3051 = vst.msk [vmem:[#allocation4 + $0x8] sm:$0xc] %vm535_vm4, %v3049_v2 }
0x350f   :  { %v3274_v3 = vld [vmem:[#allocation4] sm:$0xff] }
0x3510   :  { %3635 = vmatprep.mubr.msk.f32.mxu1 %vm2403_vm11, %v3274_v3 }
0x3578   :  { %v3271_v4 = vpop.permute.xlu0 %3270 }
0x3579   :  { %3273 = vst.msk [vmem:[#allocation4 + $0x8] sm:$0xc0] %vm769_vm6, %v3271_v4 }
0x3580   :  { %v3275_v14 = vld [vmem:[#allocation4 + $0x8] sm:$0xff] }
0x3581   :  { %3636 = vmatmul.mubr.msk.f32.vlgmr.msra.gmra.mrb[28].mxu1 %vm2403_vm11, %v3275_v14 }
0x3654   :  { %v3637_v0 = vpop.f32.mrb[28].mxu1 }
0x3655   :  { %v3365_v9 = vadd.f32 %v3637_v0, %v3459_v51  ;;  %v3359_v8 = vpop.f32.mrb[29].mxu1 }
0x3656   :  { %v3360_v21 = vadd.f32 %v3459_v51, %v3359_v8 }
0x3657   :  { %v3463_v19 = vmul.f32 -1.442695, %v3365_v9 }
0x3658   :  { %v3462_v16 = vmul.f32 -1.442695, %v3360_v21 }
0x3659   :  { %4260 = vpow2.f32 %v3463_v19 }
0x365a   :  { %4262 = vpow2.f32 %v3462_v16 }
0x3663   :  { %v4261_v35 = vpop.eup %4260 }
0x3664   :  { %v4263_v13 = vpop.eup %4262  ;;  %v3375_v24 = vadd.f32 1.0, %v4261_v35 }
0x3665   :  { %v3374_v25 = vadd.f32 1.0, %v4263_v13 }
0x3666   :  { %4264 = vrcp.f32 %v3375_v24 }
0x3667   :  { %4266 = vrcp.f32 %v3374_v25 }
0x3670   :  { %v4265_v49 = vpop.eup %4264 }
0x3671   :  { %v4267_v7 = vpop.eup %4266  ;;  %3381 = vst.msk [vmem:[%s5330_s13 + $0x8] sm:$0xff] %vm178_vm0, %v4265_v49 }
0x3672   :  { %3380 = vst.msk [vmem:[%s5330_s13] sm:$0xff] %vm178_vm0, %v4267_v7 }
0x3673   :  { %3386 = vsyncpa [#allocation6], 1 }
0x3674   :  { %3387 = vsyncpa [#allocation8], 1 }
0x3675   :  { %3388 = vsyncpa [#allocation11], 1 }
0x3676   :  { %3389 = vsyncpa [#allocation14], 1 }
0x3677   :  { %3390 = vsyncpa [#allocation17], 1 }

</bundles_post_ra>
